<compile_context>
chip_gen: v7x
topology: tpu7x:2x2x1
jax: 0.10.0
libtpu: 0.0.40
codegen_flags: <defaults>
</compile_context>

<pallas_src>
import functools

import jax
import jax.numpy as jnp
from jax.experimental import pallas as pl
from jax.experimental.pallas import tpu as pltpu

# Logical sizes (PyTorch Net) and lane-aligned padded sizes.
K_IN = 28 * 28            # 784
H1, H2, OUT = 300, 100, 10
H1P, H2P, OUTP = 384, 128, 128   # multiples of 128 lanes


def _round_up(n: int, m: int) -> int:
    return ((n + m - 1) // m) * m


def mlp_kernel(x_ref, w1_ref, b1_ref, w2_ref, b2_ref, w3_ref, b3_ref, o_ref):
    # One batch tile per grid step: x_ref is (TB, 784); weights/biases are the
    # full (padded) parameter tensors, VMEM-resident across all steps.
    x = x_ref[...]
    h1 = jnp.dot(x, w1_ref[...], preferred_element_type=jnp.float32) + b1_ref[...]
    h1 = jnp.maximum(h1, 0.0)                          # ReLU, full 384-lane vregs
    h2 = jnp.dot(h1, w2_ref[...], preferred_element_type=jnp.float32) + b2_ref[...]
    h2 = jnp.maximum(h2, 0.0)                          # ReLU, full 128-lane vregs
    out = jnp.dot(h2, w3_ref[...], preferred_element_type=jnp.float32) + b3_ref[...]
    o_ref[...] = out.astype(o_ref.dtype)               # lane-dense 128-wide store


def pad_params(w1, b1, w2, b2, w3, b3):
    """Zero-pad feature dims to lane multiples.  Call ONCE at init (hoisted out
    of the forward path).  Zeros are mathematically inert: zero weight columns
    -> zero activations, ReLU(0)=0, zero K-rows add 0."""
    w1p = jnp.pad(w1, ((0, 0), (0, H1P - H1)))
    b1p = jnp.pad(b1, ((0, 0), (0, H1P - H1)))
    w2p = jnp.pad(w2, ((0, H1P - H1), (0, H2P - H2)))
    b2p = jnp.pad(b2, ((0, 0), (0, H2P - H2)))
    w3p = jnp.pad(w3, ((0, H2P - H2), (0, OUTP - OUT)))
    b3p = jnp.pad(b3, ((0, 0), (0, OUTP - OUT)))
    return w1p, b1p, w2p, b2p, w3p, b3p


def _pick_tile(batch: int, tb: int, min_tiles: int) -> int:
    """Batch-tile size: multiple of 8 sublanes, minimal masked tail (< 8 rows
    per tile), and at least `min_tiles` grid steps once batch >= 16 so v7x's
    two TensorCores both get work on the 'parallel' axis."""
    assert tb % 8 == 0, "batch tile must be a multiple of 8 sublanes"
    n_tiles = pl.cdiv(batch, tb)
    if batch >= 16:
        n_tiles = max(n_tiles, min_tiles)
    return _round_up(pl.cdiv(batch, n_tiles), 8)


@functools.partial(
    jax.jit, static_argnames=("tb", "min_tiles", "single_buffer_weights"))
def mlp_forward(x, w1p, b1p, w2p, b2p, w3p, b3p, *,
                tb=512, min_tiles=2, single_buffer_weights=True):
    if x.ndim > 2:
        x = x.reshape(x.shape[0], -1)
    B = x.shape[0]
    assert x.shape[1] == K_IN

    TB = _pick_tile(B, tb, min_tiles)
    grid = (pl.cdiv(B, TB),)    # last block may be partial: OOB rows are masked

    # Constant-index weights are fetched once; single-buffer them when supported.
    wmode = pl.Buffered(1) if single_buffer_weights else None

    def const_spec(shape):
        if wmode is None:
            return pl.BlockSpec(shape, lambda i: (0, 0))
        return pl.BlockSpec(shape, lambda i: (0, 0), pipeline_mode=wmode)

    flops = 2 * B * (K_IN * H1P + H1P * H2P + H2P * OUTP)
    param_bytes = 4 * (K_IN * H1P + H1P * H2P + H2P * OUTP + H1P + H2P + OUTP)
    bytes_accessed = param_bytes + 4 * B * (K_IN + OUTP)

    out = pl.pallas_call(
        mlp_kernel,
        out_shape=jax.ShapeDtypeStruct((B, OUTP), jnp.float32),
        grid_spec=pltpu.PrefetchScalarGridSpec(
            num_scalar_prefetch=0,
            grid=grid,
            in_specs=[
                # Activations stream per batch tile (double-buffered).
                pl.BlockSpec((TB, K_IN), lambda i: (i, 0)),
                # Weights/biases: constant index_map -> fetched once, VMEM-resident.
                const_spec((K_IN, H1P)),
                const_spec((1, H1P)),
                const_spec((H1P, H2P)),
                const_spec((1, H2P)),
                const_spec((H2P, OUTP)),
                const_spec((1, OUTP)),
            ],
            out_specs=pl.BlockSpec((TB, OUTP), lambda i: (i, 0)),
        ),
        compiler_params=pltpu.CompilerParams(
            dimension_semantics=("parallel",),   # batch axis: megacore-shardable
        ),
        cost_estimate=pl.CostEstimate(
            flops=flops, transcendentals=0, bytes_accessed=bytes_accessed
        ),
    )(x, w1p, b1p, w2p, b2p, w3p, b3p)

    # Strip the lane padding of the 10-wide logits (no batch padding to strip).
    return out[:, :OUT]


def init_params(key):
    # Deterministic init mimicking PyTorch nn.Linear default:
    # U(-1/sqrt(fan_in), 1/sqrt(fan_in)) for weights and biases.
    # Weights stored as (in_features, out_features): y = x @ W + b.
    def linear(key, fan_in, fan_out):
        kw, kb = jax.random.split(key)
        bound = 1.0 / jnp.sqrt(fan_in)
        w = jax.random.uniform(kw, (fan_in, fan_out), jnp.float32, -bound, bound)
        b = jax.random.uniform(kb, (1, fan_out), jnp.float32, -bound, bound)
        return w, b

    k1, k2, k3 = jax.random.split(key, 3)
    w1, b1 = linear(k1, K_IN, H1)
    w2, b2 = linear(k2, H1, H2)
    w3, b3 = linear(k3, H2, OUT)
    return w1, b1, w2, b2, w3, b3


if __name__ == "__main__":
    key = jax.random.PRNGKey(0)
    kx, kp = jax.random.split(key)

    params = init_params(kp)
    # Pad weights ONCE (outside the forward path), per review.
    padded = jax.block_until_ready(pad_params(*params))

    def ref_fwd(x, w1, b1, w2, b2, w3, b3):
        h = jnp.maximum(x @ w1 + b1, 0.0)
        h = jnp.maximum(h @ w2 + b2, 0.0)
        return h @ w3 + b3

    # One-time capability probe: single-buffered weight specs (pipeline_mode=
    # pl.Buffered(1)); fall back to default double-buffering if unsupported.
    x_probe = jax.random.normal(jax.random.fold_in(kx, 8), (8, K_IN), jnp.float32)
    try:
        jax.block_until_ready(
            mlp_forward(x_probe, *padded, single_buffer_weights=True))
        sbw = True
    except Exception:
        sbw = False

    # Small batch plus a non-tile-multiple batch to exercise the partial-tile
    # (masked last block) and multi-step-grid paths.
    for B in (8, 300):
        x = jax.random.normal(jax.random.fold_in(kx, B), (B, K_IN), jnp.float32)
        out = jax.block_until_ready(mlp_forward(x, *padded, single_buffer_weights=sbw))
        ref = ref_fwd(x, *params)
        assert out.shape == (B, OUT)
        assert jnp.allclose(out, ref, atol=1e-4, rtol=1e-4), f"mismatch at B={B}"

    print("KERNEL_OK")
</pallas_src>

<mosaic_0001>
module attributes {stable_mosaic.version = 11 : i64} {
  func.func @mlp_kernel(%arg0: i32, %arg1: memref<8x784xf32, #tpu.memory_space<vmem>>, %arg2: memref<784x384xf32, #tpu.memory_space<vmem>>, %arg3: memref<1x384xf32, #tpu.memory_space<vmem>>, %arg4: memref<384x128xf32, #tpu.memory_space<vmem>>, %arg5: memref<1x128xf32, #tpu.memory_space<vmem>>, %arg6: memref<128x128xf32, #tpu.memory_space<vmem>>, %arg7: memref<1x128xf32, #tpu.memory_space<vmem>>, %arg8: memref<8x128xf32, #tpu.memory_space<vmem>>) attributes {dimension_semantics = [#tpu.dimension_semantics<parallel>], iteration_bounds = array<i64: 1>, scalar_prefetch = 0 : i64, scratch_operands = 0 : i64, tpu.core_type = #tpu.core_type<tc>, window_params = [{transform_indices = @transform_0, window_bounds = array<i64: 8, 784>}, {pipeline_mode = #tpu.pipeline_mode<synchronous>, transform_indices = @transform_1, window_bounds = array<i64: 784, 384>}, {pipeline_mode = #tpu.pipeline_mode<synchronous>, transform_indices = @transform_2, window_bounds = array<i64: 1, 384>}, {pipeline_mode = #tpu.pipeline_mode<synchronous>, transform_indices = @transform_3, window_bounds = array<i64: 384, 128>}, {pipeline_mode = #tpu.pipeline_mode<synchronous>, transform_indices = @transform_4, window_bounds = array<i64: 1, 128>}, {pipeline_mode = #tpu.pipeline_mode<synchronous>, transform_indices = @transform_5, window_bounds = array<i64: 128, 128>}, {pipeline_mode = #tpu.pipeline_mode<synchronous>, transform_indices = @transform_6, window_bounds = array<i64: 1, 128>}, {transform_indices = @transform_7, window_bounds = array<i64: 8, 128>}]} {
    %c0 = arith.constant 0 : index
    %c0_0 = arith.constant 0 : index
    %0 = vector.load %arg1[%c0, %c0_0] : memref<8x784xf32, #tpu.memory_space<vmem>>, vector<8x784xf32>
    %c0_1 = arith.constant 0 : index
    %c0_2 = arith.constant 0 : index
    %1 = vector.load %arg2[%c0_1, %c0_2] : memref<784x384xf32, #tpu.memory_space<vmem>>, vector<784x384xf32>
    %cst = arith.constant dense<0.000000e+00> : vector<8x384xf32>
    %2 = tpu.matmul %0, %1, %cst {dimension_numbers = #tpu.dot_dimension_numbers<[1], [0], [0], [1], [0, 0, 1, 1], [], []>} : vector<8x784xf32>, vector<784x384xf32>, vector<8x384xf32> -> vector<8x384xf32>
    %c0_3 = arith.constant 0 : index
    %c0_4 = arith.constant 0 : index
    %3 = vector.load %arg3[%c0_3, %c0_4] : memref<1x384xf32, #tpu.memory_space<vmem>>, vector<1x384xf32>
    %4 = vector.broadcast %3 : vector<1x384xf32> to vector<8x384xf32>
    %5 = arith.addf %2, %4 : vector<8x384xf32>
    %cst_5 = arith.constant 0.000000e+00 : f32
    %6 = vector.broadcast %cst_5 : f32 to vector<8x384xf32>
    %7 = arith.maximumf %5, %6 : vector<8x384xf32>
    %c0_6 = arith.constant 0 : index
    %c0_7 = arith.constant 0 : index
    %8 = vector.load %arg4[%c0_6, %c0_7] : memref<384x128xf32, #tpu.memory_space<vmem>>, vector<384x128xf32>
    %cst_8 = arith.constant dense<0.000000e+00> : vector<8x128xf32>
    %9 = tpu.matmul %7, %8, %cst_8 {dimension_numbers = #tpu.dot_dimension_numbers<[1], [0], [0], [1], [0, 0, 1, 1], [], []>} : vector<8x384xf32>, vector<384x128xf32>, vector<8x128xf32> -> vector<8x128xf32>
    %c0_9 = arith.constant 0 : index
    %c0_10 = arith.constant 0 : index
    %10 = vector.load %arg5[%c0_9, %c0_10] : memref<1x128xf32, #tpu.memory_space<vmem>>, vector<1x128xf32>
    %11 = vector.broadcast %10 : vector<1x128xf32> to vector<8x128xf32>
    %12 = arith.addf %9, %11 : vector<8x128xf32>
    %cst_11 = arith.constant 0.000000e+00 : f32
    %13 = vector.broadcast %cst_11 : f32 to vector<8x128xf32>
    %14 = arith.maximumf %12, %13 : vector<8x128xf32>
    %c0_12 = arith.constant 0 : index
    %c0_13 = arith.constant 0 : index
    %15 = vector.load %arg6[%c0_12, %c0_13] : memref<128x128xf32, #tpu.memory_space<vmem>>, vector<128x128xf32>
    %cst_14 = arith.constant dense<0.000000e+00> : vector<8x128xf32>
    %16 = tpu.matmul %14, %15, %cst_14 {dimension_numbers = #tpu.dot_dimension_numbers<[1], [0], [0], [1], [0, 0, 1, 1], [], []>} : vector<8x128xf32>, vector<128x128xf32>, vector<8x128xf32> -> vector<8x128xf32>
    %c0_15 = arith.constant 0 : index
    %c0_16 = arith.constant 0 : index
    %17 = vector.load %arg7[%c0_15, %c0_16] : memref<1x128xf32, #tpu.memory_space<vmem>>, vector<1x128xf32>
    %18 = vector.broadcast %17 : vector<1x128xf32> to vector<8x128xf32>
    %19 = arith.addf %16, %18 : vector<8x128xf32>
    %c0_17 = arith.constant 0 : index
    %c0_18 = arith.constant 0 : index
    %20 = vector.load %arg8[%c0_17, %c0_18] : memref<8x128xf32, #tpu.memory_space<vmem>>, vector<8x128xf32>
    tpu.vector_store %arg8[%c0_17, %c0_18], %19 {strides = array<i32>} : memref<8x128xf32, #tpu.memory_space<vmem>>, vector<8x128xf32>,
    return
  }
  func.func @transform_0(%arg0: i32) -> (i32, i32) {
    %c0_i32 = arith.constant 0 : i32
    %c0_i32_0 = arith.constant 0 : i32
    return %arg0, %c0_i32 : i32, i32
  }
  func.func @transform_1(%arg0: i32) -> (i32, i32) {
    %c0_i32 = arith.constant 0 : i32
    %c0_i32_0 = arith.constant 0 : i32
    %c0_i32_1 = arith.constant 0 : i32
    return %c0_i32, %c0_i32_0 : i32, i32
  }
  func.func @transform_2(%arg0: i32) -> (i32, i32) {
    %c0_i32 = arith.constant 0 : i32
    %c0_i32_0 = arith.constant 0 : i32
    %c0_i32_1 = arith.constant 0 : i32
    return %c0_i32, %c0_i32_0 : i32, i32
  }
  func.func @transform_3(%arg0: i32) -> (i32, i32) {
    %c0_i32 = arith.constant 0 : i32
    %c0_i32_0 = arith.constant 0 : i32
    %c0_i32_1 = arith.constant 0 : i32
    return %c0_i32, %c0_i32_0 : i32, i32
  }
  func.func @transform_4(%arg0: i32) -> (i32, i32) {
    %c0_i32 = arith.constant 0 : i32
    %c0_i32_0 = arith.constant 0 : i32
    %c0_i32_1 = arith.constant 0 : i32
    return %c0_i32, %c0_i32_0 : i32, i32
  }
  func.func @transform_5(%arg0: i32) -> (i32, i32) {
    %c0_i32 = arith.constant 0 : i32
    %c0_i32_0 = arith.constant 0 : i32
    %c0_i32_1 = arith.constant 0 : i32
    return %c0_i32, %c0_i32_0 : i32, i32
  }
  func.func @transform_6(%arg0: i32) -> (i32, i32) {
    %c0_i32 = arith.constant 0 : i32
    %c0_i32_0 = arith.constant 0 : i32
    %c0_i32_1 = arith.constant 0 : i32
    return %c0_i32, %c0_i32_0 : i32, i32
  }
  func.func @transform_7(%arg0: i32) -> (i32, i32) {
    %c0_i32 = arith.constant 0 : i32
    %c0_i32_0 = arith.constant 0 : i32
    return %arg0, %c0_i32 : i32, i32
  }
}

module attributes {stable_mosaic.version = 11 : i64} {
  func.func @mlp_kernel(%arg0: i32, %arg1: memref<8x784xf32, #tpu.memory_space<vmem>>, %arg2: memref<784x384xf32, #tpu.memory_space<vmem>>, %arg3: memref<1x384xf32, #tpu.memory_space<vmem>>, %arg4: memref<384x128xf32, #tpu.memory_space<vmem>>, %arg5: memref<1x128xf32, #tpu.memory_space<vmem>>, %arg6: memref<128x128xf32, #tpu.memory_space<vmem>>, %arg7: memref<1x128xf32, #tpu.memory_space<vmem>>, %arg8: memref<8x128xf32, #tpu.memory_space<vmem>>) attributes {dimension_semantics = [#tpu.dimension_semantics<parallel>], iteration_bounds = array<i64: 1>, scalar_prefetch = 0 : i64, scratch_operands = 0 : i64, tpu.core_type = #tpu.core_type<tc>, window_params = [{transform_indices = @transform_0, window_bounds = array<i64: 8, 784>}, {pipeline_mode = #tpu.pipeline_mode<synchronous>, transform_indices = @transform_1, window_bounds = array<i64: 784, 384>}, {pipeline_mode = #tpu.pipeline_mode<synchronous>, transform_indices = @transform_2, window_bounds = array<i64: 1, 384>}, {pipeline_mode = #tpu.pipeline_mode<synchronous>, transform_indices = @transform_3, window_bounds = array<i64: 384, 128>}, {pipeline_mode = #tpu.pipeline_mode<synchronous>, transform_indices = @transform_4, window_bounds = array<i64: 1, 128>}, {pipeline_mode = #tpu.pipeline_mode<synchronous>, transform_indices = @transform_5, window_bounds = array<i64: 128, 128>}, {pipeline_mode = #tpu.pipeline_mode<synchronous>, transform_indices = @transform_6, window_bounds = array<i64: 1, 128>}, {transform_indices = @transform_7, window_bounds = array<i64: 8, 128>}]} {
    %c0 = arith.constant 0 : index
    %c0_0 = arith.constant 0 : index
    %0 = vector.load %arg1[%c0, %c0_0] : memref<8x784xf32, #tpu.memory_space<vmem>>, vector<8x784xf32>
    %c0_1 = arith.constant 0 : index
    %c0_2 = arith.constant 0 : index
    %1 = vector.load %arg2[%c0_1, %c0_2] : memref<784x384xf32, #tpu.memory_space<vmem>>, vector<784x384xf32>
    %cst = arith.constant dense<0.000000e+00> : vector<8x384xf32>
    %2 = tpu.matmul %0, %1, %cst {dimension_numbers = #tpu.dot_dimension_numbers<[1], [0], [0], [1], [0, 0, 1, 1], [], []>} : vector<8x784xf32>, vector<784x384xf32>, vector<8x384xf32> -> vector<8x384xf32>
    %c0_3 = arith.constant 0 : index
    %c0_4 = arith.constant 0 : index
    %3 = vector.load %arg3[%c0_3, %c0_4] : memref<1x384xf32, #tpu.memory_space<vmem>>, vector<1x384xf32>
    %4 = vector.broadcast %3 : vector<1x384xf32> to vector<8x384xf32>
    %5 = arith.addf %2, %4 : vector<8x384xf32>
    %cst_5 = arith.constant 0.000000e+00 : f32
    %6 = vector.broadcast %cst_5 : f32 to vector<8x384xf32>
    %7 = arith.maximumf %5, %6 : vector<8x384xf32>
    %c0_6 = arith.constant 0 : index
    %c0_7 = arith.constant 0 : index
    %8 = vector.load %arg4[%c0_6, %c0_7] : memref<384x128xf32, #tpu.memory_space<vmem>>, vector<384x128xf32>
    %cst_8 = arith.constant dense<0.000000e+00> : vector<8x128xf32>
    %9 = tpu.matmul %7, %8, %cst_8 {dimension_numbers = #tpu.dot_dimension_numbers<[1], [0], [0], [1], [0, 0, 1, 1], [], []>} : vector<8x384xf32>, vector<384x128xf32>, vector<8x128xf32> -> vector<8x128xf32>
    %c0_9 = arith.constant 0 : index
    %c0_10 = arith.constant 0 : index
    %10 = vector.load %arg5[%c0_9, %c0_10] : memref<1x128xf32, #tpu.memory_space<vmem>>, vector<1x128xf32>
    %11 = vector.broadcast %10 : vector<1x128xf32> to vector<8x128xf32>
    %12 = arith.addf %9, %11 : vector<8x128xf32>
    %cst_11 = arith.constant 0.000000e+00 : f32
    %13 = vector.broadcast %cst_11 : f32 to vector<8x128xf32>
    %14 = arith.maximumf %12, %13 : vector<8x128xf32>
    %c0_12 = arith.constant 0 : index
    %c0_13 = arith.constant 0 : index
    %15 = vector.load %arg6[%c0_12, %c0_13] : memref<128x128xf32, #tpu.memory_space<vmem>>, vector<128x128xf32>
    %cst_14 = arith.constant dense<0.000000e+00> : vector<8x128xf32>
    %16 = tpu.matmul %14, %15, %cst_14 {dimension_numbers = #tpu.dot_dimension_numbers<[1], [0], [0], [1], [0, 0, 1, 1], [], []>} : vector<8x128xf32>, vector<128x128xf32>, vector<8x128xf32> -> vector<8x128xf32>
    %c0_15 = arith.constant 0 : index
    %c0_16 = arith.constant 0 : index
    %17 = vector.load %arg7[%c0_15, %c0_16] : memref<1x128xf32, #tpu.memory_space<vmem>>, vector<1x128xf32>
    %18 = vector.broadcast %17 : vector<1x128xf32> to vector<8x128xf32>
    %19 = arith.addf %16, %18 : vector<8x128xf32>
    %c0_17 = arith.constant 0 : index
    %c0_18 = arith.constant 0 : index
    %20 = vector.load %arg8[%c0_17, %c0_18] : memref<8x128xf32, #tpu.memory_space<vmem>>, vector<8x128xf32>
    tpu.vector_store %arg8[%c0_17, %c0_18], %19 {strides = array<i32>} : memref<8x128xf32, #tpu.memory_space<vmem>>, vector<8x128xf32>,
    return
  }
  func.func @transform_0(%arg0: i32) -> (i32, i32) {
    %c0_i32 = arith.constant 0 : i32
    %c0_i32_0 = arith.constant 0 : i32
    return %arg0, %c0_i32 : i32, i32
  }
  func.func @transform_1(%arg0: i32) -> (i32, i32) {
    %c0_i32 = arith.constant 0 : i32
    %c0_i32_0 = arith.constant 0 : i32
    %c0_i32_1 = arith.constant 0 : i32
    return %c0_i32, %c0_i32_0 : i32, i32
  }
  func.func @transform_2(%arg0: i32) -> (i32, i32) {
    %c0_i32 = arith.constant 0 : i32
    %c0_i32_0 = arith.constant 0 : i32
    %c0_i32_1 = arith.constant 0 : i32
    return %c0_i32, %c0_i32_0 : i32, i32
  }
  func.func @transform_3(%arg0: i32) -> (i32, i32) {
    %c0_i32 = arith.constant 0 : i32
    %c0_i32_0 = arith.constant 0 : i32
    %c0_i32_1 = arith.constant 0 : i32
    return %c0_i32, %c0_i32_0 : i32, i32
  }
  func.func @transform_4(%arg0: i32) -> (i32, i32) {
    %c0_i32 = arith.constant 0 : i32
    %c0_i32_0 = arith.constant 0 : i32
    %c0_i32_1 = arith.constant 0 : i32
    return %c0_i32, %c0_i32_0 : i32, i32
  }
  func.func @transform_5(%arg0: i32) -> (i32, i32) {
    %c0_i32 = arith.constant 0 : i32
    %c0_i32_0 = arith.constant 0 : i32
    %c0_i32_1 = arith.constant 0 : i32
    return %c0_i32, %c0_i32_0 : i32, i32
  }
  func.func @transform_6(%arg0: i32) -> (i32, i32) {
    %c0_i32 = arith.constant 0 : i32
    %c0_i32_0 = arith.constant 0 : i32
    %c0_i32_1 = arith.constant 0 : i32
    return %c0_i32, %c0_i32_0 : i32, i32
  }
  func.func @transform_7(%arg0: i32) -> (i32, i32) {
    %c0_i32 = arith.constant 0 : i32
    %c0_i32_0 = arith.constant 0 : i32
    return %arg0, %c0_i32 : i32, i32
  }
}

</mosaic_0001>

<bundles_post_ra>
// kernel: mlp_forward.1
= control target key start
LH: loop header
LB: loop body
LE: loop exit
PB: predicated region body
PF: predicated region fallthrough
CT: control target
= control target key end

     0   :  { %12 = vsyncpa [#allocation3], 0  ;;  %s2346_s0 = inlined_call_operand.hbm [shape: f32[8,784], index: 0, kind: input, shape index: {}]   ;;  %s2347_s1 = inlined_call_operand.hbm [shape: f32[784,384], index: 1, kind: input, shape index: {}]   ;;  %s2348_s2 = inlined_call_operand.hbm [shape: f32[1,384], index: 2, kind: input, shape index: {}]   ;;  %s2349_s3 = inlined_call_operand.hbm [shape: f32[384,128], index: 3, kind: input, shape index: {}]   ;;  %s2350_s4 = inlined_call_operand.hbm [shape: f32[1,128], index: 4, kind: input, shape index: {}]   ;;  %s2351_s5 = inlined_call_operand.hbm [shape: f32[128,128], index: 5, kind: input, shape index: {}]   ;;  %s2352_s6 = inlined_call_operand.hbm [shape: f32[1,128], index: 6, kind: input, shape index: {}]   ;;  %s2353_s7 = inlined_call_operand.hbm [shape: f32[8,128], index: 7, kind: output, shape index: {}]  }
   0x1   :  { %13 = vsyncpa [#allocation6], 0 }
   0x2   :  { %14 = vsyncpa [#allocation9], 0 }
   0x3   :  { %15 = vsyncpa [#allocation12], 0 }
   0x4   :  { %16 = vsyncpa [#allocation4], 0  ;;  %s2153_s24 = smov [#allocation5]   ;;  %s1967_s28 = scalar_lea.hbm %s2347_s1, 37632 }
   0x5   :  { %s32_s25 = sshll.u32 %s2153_s24, 4  ;;  %p1968_p0 = scmp.ne.s32.totalorder %s2347_s1, %s1967_s28  ;;  %s33_s25 = int_to_ptr.vmem [resolvable:$true] %s32_s25 }
   0x6   :  { %p1971_p1 = scmp.lt.u32.totalorder %s1967_s28, %s2347_s1 }
   0x8   :  { %p1973_p2 = pnand %p1971_p1, %p1968_p0 }
   0xa   :  { %1976 = shalt.err (!%p1973_p2)
}
   0xb   :  { %s1977_s10 = scalar_lea.vmem %s33_s25, 37632  ;;  %p1982_p4 = scmp.lt.s32.totalorder %s33_s25, %s33_s25 }
   0xc   :  { %p1978_p3 = scmp.ne.s32.totalorder %s33_s25, %s1977_s10  ;;  %p1983_p5 = scmp.lt.s32.totalorder %s1977_s10, %s1977_s10 }
   0xe   :  { %p1984_p6 = por %p1983_p5, %p1982_p4 }
  0x10   :  { %p1985_p7 = pnand %p1984_p6, %p1978_p3 }
  0x12   :  { %1988 = shalt.err (!%p1985_p7)
}
  0x13   :  { %s2154_s11 = smov 384   ;;  %s2155_s12 = smov 24  }
  0x14   :  { %38 = dma.hbm_to_vmem [thread:$0]  %s2347_s1, 37632, %s33_s25, [#allocation6], %s2154_s11, %s2154_s11, %s2155_s12  }
  0x15   :  { %s2156_s15 = smov [#allocation8]   ;;  %s1989_s19 = scalar_lea.hbm %s2349_s3, 6144 }
  0x16   :  { %s54_s16 = sshll.u32 %s2156_s15, 4  ;;  %p1990_p8 = scmp.ne.s32.totalorder %s2349_s3, %s1989_s19  ;;  %s55_s16 = int_to_ptr.vmem [resolvable:$true] %s54_s16 }
  0x17   :  { %p1993_p9 = scmp.lt.u32.totalorder %s1989_s19, %s2349_s3 }
  0x19   :  { %p1995_p10 = pnand %p1993_p9, %p1990_p8 }
  0x1b   :  { %1998 = shalt.err (!%p1995_p10)
}
  0x1c   :  { %s1999_s24 = scalar_lea.vmem %s55_s16, 6144  ;;  %p2004_p12 = scmp.lt.s32.totalorder %s55_s16, %s55_s16 }
  0x1d   :  { %p2000_p11 = scmp.ne.s32.totalorder %s55_s16, %s1999_s24  ;;  %p2005_p13 = scmp.lt.s32.totalorder %s1999_s24, %s1999_s24 }
  0x1f   :  { %p2006_p0 = por %p2005_p13, %p2004_p12 }
  0x21   :  { %p2007_p1 = pnand %p2006_p0, %p2000_p11 }
  0x23   :  { %2010 = shalt.err (!%p2007_p1)
}
  0x24   :  { %s2157_s1 = smov 128   ;;  %s2158_s25 = smov 8  }
  0x25   :  { %60 = dma.hbm_to_vmem [thread:$0]  %s2349_s3, 6144, %s55_s16, [#allocation9], %s2157_s1, %s2157_s1, %s2158_s25  }
  0x26   :  { %s2159_s28 = smov [#allocation11]   ;;  %s2160_s30 = smov [#allocation2]  }
  0x27   :  { %s76_s29 = sshll.u32 %s2159_s28, 4  ;;  %s23_s8 = sshll.u32 %s2160_s30, 4  ;;  %s77_s29 = int_to_ptr.vmem [resolvable:$true] %s76_s29  ;;  %s24_s8 = int_to_ptr.vmem [resolvable:$true] %s23_s8 }
  0x28   :  { %s2011_s11 = scalar_lea.hbm %s2351_s5, 2048 }
  0x29   :  { %p2012_p2 = scmp.ne.s32.totalorder %s2351_s5, %s2011_s11  ;;  %p2015_p3 = scmp.lt.u32.totalorder %s2011_s11, %s2351_s5 }
  0x2b   :  { %p2017_p4 = pnand %p2015_p3, %p2012_p2 }
  0x2d   :  { %2020 = shalt.err (!%p2017_p4)
}
  0x2e   :  { %s2021_s3 = scalar_lea.vmem %s77_s29, 2048  ;;  %p2026_p6 = scmp.lt.s32.totalorder %s77_s29, %s77_s29 }
  0x2f   :  { %p2022_p5 = scmp.ne.s32.totalorder %s77_s29, %s2021_s3  ;;  %p2027_p7 = scmp.lt.s32.totalorder %s2021_s3, %s2021_s3 }
  0x31   :  { %p2028_p8 = por %p2027_p7, %p2026_p6 }
  0x33   :  { %p2029_p9 = pnand %p2028_p8, %p2022_p5 }
  0x35   :  { %2032 = shalt.err (!%p2029_p9)
}
  0x36   :  { %82 = dma.hbm_to_vmem [thread:$0]  %s2351_s5, 2048, %s77_s29, [#allocation12], %s2157_s1, %s2157_s1, %s2158_s25  }
  0x37   :  { %s2033_s20 = scalar_lea.hbm %s2346_s0, 896 }
  0x38   :  { %p2034_p10 = scmp.ne.s32.totalorder %s2346_s0, %s2033_s20  ;;  %p2037_p11 = scmp.lt.u32.totalorder %s2033_s20, %s2346_s0 }
  0x3a   :  { %p2039_p12 = pnand %p2037_p11, %p2034_p10 }
  0x3c   :  { %2042 = shalt.err (!%p2039_p12)
}
  0x3d   :  { %s2043_s26 = scalar_lea.vmem %s24_s8, 896  ;;  %p2048_p0 = scmp.lt.s32.totalorder %s24_s8, %s24_s8 }
  0x3e   :  { %p2044_p13 = scmp.ne.s32.totalorder %s24_s8, %s2043_s26  ;;  %p2049_p1 = scmp.lt.s32.totalorder %s2043_s26, %s2043_s26 }
  0x40   :  { %p2050_p2 = por %p2049_p1, %p2048_p0 }
  0x42   :  { %p2051_p3 = pnand %p2050_p2, %p2044_p13 }
  0x44   :  { %2054 = shalt.err (!%p2051_p3)
}
  0x45   :  { %26 = dma.hbm_to_vmem [thread:$0]  %s2346_s0, 896, %s24_s8, [#allocation3]  }
  0x46   :  { %s2161_s25 = smov [#allocation7]   ;;  %s2162_s28 = smov [#allocation10]  }
  0x47   :  { %s45_s27 = sshll.u32 %s2161_s25, 4  ;;  %s67_s29 = sshll.u32 %s2162_s28, 4  ;;  %s46_s27 = int_to_ptr.vmem [resolvable:$true] %s45_s27  ;;  %s68_s29 = int_to_ptr.vmem [resolvable:$true] %s67_s29 }
  0x48   :  { %s2055_s10 = scalar_lea.hbm %s2348_s2, 48 }
  0x49   :  { %p2056_p4 = scmp.ne.s32.totalorder %s2348_s2, %s2055_s10  ;;  %p2059_p5 = scmp.lt.u32.totalorder %s2055_s10, %s2348_s2 }
  0x4b   :  { %p2061_p6 = pnand %p2059_p5, %p2056_p4 }
  0x4d   :  { %2064 = shalt.err (!%p2061_p6)
}
  0x4e   :  { %s2065_s0 = scalar_lea.vmem %s46_s27, 48  ;;  %s2069_s8 = scalar_lea.vmem %s46_s27, 64 }
  0x4f   :  { %p2066_p7 = scmp.ne.s32.totalorder %s46_s27, %s2065_s0  ;;  %p2070_p8 = scmp.lt.s32.totalorder %s46_s27, %s46_s27 }
  0x50   :  { %p2071_p9 = scmp.lt.s32.totalorder %s2069_s8, %s2065_s0 }
  0x52   :  { %p2072_p10 = por %p2071_p9, %p2070_p8 }
  0x54   :  { %p2073_p11 = pnand %p2072_p10, %p2066_p7 }
  0x56   :  { %2076 = shalt.err (!%p2073_p11)
}
  0x57   :  { %48 = dma.hbm_to_vmem [thread:$0]  %s2348_s2, 48, %s46_s27, [#allocation6]  }
  0x58   :  { %s2077_s18 = scalar_lea.hbm %s2350_s4, 16 }
  0x59   :  { %p2078_p12 = scmp.ne.s32.totalorder %s2350_s4, %s2077_s18  ;;  %p2081_p13 = scmp.lt.u32.totalorder %s2077_s18, %s2350_s4 }
  0x5b   :  { %p2083_p0 = pnand %p2081_p13, %p2078_p12 }
  0x5d   :  { %2086 = shalt.err (!%p2083_p0)
}
  0x5e   :  { %s2087_s23 = scalar_lea.vmem %s68_s29, 16  ;;  %s2091_s24 = scalar_lea.vmem %s68_s29, 32 }
  0x5f   :  { %p2088_p1 = scmp.ne.s32.totalorder %s68_s29, %s2087_s23  ;;  %p2092_p2 = scmp.lt.s32.totalorder %s68_s29, %s68_s29 }
  0x60   :  { %p2093_p3 = scmp.lt.s32.totalorder %s2091_s24, %s2087_s23 }
  0x62   :  { %p2094_p4 = por %p2093_p3, %p2092_p2 }
  0x64   :  { %p2095_p5 = pnand %p2094_p4, %p2088_p1 }
  0x66   :  { %2098 = shalt.err (!%p2095_p5)
}
  0x67   :  { %70 = dma.hbm_to_vmem [thread:$0]  %s2350_s4, 16, %s68_s29, [#allocation9]  }
  0x68   :  { %s2163_s5 = smov [#allocation13]   ;;  %s2099_s28 = scalar_lea.hbm %s2352_s6, 16 }
  0x69   :  { %s89_s1 = sshll.u32 %s2163_s5, 4  ;;  %p2100_p6 = scmp.ne.s32.totalorder %s2352_s6, %s2099_s28  ;;  %s90_s1 = int_to_ptr.vmem [resolvable:$true] %s89_s1 }
  0x6a   :  { %p2103_p7 = scmp.lt.u32.totalorder %s2099_s28, %s2352_s6 }
  0x6c   :  { %p2105_p8 = pnand %p2103_p7, %p2100_p6 }
  0x6e   :  { %2108 = shalt.err (!%p2105_p8)
}
  0x6f   :  { %s2109_s12 = scalar_lea.vmem %s90_s1, 16  ;;  %s2113_s4 = scalar_lea.vmem %s90_s1, 32 }
  0x70   :  { %p2110_p9 = scmp.ne.s32.totalorder %s90_s1, %s2109_s12  ;;  %p2114_p10 = scmp.lt.s32.totalorder %s90_s1, %s90_s1 }
  0x71   :  { %p2115_p11 = scmp.lt.s32.totalorder %s2113_s4, %s2109_s12 }
  0x73   :  { %p2116_p12 = por %p2115_p11, %p2114_p10 }
  0x75   :  { %p2117_p13 = pnand %p2116_p12, %p2110_p9 }
  0x77   :  { %2120 = shalt.err (!%p2117_p13)
}
  0x78   :  { %92 = dma.hbm_to_vmem [thread:$0]  %s2352_s6, 16, %s90_s1, [#allocation12]  }
  0x79   :  { %2143 = dma.done.wait [#allocation3], 896  }
  0x7a   :  { %2144 = vsyncadd [#allocation3], 4294966400 }
  0x7b   :  { %2145 = dma.done.wait [#allocation6], 37680  }
  0x7c   :  { %2146 = vsyncadd [#allocation6], 4294929616 }
  0x7d   :  { %2147 = dma.done.wait [#allocation9], 6160  }
  0x7e   :  { %2148 = vsyncadd [#allocation9], 4294961136 }
  0x7f   :  { %2149 = dma.done.wait [#allocation12], 2064  }
  0x80   :  { %2150 = vsyncadd [#allocation12], 4294965232  ;;  %v122_v0 = vld [vmem:[#allocation5 + $0x8] sm:$0xff]  ;;  %v125_v1 = vld [vmem:[#allocation5 + $0x20] sm:$0xff]  ;;  %vm2165_vm0 = vmmov 0   ;;  %vm432_vm1 = vcmask 130048  }
  0x81   :  { %v121_v2 = vld [vmem:[#allocation5] sm:$0xff]  ;;  %v1569_v3 = vpack.c.bf16 %v125_v1, %v122_v0  ;;  %v124_v4 = vld [vmem:[#allocation5 + $0x18] sm:$0xff]  ;;  %v131_v6 = vld [vmem:[#allocation5 + $0x50] sm:$0xff]  ;;  %s2167_s6 = smov [#allocation14]  }
  0x82   :  { %v128_v5 = vld [vmem:[#allocation5 + $0x38] sm:$0xff]  ;;  %v1571_v7 = vpack.c.bf16 %v124_v4, %v121_v2  ;;  %v127_v9 = vld [vmem:[#allocation5 + $0x30] sm:$0xff]  ;;  %v130_v10 = vld [vmem:[#allocation5 + $0x48] sm:$0xff]  ;;  %s1299_s14 = sshll.u32 %s2167_s6, 4  ;;  %s1300_s14 = int_to_ptr.vmem [resolvable:$true] %s1299_s14 }
  0x83   :  { %v1573_v8 = vpack.c.bf16 %v131_v6, %v128_v5  ;;  %v134_v11 = vld [vmem:[#allocation5 + $0x68] sm:$0xff]  ;;  %1570 = vmatprep.subr.bf16.mxu0 %v1569_v3  ;;  %v137_v12 = vld [vmem:[#allocation5 + $0x80] sm:$0xff]  ;;  %v1575_v13 = vpack.c.bf16 %v130_v10, %v127_v9  ;;  %v136_v16 = vld [vmem:[#allocation5 + $0x78] sm:$0xff]  ;;  %s2121_s0 = scalar_lea.vmem %s1300_s14, 128  ;;  %p2126_p1 = scmp.lt.s32.totalorder %s1300_s14, %s1300_s14 }
  0x84   :  { %1572 = vmatpush1.bf16.msra.mxu0 %v1571_v7  ;;  %v1577_v14 = vpack.c.bf16 %v137_v12, %v134_v11  ;;  %v133_v15 = vld [vmem:[#allocation5 + $0x60] sm:$0xff]  ;;  %v140_v17 = vld [vmem:[#allocation5 + $0x98] sm:$0xff]  ;;  %v143_v18 = vld [vmem:[#allocation5 + $0xb0] sm:$0xff]  ;;  %p2122_p0 = scmp.ne.s32.totalorder %s1300_s14, %s2121_s0  ;;  %p2127_p2 = scmp.lt.s32.totalorder %s2121_s0, %s2121_s0 }
  0x85   :  { %1574 = vmatprep.subr.bf16.mxu0 %v1573_v8  ;;  %v1579_v19 = vpack.c.bf16 %v136_v16, %v133_v15  ;;  %v1581_v20 = vpack.c.bf16 %v143_v18, %v140_v17  ;;  %v139_v21 = vld [vmem:[#allocation5 + $0x90] sm:$0xff]  ;;  %v142_v22 = vld [vmem:[#allocation5 + $0xa8] sm:$0xff]  ;;  %v149_v24 = vld [vmem:[#allocation5 + $0xe0] sm:$0xff] }
  0x86   :  { %v146_v23 = vld [vmem:[#allocation5 + $0xc8] sm:$0xff]  ;;  %v1583_v25 = vpack.c.bf16 %v142_v22, %v139_v21  ;;  %v145_v27 = vld [vmem:[#allocation5 + $0xc0] sm:$0xff]  ;;  %v148_v28 = vld [vmem:[#allocation5 + $0xd8] sm:$0xff]  ;;  %p2128_p3 = por %p2127_p2, %p2126_p1 }
  0x87   :  { %v1585_v26 = vpack.c.bf16 %v149_v24, %v146_v23  ;;  %v152_v29 = vld [vmem:[#allocation5 + $0xf8] sm:$0xff]  ;;  %v155_v30 = vld [vmem:[#allocation5 + $0x110] sm:$0xff]  ;;  %v1587_v31 = vpack.c.bf16 %v148_v28, %v145_v27  ;;  %v154_v34 = vld [vmem:[#allocation5 + $0x108] sm:$0xff] }
  0x88   :  { %1576 = vmatpush1.bf16.msra.mxu0 %v1575_v13  ;;  %v1589_v32 = vpack.c.bf16 %v155_v30, %v152_v29  ;;  %v151_v33 = vld [vmem:[#allocation5 + $0xf0] sm:$0xff]  ;;  %v158_v35 = vld [vmem:[#allocation5 + $0x128] sm:$0xff]  ;;  %v161_v36 = vld [vmem:[#allocation5 + $0x140] sm:$0xff]  ;;  %p2129_p4 = pnand %p2128_p3, %p2122_p0 }
  0x89   :  { %1578 = vmatprep.subr.bf16.mxu0 %v1577_v14  ;;  %v1591_v37 = vpack.c.bf16 %v154_v34, %v151_v33  ;;  %v1593_v38 = vpack.c.bf16 %v161_v36, %v158_v35  ;;  %v157_v39 = vld [vmem:[#allocation5 + $0x120] sm:$0xff]  ;;  %v160_v40 = vld [vmem:[#allocation5 + $0x138] sm:$0xff]  ;;  %v115_v41 = vld [vmem:[#allocation2 + $0x8] sm:$0xff] }
  0x8a   :  { %v164_v42 = vld [vmem:[#allocation5 + $0x158] sm:$0xff]  ;;  %v167_v43 = vld [vmem:[#allocation5 + $0x170] sm:$0xff]  ;;  %500 = vmatprep.mubr.f32.mxu0 %v115_v41  ;;  %784 = vmatprep.mubr.f32.mxu1 %v115_v41  ;;  %v1595_v44 = vpack.c.bf16 %v160_v40, %v157_v39  ;;  %v166_v47 = vld [vmem:[#allocation5 + $0x168] sm:$0xff] }
  0x8b   :  { %v163_v45 = vld [vmem:[#allocation5 + $0x150] sm:$0xff]  ;;  %v1597_v46 = vpack.c.bf16 %v167_v43, %v164_v42  ;;  %v170_v48 = vld [vmem:[#allocation5 + $0x188] sm:$0xff]  ;;  %v173_v49 = vld [vmem:[#allocation5 + $0x1a0] sm:$0xff] }
  0x8c   :  { %1580 = vmatpush1.bf16.msra.mxu0 %v1579_v19  ;;  %v171_v50 = vld [vmem:[#allocation5 + $0x190] sm:$0xff]  ;;  %v174_v51 = vld [vmem:[#allocation5 + $0x1a8] sm:$0xff]  ;;  %v1599_v55 = vpack.c.bf16 %v166_v47, %v163_v45  ;;  %v169_v56 = vld [vmem:[#allocation5 + $0x180] sm:$0xff]  ;;  %v1601_v60 = vpack.c.bf16 %v173_v49, %v170_v48 }
  0x8d   :  { %1582 = vmatprep.subr.bf16.mxu0 %v1581_v20  ;;  %v123_v52 = vld [vmem:[#allocation5 + $0x10] sm:$0xff]  ;;  %v1765_v53 = vpack.c.bf16 %v174_v51, %v171_v50  ;;  %v126_v54 = vld [vmem:[#allocation5 + $0x28] sm:$0xff]  ;;  %v172_v57 = vld [vmem:[#allocation5 + $0x198] sm:$0xff] }
  0x8e   :  { %v1767_v58 = vpack.c.bf16 %v126_v54, %v123_v52  ;;  %v177_v59 = vld [vmem:[#allocation5 + $0x1c0] sm:$0xff]  ;;  %v180_v61 = vld [vmem:[#allocation5 + $0x1d8] sm:$0xff]  ;;  %v179_v1 = vld [vmem:[#allocation5 + $0x1d0] sm:$0xff]  ;;  %v1603_v6 = vpack.c.bf16 %v172_v57, %v169_v56 }
  0x8f   :  { %1766 = vmatprep.subr.bf16.mxu1 %v1765_v53  ;;  %v129_v62 = vld [vmem:[#allocation5 + $0x40] sm:$0xff]  ;;  %v132_v63 = vld [vmem:[#allocation5 + $0x58] sm:$0xff]  ;;  %v1769_v2 = vpack.c.bf16 %v180_v61, %v177_v59  ;;  %v183_v4 = vld [vmem:[#allocation5 + $0x1f0] sm:$0xff] }
  0x90   :  { %1584 = vmatpush1.bf16.msra.mxu0 %v1583_v25  ;;  %v176_v0 = vld [vmem:[#allocation5 + $0x1b8] sm:$0xff]  ;;  %1768 = vmatpush3.bf16.msra.mxu1 %v1767_v58  ;;  %v1771_v3 = vpack.c.bf16 %v132_v63, %v129_v62  ;;  %v186_v5 = vld [vmem:[#allocation5 + $0x208] sm:$0xff]  ;;  %v135_v8 = vld [vmem:[#allocation5 + $0x70] sm:$0xff] }
  0x91   :  { %1586 = vmatprep.subr.bf16.mxu0 %v1585_v26  ;;  %1770 = vmatprep.subr.bf16.mxu1 %v1769_v2  ;;  %v1773_v7 = vpack.c.bf16 %v186_v5, %v183_v4  ;;  %v138_v9 = vld [vmem:[#allocation5 + $0x88] sm:$0xff]  ;;  %v1605_v10 = vpack.c.bf16 %v179_v1, %v176_v0  ;;  %v175_v11 = vld [vmem:[#allocation5 + $0x1b0] sm:$0xff]  ;;  %v185_v14 = vld [vmem:[#allocation5 + $0x200] sm:$0xff] }
  0x92   :  { %v178_v12 = vld [vmem:[#allocation5 + $0x1c8] sm:$0xff]  ;;  %v1775_v15 = vpack.c.bf16 %v138_v9, %v135_v8  ;;  %v189_v16 = vld [vmem:[#allocation5 + $0x220] sm:$0xff]  ;;  %v192_v17 = vld [vmem:[#allocation5 + $0x238] sm:$0xff] }
  0x93   :  { %v182_v13 = vld [vmem:[#allocation5 + $0x1e8] sm:$0xff]  ;;  %v1777_v18 = vpack.c.bf16 %v192_v17, %v189_v16  ;;  %v141_v19 = vld [vmem:[#allocation5 + $0xa0] sm:$0xff]  ;;  %v144_v20 = vld [vmem:[#allocation5 + $0xb8] sm:$0xff]  ;;  %v1607_v21 = vpack.c.bf16 %v178_v12, %v175_v11 }
  0x94   :  { %1588 = vmatpush1.bf16.msra.mxu0 %v1587_v31  ;;  %1772 = vmatpush3.bf16.msra.mxu1 %v1771_v3  ;;  %v195_v22 = vld [vmem:[#allocation5 + $0x250] sm:$0xff]  ;;  %v1609_v23 = vpack.c.bf16 %v185_v14, %v182_v13  ;;  %v181_v24 = vld [vmem:[#allocation5 + $0x1e0] sm:$0xff]  ;;  %v184_v25 = vld [vmem:[#allocation5 + $0x1f8] sm:$0xff]  ;;  %v1779_v29 = vpack.c.bf16 %v144_v20, %v141_v19 }
  0x95   :  { %1590 = vmatprep.subr.bf16.mxu0 %v1589_v32  ;;  %1774 = vmatprep.subr.bf16.mxu1 %v1773_v7  ;;  %v198_v26 = vld [vmem:[#allocation5 + $0x268] sm:$0xff]  ;;  %v188_v27 = vld [vmem:[#allocation5 + $0x218] sm:$0xff]  ;;  %v191_v28 = vld [vmem:[#allocation5 + $0x230] sm:$0xff]  ;;  %v1611_v33 = vpack.c.bf16 %v184_v25, %v181_v24 }
  0x96   :  { %v1781_v30 = vpack.c.bf16 %v198_v26, %v195_v22  ;;  %v147_v31 = vld [vmem:[#allocation5 + $0xd0] sm:$0xff]  ;;  %v150_v32 = vld [vmem:[#allocation5 + $0xe8] sm:$0xff]  ;;  %v201_v34 = vld [vmem:[#allocation5 + $0x280] sm:$0xff]  ;;  %v1613_v36 = vpack.c.bf16 %v191_v28, %v188_v27 }
  0x97   :  { %v204_v35 = vld [vmem:[#allocation5 + $0x298] sm:$0xff]  ;;  %v194_v39 = vld [vmem:[#allocation5 + $0x248] sm:$0xff]  ;;  %v197_v40 = vld [vmem:[#allocation5 + $0x260] sm:$0xff]  ;;  %v1783_v41 = vpack.c.bf16 %v150_v32, %v147_v31 }
  0x98   :  { %1592 = vmatpush1.bf16.msra.mxu0 %v1591_v37  ;;  %1776 = vmatpush3.bf16.msra.mxu1 %v1775_v15  ;;  %v187_v37 = vld [vmem:[#allocation5 + $0x210] sm:$0xff]  ;;  %v1785_v42 = vpack.c.bf16 %v204_v35, %v201_v34  ;;  %v153_v43 = vld [vmem:[#allocation5 + $0x100] sm:$0xff]  ;;  %v210_v47 = vld [vmem:[#allocation5 + $0x2c8] sm:$0xff]  ;;  %v1617_v48 = vpack.c.bf16 %v197_v40, %v194_v39 }
  0x99   :  { %1594 = vmatprep.subr.bf16.mxu0 %v1593_v38  ;;  %1778 = vmatprep.subr.bf16.mxu1 %v1777_v18  ;;  %v190_v38 = vld [vmem:[#allocation5 + $0x228] sm:$0xff]  ;;  %v193_v49 = vld [vmem:[#allocation5 + $0x240] sm:$0xff]  ;;  %v196_v50 = vld [vmem:[#allocation5 + $0x258] sm:$0xff] }
  0x9a   :  { %v1615_v45 = vpack.c.bf16 %v190_v38, %v187_v37  ;;  %v200_v51 = vld [vmem:[#allocation5 + $0x278] sm:$0xff]  ;;  %v203_v52 = vld [vmem:[#allocation5 + $0x290] sm:$0xff]  ;;  %v162_v56 = vld [vmem:[#allocation5 + $0x148] sm:$0xff]  ;;  %v1619_v57 = vpack.c.bf16 %v196_v50, %v193_v49 }
  0x9b   :  { %v213_v58 = vld [vmem:[#allocation5 + $0x2e0] sm:$0xff]  ;;  %v216_v59 = vld [vmem:[#allocation5 + $0x2f8] sm:$0xff]  ;;  %v199_v61 = vld [vmem:[#allocation5 + $0x270] sm:$0xff] }
  0x9c   :  { %1596 = vmatpush1.bf16.msra.mxu0 %v1595_v44  ;;  %1780 = vmatpush3.bf16.msra.mxu1 %v1779_v29  ;;  %v156_v44 = vld [vmem:[#allocation5 + $0x118] sm:$0xff]  ;;  %v202_v62 = vld [vmem:[#allocation5 + $0x288] sm:$0xff]  ;;  %v209_v0 = vld [vmem:[#allocation5 + $0x2c0] sm:$0xff]  ;;  %v1793_v2 = vpack.c.bf16 %v216_v59, %v213_v58 }
  0x9d   :  { %1598 = vmatprep.subr.bf16.mxu0 %v1597_v46  ;;  %1782 = vmatprep.subr.bf16.mxu1 %v1781_v30  ;;  %v207_v46 = vld [vmem:[#allocation5 + $0x2b0] sm:$0xff]  ;;  %v1787_v53 = vpack.c.bf16 %v156_v44, %v153_v43  ;;  %v206_v63 = vld [vmem:[#allocation5 + $0x2a8] sm:$0xff]  ;;  %v165_v3 = vld [vmem:[#allocation5 + $0x160] sm:$0xff]  ;;  %v1623_v5 = vpack.c.bf16 %v202_v62, %v199_v61 }
  0x9e   :  { %v1789_v54 = vpack.c.bf16 %v210_v47, %v207_v46  ;;  %v168_v4 = vld [vmem:[#allocation5 + $0x178] sm:$0xff]  ;;  %v270_v7 = vld [vmem:[#allocation5 + $0x4a8] sm:$0xff]  ;;  %v1625_v8 = vpack.c.bf16 %v209_v0, %v206_v63  ;;  %v205_v9 = vld [vmem:[#allocation5 + $0x2a0] sm:$0xff] }
  0x9f   :  { %v212_v11 = vld [vmem:[#allocation5 + $0x2d8] sm:$0xff]  ;;  %v215_v12 = vld [vmem:[#allocation5 + $0x2f0] sm:$0xff]  ;;  %v1795_v13 = vpack.c.bf16 %v168_v4, %v165_v3  ;;  %v222_v16 = vld [vmem:[#allocation5 + $0x328] sm:$0xff] }
  0xa0   :  { %1600 = vmatpush1.bf16.msra.mxu0 %v1599_v55  ;;  %1784 = vmatpush3.bf16.msra.mxu1 %v1783_v41  ;;  %v159_v55 = vld [vmem:[#allocation5 + $0x130] sm:$0xff]  ;;  %v273_v18 = vld [vmem:[#allocation5 + $0x4c0] sm:$0xff]  ;;  %v276_v19 = vld [vmem:[#allocation5 + $0x4d8] sm:$0xff]  ;;  %v1629_v20 = vpack.c.bf16 %v215_v12, %v212_v11 }
  0xa1   :  { %1602 = vmatprep.subr.bf16.mxu0 %v1601_v60  ;;  %1786 = vmatprep.subr.bf16.mxu1 %v1785_v42  ;;  %v1621_v60 = vpack.c.bf16 %v203_v52, %v200_v51  ;;  %v1791_v1 = vpack.c.bf16 %v162_v56, %v159_v55  ;;  %v219_v15 = vld [vmem:[#allocation5 + $0x310] sm:$0xff]  ;;  %v214_v22 = vld [vmem:[#allocation5 + $0x2e8] sm:$0xff]  ;;  %v221_v24 = vld [vmem:[#allocation5 + $0x320] sm:$0xff]  ;;  %v1801_v26 = vpack.c.bf16 %v276_v19, %v273_v18 }
  0xa2   :  { %v1799_v25 = vpack.c.bf16 %v222_v16, %v219_v15  ;;  %v225_v27 = vld [vmem:[#allocation5 + $0x340] sm:$0xff]  ;;  %v228_v28 = vld [vmem:[#allocation5 + $0x358] sm:$0xff]  ;;  %v114_v30 = vld [vmem:[#allocation2] sm:$0xff] }
  0xa3   :  { %v279_v31 = vld [vmem:[#allocation5 + $0x4f0] sm:$0xff]  ;;  %v282_v32 = vld [vmem:[#allocation5 + $0x508] sm:$0xff]  ;;  %v217_v34 = vld [vmem:[#allocation5 + $0x300] sm:$0xff]  ;;  %v1803_v38 = vpack.c.bf16 %v228_v28, %v225_v27 }
  0xa4   :  { %1604 = vmatpush1.bf16.msra.mxu0 %v1603_v6  ;;  %1788 = vmatpush3.bf16.msra.mxu1 %v1787_v53  ;;  %v267_v6 = vld [vmem:[#allocation5 + $0x490] sm:$0xff]  ;;  %v220_v35 = vld [vmem:[#allocation5 + $0x318] sm:$0xff]  ;;  %v117_v39 = vld [vmem:[#allocation2 + $0x18] sm:$0xff]  ;;  %v1805_v40 = vpack.c.bf16 %v282_v32, %v279_v31 }
  0xa5   :  { %1606 = vmatprep.subr.bf16.mxu0 %v1605_v10  ;;  %1790 = vmatprep.subr.bf16.mxu1 %v1789_v54  ;;  %v208_v10 = vld [vmem:[#allocation5 + $0x2b8] sm:$0xff]  ;;  %v1797_v14 = vpack.c.bf16 %v270_v7, %v267_v6  ;;  %v227_v37 = vld [vmem:[#allocation5 + $0x350] sm:$0xff]  ;;  %v234_v42 = vld [vmem:[#allocation5 + $0x388] sm:$0xff]  ;;  %v1635_v43 = vpack.c.bf16 %v220_v35, %v217_v34 }
  0xa6   :  { %v1627_v17 = vpack.c.bf16 %v208_v10, %v205_v9  ;;  %v231_v41 = vld [vmem:[#allocation5 + $0x370] sm:$0xff]  ;;  %v285_v44 = vld [vmem:[#allocation5 + $0x520] sm:$0xff]  ;;  %v230_v49 = vld [vmem:[#allocation5 + $0x368] sm:$0xff] }
  0xa7   :  { %v223_v47 = vld [vmem:[#allocation5 + $0x330] sm:$0xff]  ;;  %v233_v50 = vld [vmem:[#allocation5 + $0x380] sm:$0xff]  ;;  %v1807_v51 = vpack.c.bf16 %v234_v42, %v231_v41  ;;  %v240_v54 = vld [vmem:[#allocation5 + $0x3b8] sm:$0xff] }
  0xa8   :  { %1608 = vmatpush1.bf16.msra.mxu0 %v1607_v21  ;;  %1792 = vmatpush3.bf16.msra.mxu1 %v1791_v1  ;;  %v211_v21 = vld [vmem:[#allocation5 + $0x2d0] sm:$0xff]  ;;  %v237_v53 = vld [vmem:[#allocation5 + $0x3a0] sm:$0xff]  ;;  %v1641_v58 = vpack.c.bf16 %v233_v50, %v230_v49  ;;  %v236_v61 = vld [vmem:[#allocation5 + $0x398] sm:$0xff] }
  0xa9   :  { %1610 = vmatprep.subr.bf16.mxu0 %v1609_v23  ;;  %1794 = vmatprep.subr.bf16.mxu1 %v1793_v2  ;;  %v218_v23 = vld [vmem:[#allocation5 + $0x308] sm:$0xff]  ;;  %v1631_v29 = vpack.c.bf16 %v214_v22, %v211_v21  ;;  %v291_v56 = vld [vmem:[#allocation5 + $0x550] sm:$0xff]  ;;  %v229_v59 = vld [vmem:[#allocation5 + $0x360] sm:$0xff]  ;;  %v1811_v63 = vpack.c.bf16 %v240_v54, %v237_v53 }
  0xaa   :  { %v239_v62 = vld [vmem:[#allocation5 + $0x3b0] sm:$0xff]  ;;  %v246_v2 = vld [vmem:[#allocation5 + $0x3e8] sm:$0xff]  ;;  %v297_v4 = vld [vmem:[#allocation5 + $0x580] sm:$0xff] }
  0xab   :  { %v243_v1 = vld [vmem:[#allocation5 + $0x3d0] sm:$0xff]  ;;  %v1645_v6 = vpack.c.bf16 %v239_v62, %v236_v61  ;;  %v242_v9 = vld [vmem:[#allocation5 + $0x3c8] sm:$0xff]  ;;  %v245_v10 = vld [vmem:[#allocation5 + $0x3e0] sm:$0xff] }
  0xac   :  { %1612 = vmatpush1.bf16.msra.mxu0 %v1611_v33  ;;  %1796 = vmatpush3.bf16.msra.mxu1 %v1795_v13  ;;  %v1633_v33 = vpack.c.bf16 %v221_v24, %v218_v23  ;;  %v235_v7 = vld [vmem:[#allocation5 + $0x390] sm:$0xff]  ;;  %v1815_v11 = vpack.c.bf16 %v246_v2, %v243_v1  ;;  %v249_v13 = vld [vmem:[#allocation5 + $0x400] sm:$0xff]  ;;  %v1649_v18 = vpack.c.bf16 %v245_v10, %v242_v9  ;;  %v248_v21 = vld [vmem:[#allocation5 + $0x3f8] sm:$0xff] }
  0xad   :  { %1614 = vmatprep.subr.bf16.mxu0 %v1613_v36  ;;  %1798 = vmatprep.subr.bf16.mxu1 %v1797_v14  ;;  %v224_v36 = vld [vmem:[#allocation5 + $0x338] sm:$0xff]  ;;  %v303_v16 = vld [vmem:[#allocation5 + $0x5b0] sm:$0xff]  ;;  %v241_v19 = vld [vmem:[#allocation5 + $0x3c0] sm:$0xff] }
  0xae   :  { %v1637_v46 = vpack.c.bf16 %v227_v37, %v224_v36  ;;  %v252_v14 = vld [vmem:[#allocation5 + $0x418] sm:$0xff]  ;;  %v251_v22 = vld [vmem:[#allocation5 + $0x410] sm:$0xff]  ;;  %v309_v28 = vld [vmem:[#allocation5 + $0x5e0] sm:$0xff] }
  0xaf   :  { %785 = vmatmul.mubr.f32.vlgmr.msra.gmra.mrb[0].mxu1 %v114_v30  ;;  %v1819_v23 = vpack.c.bf16 %v252_v14, %v249_v13  ;;  %v247_v31 = vld [vmem:[#allocation5 + $0x3f0] sm:$0xff]  ;;  %v250_v32 = vld [vmem:[#allocation5 + $0x408] sm:$0xff]  ;;  %v257_v34 = vld [vmem:[#allocation5 + $0x440] sm:$0xff] }
  0xb0   :  { %1616 = vmatpush1.bf16.msra.mxu0 %v1615_v45  ;;  %1800 = vmatpush3.bf16.msra.mxu1 %v1799_v25  ;;  %v288_v45 = vld [vmem:[#allocation5 + $0x538] sm:$0xff]  ;;  %v255_v25 = vld [vmem:[#allocation5 + $0x430] sm:$0xff]  ;;  %v261_v37 = vld [vmem:[#allocation5 + $0x460] sm:$0xff] }
  0xb1   :  { %1618 = vmatprep.subr.bf16.mxu0 %v1617_v48  ;;  %1802 = vmatprep.subr.bf16.mxu1 %v1801_v26  ;;  %v226_v48 = vld [vmem:[#allocation5 + $0x348] sm:$0xff]  ;;  %v1809_v52 = vpack.c.bf16 %v288_v45, %v285_v44  ;;  %v256_v44 = vld [vmem:[#allocation5 + $0x438] sm:$0xff]  ;;  %v315_v49 = vld [vmem:[#allocation5 + $0x610] sm:$0xff] }
  0xb2   :  { %854 = vmatprep.mubr.f32.mxu1 %v117_v39  ;;  %v1639_v55 = vpack.c.bf16 %v226_v48, %v223_v47  ;;  %v258_v26 = vld [vmem:[#allocation5 + $0x448] sm:$0xff]  ;;  %v260_v45 = vld [vmem:[#allocation5 + $0x458] sm:$0xff]  ;;  %v321_v61 = vld [vmem:[#allocation5 + $0x640] sm:$0xff] }
  0xb3   :  { %v1823_v35 = vpack.c.bf16 %v258_v26, %v255_v25  ;;  %v366_v41 = vld [vmem:[#allocation5 + $0x7a8] sm:$0xff]  ;;  %v372_v53 = vld [vmem:[#allocation5 + $0x7d8] sm:$0xff]  ;;  %v375_v2 = vld [vmem:[#allocation5 + $0x7f0] sm:$0xff] }
  0xb4   :  { %1620 = vmatpush1.bf16.msra.mxu0 %v1619_v57  ;;  %1804 = vmatpush3.bf16.msra.mxu1 %v1803_v38  ;;  %v294_v57 = vld [vmem:[#allocation5 + $0x568] sm:$0xff]  ;;  %v264_v38 = vld [vmem:[#allocation5 + $0x478] sm:$0xff]  ;;  %v381_v14 = vld [vmem:[#allocation5 + $0x820] sm:$0xff] }
  0xb5   :  { %1622 = vmatprep.subr.bf16.mxu0 %v1621_v60  ;;  %1806 = vmatprep.subr.bf16.mxu1 %v1805_v40  ;;  %v232_v60 = vld [vmem:[#allocation5 + $0x378] sm:$0xff]  ;;  %v1813_v0 = vpack.c.bf16 %v294_v57, %v291_v56  ;;  %v363_v40 = vld [vmem:[#allocation5 + $0x790] sm:$0xff]  ;;  %v1827_v47 = vpack.c.bf16 %v264_v38, %v261_v37  ;;  %v318_v50 = vld [vmem:[#allocation5 + $0x628] sm:$0xff] }
  0xb6   :  { %v1643_v3 = vpack.c.bf16 %v232_v60, %v229_v59  ;;  %v1829_v48 = vpack.c.bf16 %v366_v41, %v363_v40  ;;  %v262_v56 = vld [vmem:[#allocation5 + $0x468] sm:$0xff]  ;;  %v1831_v59 = vpack.c.bf16 %v318_v50, %v315_v49  ;;  %v324_v62 = vld [vmem:[#allocation5 + $0x658] sm:$0xff]  ;;  %v387_v26 = vld [vmem:[#allocation5 + $0x850] sm:$0xff] }
  0xb7   :  { %v266_v57 = vld [vmem:[#allocation5 + $0x488] sm:$0xff]  ;;  %v2294_v1 = vld [vmem:[#allocation2 + $0x10] sm:$0xff]  ;;  %v1835_v9 = vpack.c.bf16 %v324_v62, %v321_v61  ;;  %v393_v38 = vld [vmem:[#allocation5 + $0x880] sm:$0xff] }
  0xb8   :  { %1624 = vmatpush1.bf16.msra.mxu0 %v1623_v5  ;;  %1808 = vmatpush3.bf16.msra.mxu1 %v1807_v51  ;;  %v300_v5 = vld [vmem:[#allocation5 + $0x598] sm:$0xff]  ;;  %v283_v41 = vld [vmem:[#allocation5 + $0x510] sm:$0xff]  ;;  %v405_v62 = vld [vmem:[#allocation5 + $0x8e0] sm:$0xff] }
  0xb9   :  { %1626 = vmatprep.subr.bf16.mxu0 %v1625_v8  ;;  %1810 = vmatprep.subr.bf16.mxu1 %v1809_v52  ;;  %v238_v8 = vld [vmem:[#allocation5 + $0x3a8] sm:$0xff]  ;;  %v1817_v12 = vpack.c.bf16 %v300_v5, %v297_v4  ;;  %v369_v52 = vld [vmem:[#allocation5 + $0x7c0] sm:$0xff]  ;;  %v399_v50 = vld [vmem:[#allocation5 + $0x8b0] sm:$0xff] }
  0xba   :  { %v1647_v15 = vpack.c.bf16 %v238_v8, %v235_v7  ;;  %v1833_v60 = vpack.c.bf16 %v372_v53, %v369_v52  ;;  %v265_v5 = vld [vmem:[#allocation5 + $0x480] sm:$0xff]  ;;  %v272_v7 = vld [vmem:[#allocation5 + $0x4b8] sm:$0xff]  ;;  %v275_v8 = vld [vmem:[#allocation5 + $0x4d0] sm:$0xff] }
  0xbb   :  { %v289_v53 = vld [vmem:[#allocation5 + $0x540] sm:$0xff] }
  0xbc   :  { %1628 = vmatpush1.bf16.msra.mxu0 %v1627_v17  ;;  %1812 = vmatpush3.bf16.msra.mxu1 %v1811_v63  ;;  %v306_v17 = vld [vmem:[#allocation5 + $0x5c8] sm:$0xff]  ;;  %v2292_v63 = vld [vmem:[#allocation2 + $0x28] sm:$0xff] }
  0xbd   :  { %1630 = vmatprep.subr.bf16.mxu0 %v1629_v20  ;;  %1814 = vmatprep.subr.bf16.mxu1 %v1813_v0  ;;  %v244_v20 = vld [vmem:[#allocation5 + $0x3d8] sm:$0xff]  ;;  %v1821_v24 = vpack.c.bf16 %v306_v17, %v303_v16  ;;  %v1669_v16 = vpack.c.bf16 %v275_v8, %v272_v7  ;;  %v271_v17 = vld [vmem:[#allocation5 + $0x4b0] sm:$0xff] }
  0xbe   :  { %v1651_v27 = vpack.c.bf16 %v244_v20, %v241_v19  ;;  %v278_v19 = vld [vmem:[#allocation5 + $0x4e8] sm:$0xff]  ;;  %v281_v20 = vld [vmem:[#allocation5 + $0x500] sm:$0xff] }
  0xc0   :  { %1632 = vmatpush1.bf16.msra.mxu0 %v1631_v29  ;;  %1816 = vmatpush3.bf16.msra.mxu1 %v1815_v11  ;;  %v312_v29 = vld [vmem:[#allocation5 + $0x5f8] sm:$0xff]  ;;  %v327_v11 = vld [vmem:[#allocation5 + $0x670] sm:$0xff] }
  0xc1   :  { %1634 = vmatprep.subr.bf16.mxu0 %v1633_v33  ;;  %1818 = vmatprep.subr.bf16.mxu1 %v1817_v12  ;;  %v254_v33 = vld [vmem:[#allocation5 + $0x428] sm:$0xff]  ;;  %v1825_v36 = vpack.c.bf16 %v312_v29, %v309_v28  ;;  %v1673_v28 = vpack.c.bf16 %v281_v20, %v278_v19  ;;  %v277_v29 = vld [vmem:[#allocation5 + $0x4e0] sm:$0xff] }
  0xc2   :  { %v1657_v42 = vpack.c.bf16 %v257_v34, %v254_v33  ;;  %v330_v12 = vld [vmem:[#allocation5 + $0x688] sm:$0xff] }
  0xc3   :  { %501 = vmatmul.mubr.f32.vlgmr.msra.gmra.mrb[0].mxu0 %v114_v30  ;;  %v1653_v30 = vpack.c.bf16 %v251_v22, %v248_v21  ;;  %v1839_v21 = vpack.c.bf16 %v330_v12, %v327_v11  ;;  %v414_v19 = vld [vmem:[#allocation5 + $0x928] sm:$0xff] }
  0xc4   :  { %1636 = vmatpush1.bf16.msra.mxu0 %v1635_v43  ;;  %571 = vmatprep.mubr.f32.mxu0 %v117_v39  ;;  %v1655_v39 = vpack.c.bf16 %v250_v32, %v247_v31  ;;  %v253_v43 = vld [vmem:[#allocation5 + $0x420] sm:$0xff]  ;;  %v284_v31 = vld [vmem:[#allocation5 + $0x518] sm:$0xff]  ;;  %v287_v32 = vld [vmem:[#allocation5 + $0x530] sm:$0xff] }
  0xc5   :  { %1638 = vmatprep.subr.bf16.mxu0 %v1637_v46  ;;  %1820 = vmatpush3.bf16.msra.mxu1 %v1819_v23  ;;  %v263_v46 = vld [vmem:[#allocation5 + $0x470] sm:$0xff]  ;;  %v1659_v51 = vpack.c.bf16 %v256_v44, %v253_v43  ;;  %v333_v23 = vld [vmem:[#allocation5 + $0x6a0] sm:$0xff]  ;;  %v1677_v40 = vpack.c.bf16 %v287_v32, %v284_v31  ;;  %v290_v43 = vld [vmem:[#allocation5 + $0x548] sm:$0xff] }
  0xc6   :  { %1822 = vmatprep.subr.bf16.mxu1 %v1821_v24  ;;  %v1661_v54 = vpack.c.bf16 %v263_v46, %v260_v45  ;;  %v336_v24 = vld [vmem:[#allocation5 + $0x6b8] sm:$0xff]  ;;  %v293_v44 = vld [vmem:[#allocation5 + $0x560] sm:$0xff] }
  0xc7   :  { %v1843_v33 = vpack.c.bf16 %v336_v24, %v333_v23  ;;  %v1681_v52 = vpack.c.bf16 %v293_v44, %v290_v43  ;;  %v310_v23 = vld [vmem:[#allocation5 + $0x5e8] sm:$0xff]  ;;  %v313_v31 = vld [vmem:[#allocation5 + $0x600] sm:$0xff]  ;;  %v316_v32 = vld [vmem:[#allocation5 + $0x618] sm:$0xff] }
  0xc8   :  { %1640 = vmatpush1.bf16.msra.mxu0 %v1639_v55  ;;  %v259_v55 = vld [vmem:[#allocation5 + $0x450] sm:$0xff]  ;;  %v314_v24 = vld [vmem:[#allocation5 + $0x608] sm:$0xff] }
  0xc9   :  { %1642 = vmatprep.subr.bf16.mxu0 %v1641_v58  ;;  %1824 = vmatpush3.bf16.msra.mxu1 %v1823_v35  ;;  %v269_v58 = vld [vmem:[#allocation5 + $0x4a0] sm:$0xff]  ;;  %v1663_v0 = vpack.c.bf16 %v262_v56, %v259_v55  ;;  %v339_v35 = vld [vmem:[#allocation5 + $0x6d0] sm:$0xff]  ;;  %v296_v55 = vld [vmem:[#allocation5 + $0x578] sm:$0xff] }
  0xca   :  { %1826 = vmatprep.subr.bf16.mxu1 %v1825_v36  ;;  %v1665_v4 = vpack.c.bf16 %v269_v58, %v266_v57  ;;  %v342_v36 = vld [vmem:[#allocation5 + $0x6e8] sm:$0xff]  ;;  %v299_v56 = vld [vmem:[#allocation5 + $0x590] sm:$0xff] }
  0xcb   :  { %v1847_v45 = vpack.c.bf16 %v342_v36, %v339_v35  ;;  %v2166_v35 = vmov 0.0   ;;  %v2304_v36 = vld [vmem:[#allocation2 + $0x30] sm:$0xff] }
  0xcc   :  { %1644 = vmatpush1.bf16.msra.mxu0 %v1643_v3  ;;  %v378_v3 = vld [vmem:[#allocation5 + $0x808] sm:$0xff] }
  0xcd   :  { %1646 = vmatprep.subr.bf16.mxu0 %v1645_v6  ;;  %1828 = vmatpush3.bf16.msra.mxu1 %v1827_v47  ;;  %v268_v6 = vld [vmem:[#allocation5 + $0x498] sm:$0xff]  ;;  %v1837_v10 = vpack.c.bf16 %v378_v3, %v375_v2  ;;  %v345_v47 = vld [vmem:[#allocation5 + $0x700] sm:$0xff]  ;;  %v1685_v2 = vpack.c.bf16 %v299_v56, %v296_v55  ;;  %v295_v3 = vld [vmem:[#allocation5 + $0x570] sm:$0xff] }
  0xce   :  { %1830 = vmatprep.subr.bf16.mxu1 %v1829_v48  ;;  %v1667_v13 = vpack.c.bf16 %v268_v6, %v265_v5  ;;  %v348_v48 = vld [vmem:[#allocation5 + $0x718] sm:$0xff]  ;;  %v302_v5 = vld [vmem:[#allocation5 + $0x5a8] sm:$0xff]  ;;  %v305_v6 = vld [vmem:[#allocation5 + $0x5c0] sm:$0xff] }
  0xcf   :  { %v1851_v57 = vpack.c.bf16 %v348_v48, %v345_v47  ;;  %v1689_v12 = vpack.c.bf16 %v305_v6, %v302_v5  ;;  %v332_v47 = vld [vmem:[#allocation5 + $0x698] sm:$0xff]  ;;  %v335_v48 = vld [vmem:[#allocation5 + $0x6b0] sm:$0xff]  ;;  %v337_v56 = vld [vmem:[#allocation5 + $0x6c0] sm:$0xff] }
  0xd0   :  { %1648 = vmatpush1.bf16.msra.mxu0 %v1647_v15  ;;  %855 = vmatmul.mubr.f32.vlgmr.msra.gmra.mrb[2].mxu1 %v2294_v1  ;;  %v384_v15 = vld [vmem:[#allocation5 + $0x838] sm:$0xff]  ;;  %v349_v5 = vld [vmem:[#allocation5 + $0x720] sm:$0xff] }
  0xd1   :  { %1650 = vmatprep.subr.bf16.mxu0 %v1649_v18  ;;  %1832 = vmatpush3.bf16.msra.mxu1 %v1831_v59  ;;  %v274_v18 = vld [vmem:[#allocation5 + $0x4c8] sm:$0xff]  ;;  %v1841_v22 = vpack.c.bf16 %v384_v15, %v381_v14  ;;  %v351_v59 = vld [vmem:[#allocation5 + $0x730] sm:$0xff]  ;;  %v304_v14 = vld [vmem:[#allocation5 + $0x5b8] sm:$0xff] }
  0xd2   :  { %924 = vmatprep.mubr.f32.mxu1 %v2292_v63  ;;  %1834 = vmatprep.subr.bf16.mxu1 %v1833_v60  ;;  %v1671_v25 = vpack.c.bf16 %v274_v18, %v271_v17  ;;  %v354_v60 = vld [vmem:[#allocation5 + $0x748] sm:$0xff]  ;;  %v308_v15 = vld [vmem:[#allocation5 + $0x5d8] sm:$0xff]  ;;  %v411_v18 = vld [vmem:[#allocation5 + $0x910] sm:$0xff] }
  0xd3   :  { %v1855_v7 = vpack.c.bf16 %v354_v60, %v351_v59  ;;  %v352_v6 = vld [vmem:[#allocation5 + $0x738] sm:$0xff] }
  0xd4   :  { %1652 = vmatpush1.bf16.msra.mxu0 %v1651_v27  ;;  %v390_v27 = vld [vmem:[#allocation5 + $0x868] sm:$0xff] }
  0xd5   :  { %1654 = vmatprep.subr.bf16.mxu0 %v1653_v30  ;;  %1836 = vmatpush3.bf16.msra.mxu1 %v1835_v9  ;;  %v280_v30 = vld [vmem:[#allocation5 + $0x4f8] sm:$0xff]  ;;  %v1845_v34 = vpack.c.bf16 %v390_v27, %v387_v26  ;;  %v357_v9 = vld [vmem:[#allocation5 + $0x760] sm:$0xff]  ;;  %v2298_v26 = vld [vmem:[#allocation2 + $0x20] sm:$0xff]  ;;  %v1862_v27 = vpack.c.bf16 %v414_v19, %v411_v18 }
  0xd6   :  { %1838 = vmatprep.subr.bf16.mxu1 %v1837_v10  ;;  %v1675_v37 = vpack.c.bf16 %v280_v30, %v277_v29  ;;  %v360_v10 = vld [vmem:[#allocation5 + $0x778] sm:$0xff] }
  0xd7   :  { %v1859_v17 = vpack.c.bf16 %v360_v10, %v357_v9  ;;  %v1723_v9 = vpack.c.bf16 %v352_v6, %v349_v5  ;;  %v364_v18 = vld [vmem:[#allocation5 + $0x798] sm:$0xff]  ;;  %v409_v5 = vld [vmem:[#allocation5 + $0x900] sm:$0xff] }
  0xd8   :  { %1656 = vmatpush1.bf16.msra.mxu0 %v1655_v39  ;;  %v396_v39 = vld [vmem:[#allocation5 + $0x898] sm:$0xff] }
  0xd9   :  { %1658 = vmatprep.subr.bf16.mxu0 %v1657_v42  ;;  %1840 = vmatpush3.bf16.msra.mxu1 %v1839_v21  ;;  %v286_v42 = vld [vmem:[#allocation5 + $0x528] sm:$0xff]  ;;  %v1849_v46 = vpack.c.bf16 %v396_v39, %v393_v38  ;;  %v319_v39 = vld [vmem:[#allocation5 + $0x630] sm:$0xff]  ;;  %v368_v19 = vld [vmem:[#allocation5 + $0x7b8] sm:$0xff] }
  0xda   :  { %1842 = vmatprep.subr.bf16.mxu1 %v1841_v22  ;;  %v1679_v49 = vpack.c.bf16 %v286_v42, %v283_v41  ;;  %v307_v22 = vld [vmem:[#allocation5 + $0x5d0] sm:$0xff]  ;;  %v326_v41 = vld [vmem:[#allocation5 + $0x668] sm:$0xff]  ;;  %v329_v42 = vld [vmem:[#allocation5 + $0x680] sm:$0xff] }
  0xdb   :  { %v1695_v29 = vpack.c.bf16 %v310_v23, %v307_v22  ;;  %v1705_v44 = vpack.c.bf16 %v329_v42, %v326_v41  ;;  %v367_v23 = vld [vmem:[#allocation5 + $0x7b0] sm:$0xff]  ;;  %v386_v41 = vld [vmem:[#allocation5 + $0x848] sm:$0xff]  ;;  %v389_v42 = vld [vmem:[#allocation5 + $0x860] sm:$0xff] }
  0xdc   :  { %1660 = vmatpush1.bf16.msra.mxu0 %v1659_v51  ;;  %v402_v51 = vld [vmem:[#allocation5 + $0x8c8] sm:$0xff]  ;;  %v412_v6 = vld [vmem:[#allocation5 + $0x918] sm:$0xff] }
  0xdd   :  { %1662 = vmatprep.subr.bf16.mxu0 %v1661_v54  ;;  %1844 = vmatpush3.bf16.msra.mxu1 %v1843_v33  ;;  %v292_v54 = vld [vmem:[#allocation5 + $0x558] sm:$0xff]  ;;  %v1853_v58 = vpack.c.bf16 %v402_v51, %v399_v50  ;;  %v1709_v50 = vpack.c.bf16 %v335_v48, %v332_v47  ;;  %v331_v51 = vld [vmem:[#allocation5 + $0x690] sm:$0xff] }
  0xde   :  { %1846 = vmatprep.subr.bf16.mxu1 %v1845_v34  ;;  %v1683_v61 = vpack.c.bf16 %v292_v54, %v289_v53  ;;  %v320_v33 = vld [vmem:[#allocation5 + $0x638] sm:$0xff]  ;;  %v323_v34 = vld [vmem:[#allocation5 + $0x650] sm:$0xff]  ;;  %v338_v53 = vld [vmem:[#allocation5 + $0x6c8] sm:$0xff] }
  0xdf   :  { %v1701_v38 = vpack.c.bf16 %v323_v34, %v320_v33  ;;  %v341_v54 = vld [vmem:[#allocation5 + $0x6e0] sm:$0xff]  ;;  %v380_v33 = vld [vmem:[#allocation5 + $0x818] sm:$0xff]  ;;  %v383_v34 = vld [vmem:[#allocation5 + $0x830] sm:$0xff] }
  0xe0   :  { %1664 = vmatpush1.bf16.msra.mxu0 %v1663_v0  ;;  %v408_v0 = vld [vmem:[#allocation5 + $0x8f8] sm:$0xff]  ;;  %v1713_v55 = vpack.c.bf16 %v341_v54, %v338_v53  ;;  %v395_v48 = vld [vmem:[#allocation5 + $0x890] sm:$0xff]  ;;  %v398_v53 = vld [vmem:[#allocation5 + $0x8a8] sm:$0xff] }
  0xe1   :  { %1666 = vmatprep.subr.bf16.mxu0 %v1665_v4  ;;  %1848 = vmatpush3.bf16.msra.mxu1 %v1847_v45  ;;  %v298_v4 = vld [vmem:[#allocation5 + $0x588] sm:$0xff]  ;;  %v1857_v8 = vpack.c.bf16 %v408_v0, %v405_v62  ;;  %v325_v45 = vld [vmem:[#allocation5 + $0x660] sm:$0xff]  ;;  %v392_v47 = vld [vmem:[#allocation5 + $0x878] sm:$0xff] }
  0xe2   :  { %1850 = vmatprep.subr.bf16.mxu1 %v1849_v46  ;;  %v1687_v11 = vpack.c.bf16 %v298_v4, %v295_v3  ;;  %v328_v46 = vld [vmem:[#allocation5 + $0x678] sm:$0xff]  ;;  %v346_v62 = vld [vmem:[#allocation5 + $0x708] sm:$0xff]  ;;  %v401_v54 = vld [vmem:[#allocation5 + $0x8c0] sm:$0xff] }
  0xe3   :  { %v350_v0 = vld [vmem:[#allocation5 + $0x728] sm:$0xff] }
  0xe4   :  { %1668 = vmatpush1.bf16.msra.mxu0 %v1667_v13  ;;  %v301_v13 = vld [vmem:[#allocation5 + $0x5a0] sm:$0xff] }
  0xe5   :  { %1670 = vmatprep.subr.bf16.mxu0 %v1669_v16  ;;  %1852 = vmatpush3.bf16.msra.mxu1 %v1851_v57  ;;  %v311_v16 = vld [vmem:[#allocation5 + $0x5f0] sm:$0xff]  ;;  %v1691_v20 = vpack.c.bf16 %v304_v14, %v301_v13  ;;  %v344_v57 = vld [vmem:[#allocation5 + $0x6f8] sm:$0xff]  ;;  %v362_v13 = vld [vmem:[#allocation5 + $0x788] sm:$0xff] }
  0xe6   :  { %1854 = vmatprep.subr.bf16.mxu1 %v1853_v58  ;;  %v1693_v21 = vpack.c.bf16 %v311_v16, %v308_v15  ;;  %v347_v58 = vld [vmem:[#allocation5 + $0x710] sm:$0xff]  ;;  %v365_v14 = vld [vmem:[#allocation5 + $0x7a0] sm:$0xff] }
  0xe7   :  { %v1717_v60 = vpack.c.bf16 %v347_v58, %v344_v57  ;;  %v1729_v16 = vpack.c.bf16 %v365_v14, %v362_v13  ;;  %v404_v57 = vld [vmem:[#allocation5 + $0x8d8] sm:$0xff]  ;;  %v407_v58 = vld [vmem:[#allocation5 + $0x8f0] sm:$0xff]  ;;  %v1021_v13 = vld [vmem:[#allocation8 + $0x90] sm:$0xff] }
  0xe8   :  { %1672 = vmatpush1.bf16.msra.mxu0 %v1671_v25  ;;  %v317_v25 = vld [vmem:[#allocation5 + $0x620] sm:$0xff]  ;;  %v1022_v14 = vld [vmem:[#allocation8 + $0x98] sm:$0xff] }
  0xe9   :  { %1674 = vmatprep.subr.bf16.mxu0 %v1673_v28  ;;  %1856 = vmatpush3.bf16.msra.mxu1 %v1855_v7  ;;  %v2164_v28 = vmov 0.0|0.0   ;;  %v1697_v30 = vpack.c.bf16 %v317_v25, %v314_v24  ;;  %v356_v7 = vld [vmem:[#allocation5 + $0x758] sm:$0xff]  ;;  %v370_v24 = vld [vmem:[#allocation5 + $0x7c8] sm:$0xff] }
  0xea   :  { %1858 = vmatprep.subr.bf16.mxu1 %v1857_v8  ;;  %v359_v8 = vld [vmem:[#allocation5 + $0x770] sm:$0xff]  ;;  %v374_v25 = vld [vmem:[#allocation5 + $0x7e8] sm:$0xff] }
  0xeb   :  { %v1725_v10 = vpack.c.bf16 %v359_v8, %v356_v7  ;;  %v1763_v7 = vpack.c.bf16 %v412_v6, %v409_v5  ;;  %v1019_v8 = vld [vmem:[#allocation8 + $0x80] sm:$0xff] }
  0xec   :  { %1676 = vmatpush1.bf16.msra.mxu0 %v1675_v37  ;;  %v1699_v37 = vpack.c.bf16 %v316_v32, %v313_v31  ;;  %v373_v31 = vld [vmem:[#allocation5 + $0x7e0] sm:$0xff]  ;;  %v376_v32 = vld [vmem:[#allocation5 + $0x7f8] sm:$0xff] }
  0xed   :  { %1678 = vmatprep.subr.bf16.mxu0 %v1677_v40  ;;  %1860 = vmatpush3.bf16.msra.mxu1 %v1859_v17  ;;  %v322_v40 = vld [vmem:[#allocation5 + $0x648] sm:$0xff]  ;;  %v361_v17 = vld [vmem:[#allocation5 + $0x780] sm:$0xff] }
  0xee   :  { %1861 = vmatprep.subr.bf16.mxu1 %v2164_v28  ;;  %v1703_v43 = vpack.c.bf16 %v322_v40, %v319_v39  ;;  %v379_v39 = vld [vmem:[#allocation5 + $0x810] sm:$0xff]  ;;  %v382_v40 = vld [vmem:[#allocation5 + $0x828] sm:$0xff] }
  0xf0   :  { %1680 = vmatpush1.bf16.msra.mxu0 %v1679_v49  ;;  %925 = vmatmul.mubr.f32.vlgmr.msra.gmra.mrb[4].mxu1 %v2298_v26  ;;  %v1707_v49 = vpack.c.bf16 %v328_v46, %v325_v45  ;;  %v385_v45 = vld [vmem:[#allocation5 + $0x840] sm:$0xff]  ;;  %v388_v46 = vld [vmem:[#allocation5 + $0x858] sm:$0xff] }
  0xf1   :  { %1682 = vmatprep.subr.bf16.mxu0 %v1681_v52  ;;  %1863 = vmatpush3.bf16.msra.mxu1 %v1862_v27  ;;  %v334_v52 = vld [vmem:[#allocation5 + $0x6a8] sm:$0xff]  ;;  %v377_v27 = vld [vmem:[#allocation5 + $0x800] sm:$0xff] }
  0xf2   :  { %1496 = vmatprep.mubr.msk.f32.mxu1 %vm2165_vm0, %v2166_v35 }
  0xf4   :  { %1684 = vmatpush1.bf16.msra.mxu0 %v1683_v61  ;;  %1497 = vmatmul.mubr.msk.f32.vlgmr.msra.gmra.mrb[6].mxu1 %vm432_vm1, %v2304_v36  ;;  %v343_v61 = vld [vmem:[#allocation5 + $0x6f0] sm:$0xff] }
  0xf5   :  { %1686 = vmatprep.subr.bf16.mxu0 %v1685_v2  ;;  %v353_v2 = vld [vmem:[#allocation5 + $0x740] sm:$0xff]  ;;  %v1719_v3 = vpack.c.bf16 %v346_v62, %v343_v61  ;;  %v403_v61 = vld [vmem:[#allocation5 + $0x8d0] sm:$0xff]  ;;  %v406_v62 = vld [vmem:[#allocation5 + $0x8e8] sm:$0xff] }
  0xf6   :  { %v1721_v4 = vpack.c.bf16 %v353_v2, %v350_v0  ;;  %v410_v0 = vld [vmem:[#allocation5 + $0x908] sm:$0xff]  ;;  %v413_v2 = vld [vmem:[#allocation5 + $0x920] sm:$0xff] }
  0xf8   :  { %1688 = vmatpush1.bf16.msra.mxu0 %v1687_v11  ;;  %v355_v11 = vld [vmem:[#allocation5 + $0x750] sm:$0xff] }
  0xf9   :  { %1690 = vmatprep.subr.bf16.mxu0 %v1689_v12  ;;  %v358_v12 = vld [vmem:[#allocation5 + $0x768] sm:$0xff] }
  0xfa   :  { %v1727_v15 = vpack.c.bf16 %v358_v12, %v355_v11  ;;  %v1004_v12 = vld [vmem:[#allocation8 + $0x8] sm:$0xff] }
  0xfc   :  { %1692 = vmatpush1.bf16.msra.mxu0 %v1691_v20  ;;  %v371_v20 = vld [vmem:[#allocation5 + $0x7d0] sm:$0xff] }
  0xfd   :  { %1694 = vmatprep.subr.bf16.mxu0 %v1693_v21  ;;  %v1731_v21 = vpack.c.bf16 %v364_v18, %v361_v17  ;;  %v1733_v22 = vpack.c.bf16 %v371_v20, %v368_v19  ;;  %v1005_v17 = vld [vmem:[#allocation8 + $0x10] sm:$0xff]  ;;  %v1006_v18 = vld [vmem:[#allocation8 + $0x18] sm:$0xff]  ;;  %v1023_v19 = vld [vmem:[#allocation8 + $0xa0] sm:$0xff] }
  0xfe   :  { %v1870_v20 = vpack.c.bf16 %v1006_v18, %v1005_v17 }
 0x100   :  { %1696 = vmatpush1.bf16.msra.mxu0 %v1695_v29  ;;  %v1735_v29 = vpack.c.bf16 %v370_v24, %v367_v23  ;;  %v1025_v23 = vld [vmem:[#allocation8 + $0xb0] sm:$0xff]  ;;  %v1026_v24 = vld [vmem:[#allocation8 + $0xb8] sm:$0xff] }
 0x101   :  { %1698 = vmatprep.subr.bf16.mxu0 %v1697_v30  ;;  %v1737_v30 = vpack.c.bf16 %v377_v27, %v374_v25  ;;  %v1876_v27 = vpack.c.bf16 %v1026_v24, %v1025_v23 }
 0x103   :  { %572 = vmatmul.mubr.f32.vlgmr.msra.gmra.mrb[0].mxu0 %v2294_v1  ;;  %v1711_v1 = vpack.c.bf16 %v334_v52, %v331_v51  ;;  %v391_v51 = vld [vmem:[#allocation5 + $0x870] sm:$0xff]  ;;  %v394_v52 = vld [vmem:[#allocation5 + $0x888] sm:$0xff] }
 0x104   :  { %1700 = vmatpush1.bf16.msra.mxu0 %v1699_v37  ;;  %642 = vmatprep.mubr.f32.mxu0 %v2292_v63  ;;  %v340_v63 = vld [vmem:[#allocation5 + $0x6d8] sm:$0xff]  ;;  %v1739_v37 = vpack.c.bf16 %v376_v32, %v373_v31 }
 0x105   :  { %1702 = vmatprep.subr.bf16.mxu0 %v1701_v38  ;;  %v1715_v59 = vpack.c.bf16 %v340_v63, %v337_v56  ;;  %v1741_v38 = vpack.c.bf16 %v383_v34, %v380_v33  ;;  %v397_v56 = vld [vmem:[#allocation5 + $0x8a0] sm:$0xff]  ;;  %v400_v63 = vld [vmem:[#allocation5 + $0x8b8] sm:$0xff] }
 0x106   :  { %v1027_v31 = vld [vmem:[#allocation8 + $0xc0] sm:$0xff]  ;;  %v1028_v32 = vld [vmem:[#allocation8 + $0xc8] sm:$0xff] }
 0x107   :  { %v1880_v34 = vpack.c.bf16 %v1028_v32, %v1027_v31  ;;  %v1040_v31 = vld [vmem:[#allocation8 + $0x128] sm:$0xff] }
 0x108   :  { %1704 = vmatpush1.bf16.msra.mxu0 %v1703_v43  ;;  %v1743_v43 = vpack.c.bf16 %v382_v40, %v379_v39  ;;  %v1029_v39 = vld [vmem:[#allocation8 + $0xd0] sm:$0xff]  ;;  %v1030_v40 = vld [vmem:[#allocation8 + $0xd8] sm:$0xff] }
 0x109   :  { %1706 = vmatprep.subr.bf16.mxu0 %v1705_v44  ;;  %v1745_v44 = vpack.c.bf16 %v389_v42, %v386_v41  ;;  %v1884_v42 = vpack.c.bf16 %v1030_v40, %v1029_v39  ;;  %v1044_v39 = vld [vmem:[#allocation8 + $0x148] sm:$0xff] }
 0x10c   :  { %1708 = vmatpush1.bf16.msra.mxu0 %v1707_v49  ;;  %v1747_v49 = vpack.c.bf16 %v388_v46, %v385_v45  ;;  %v1031_v45 = vld [vmem:[#allocation8 + $0xe0] sm:$0xff]  ;;  %v1032_v46 = vld [vmem:[#allocation8 + $0xe8] sm:$0xff] }
 0x10d   :  { %1710 = vmatprep.subr.bf16.mxu0 %v1709_v50  ;;  %v1749_v50 = vpack.c.bf16 %v395_v48, %v392_v47  ;;  %v1888_v48 = vpack.c.bf16 %v1032_v46, %v1031_v45  ;;  %v1048_v45 = vld [vmem:[#allocation8 + $0x168] sm:$0xff] }
 0x110   :  { %1712 = vmatpush1.bf16.msra.mxu0 %v1711_v1  ;;  %v1751_v1 = vpack.c.bf16 %v394_v52, %v391_v51 }
 0x111   :  { %1714 = vmatprep.subr.bf16.mxu0 %v1713_v55  ;;  %v1753_v55 = vpack.c.bf16 %v401_v54, %v398_v53 }
 0x114   :  { %1716 = vmatpush1.bf16.msra.mxu0 %v1715_v59  ;;  %v1755_v59 = vpack.c.bf16 %v400_v63, %v397_v56  ;;  %v1017_v63 = vld [vmem:[#allocation8 + $0x70] sm:$0xff] }
 0x115   :  { %1718 = vmatprep.subr.bf16.mxu0 %v1717_v60  ;;  %v1757_v60 = vpack.c.bf16 %v407_v58, %v404_v57  ;;  %v1018_v57 = vld [vmem:[#allocation8 + $0x78] sm:$0xff] }
 0x116   :  { %v1894_v58 = vpack.c.bf16 %v1018_v57, %v1017_v63  ;;  %v1204_v63 = vld [vmem:[#allocation11 + $0x28] sm:$0xff] }
 0x118   :  { %1720 = vmatpush1.bf16.msra.mxu0 %v1719_v3  ;;  %v1759_v3 = vpack.c.bf16 %v406_v62, %v403_v61  ;;  %v415_v62 = vld [vmem:[#allocation7] sm:$0x7] }
 0x119   :  { %1722 = vmatprep.subr.bf16.mxu0 %v1721_v4  ;;  %v1761_v4 = vpack.c.bf16 %v413_v2, %v410_v0 }
 0x11c   :  { %1724 = vmatpush1.bf16.msra.mxu0 %v1723_v9  ;;  %v1020_v9 = vld [vmem:[#allocation8 + $0x88] sm:$0xff] }
 0x11d   :  { %1726 = vmatprep.subr.bf16.mxu0 %v1725_v10  ;;  %v1003_v10 = vld [vmem:[#allocation8] sm:$0xff]  ;;  %v1864_v11 = vpack.c.bf16 %v1020_v9, %v1019_v8 }
 0x11f   :  { %1865 = vmatprep.subr.bf16.mxu1 %v1864_v11 }
 0x120   :  { %1728 = vmatpush1.bf16.msra.mxu0 %v1727_v15  ;;  %v1866_v15 = vpack.c.bf16 %v1004_v12, %v1003_v10 }
 0x121   :  { %1730 = vmatprep.subr.bf16.mxu0 %v1729_v16  ;;  %v1868_v16 = vpack.c.bf16 %v1022_v14, %v1021_v13 }
 0x122   :  { %1867 = vmatpush3.bf16.msra.mxu1 %v1866_v15 }
 0x123   :  { %1869 = vmatprep.subr.bf16.mxu1 %v1868_v16 }
 0x124   :  { %1732 = vmatpush1.bf16.msra.mxu0 %v1731_v21 }
 0x125   :  { %1734 = vmatprep.subr.bf16.mxu0 %v1733_v22  ;;  %v1007_v22 = vld [vmem:[#allocation8 + $0x20] sm:$0xff] }
 0x126   :  { %1871 = vmatpush3.bf16.msra.mxu1 %v1870_v20  ;;  %v1035_v20 = vld [vmem:[#allocation8 + $0x100] sm:$0xff] }
 0x128   :  { %1736 = vmatpush1.bf16.msra.mxu0 %v1735_v29  ;;  %v1009_v29 = vld [vmem:[#allocation8 + $0x30] sm:$0xff] }
 0x129   :  { %1738 = vmatprep.subr.bf16.mxu0 %v1737_v30  ;;  %v1010_v30 = vld [vmem:[#allocation8 + $0x38] sm:$0xff] }
 0x12a   :  { %v1878_v33 = vpack.c.bf16 %v1010_v30, %v1009_v29  ;;  %v1039_v30 = vld [vmem:[#allocation8 + $0x120] sm:$0xff] }
 0x12b   :  { %v1903_v32 = vpack.c.bf16 %v1040_v31, %v1039_v30 }
 0x12c   :  { %1740 = vmatpush1.bf16.msra.mxu0 %v1739_v37  ;;  %v1011_v37 = vld [vmem:[#allocation8 + $0x40] sm:$0xff] }
 0x12d   :  { %1742 = vmatprep.subr.bf16.mxu0 %v1741_v38  ;;  %v1012_v38 = vld [vmem:[#allocation8 + $0x48] sm:$0xff] }
 0x12e   :  { %v1882_v41 = vpack.c.bf16 %v1012_v38, %v1011_v37  ;;  %v1043_v38 = vld [vmem:[#allocation8 + $0x140] sm:$0xff] }
 0x12f   :  { %v1909_v40 = vpack.c.bf16 %v1044_v39, %v1043_v38 }
 0x130   :  { %1744 = vmatpush1.bf16.msra.mxu0 %v1743_v43  ;;  %v1013_v43 = vld [vmem:[#allocation8 + $0x50] sm:$0xff] }
 0x131   :  { %1746 = vmatprep.subr.bf16.mxu0 %v1745_v44  ;;  %v1014_v44 = vld [vmem:[#allocation8 + $0x58] sm:$0xff] }
 0x132   :  { %v1886_v47 = vpack.c.bf16 %v1014_v44, %v1013_v43  ;;  %v1047_v44 = vld [vmem:[#allocation8 + $0x160] sm:$0xff] }
 0x133   :  { %v1915_v46 = vpack.c.bf16 %v1048_v45, %v1047_v44 }
 0x134   :  { %1748 = vmatpush1.bf16.msra.mxu0 %v1747_v49  ;;  %v1015_v49 = vld [vmem:[#allocation8 + $0x60] sm:$0xff] }
 0x135   :  { %1750 = vmatprep.subr.bf16.mxu0 %v1749_v50  ;;  %v1016_v50 = vld [vmem:[#allocation8 + $0x68] sm:$0xff] }
 0x136   :  { %v1890_v51 = vpack.c.bf16 %v1016_v50, %v1015_v49 }
 0x138   :  { %1752 = vmatpush1.bf16.msra.mxu0 %v1751_v1  ;;  %v1033_v1 = vld [vmem:[#allocation8 + $0xf0] sm:$0xff] }
 0x139   :  { %1754 = vmatprep.subr.bf16.mxu0 %v1753_v55  ;;  %v1034_v55 = vld [vmem:[#allocation8 + $0xf8] sm:$0xff] }
 0x13a   :  { %v1892_v56 = vpack.c.bf16 %v1034_v55, %v1033_v1  ;;  %v1202_v1 = vld [vmem:[#allocation11 + $0x18] sm:$0xff] }
 0x13c   :  { %1756 = vmatpush1.bf16.msra.mxu0 %v1755_v59  ;;  %v417_v59 = vlaneseq }
 0x13d   :  { %1758 = vmatprep.subr.bf16.mxu0 %v1757_v60 }
 0x13e   :  { %v418_v60 = vshrl.u32 %v417_v59, 7  ;;  %v1206_v59 = vld [vmem:[#allocation11 + $0x38] sm:$0xff] }
 0x140   :  { %1760 = vmatpush1.bf16.msra.mxu0 %v1759_v3  ;;  %v427_v61 = vsub.s32 2, %v418_v60  ;;  %v419_v14 = vsub.s32 0, %v418_v60  ;;  %v423_v15 = vsub.s32 1, %v418_v60 }
 0x141   :  { %1762 = vmatprep.subr.bf16.mxu0 %v1761_v4 }
 0x142   :  { %v428_v0 = vrot.slane %v415_v62, %v427_v61  ;;  %v420_v16 = vrot.slane %v415_v62, %v419_v14  ;;  %v424_v17 = vrot.slane %v415_v62, %v423_v15  ;;  %v1208_v61 = vld [vmem:[#allocation11 + $0x48] sm:$0xff] }
 0x143   :  { %643 = vmatmul.mubr.f32.vlgmr.msra.gmra.mrb[0].mxu0 %v2298_v26  ;;  %v1024_v26 = vld [vmem:[#allocation8 + $0xa8] sm:$0xff] }
 0x144   :  { %1764 = vmatpush1.bf16.msra.mxu0 %v1763_v7  ;;  %713 = vmatprep.mubr.f32.mxu0 %v2166_v35  ;;  %v1872_v21 = vpack.c.bf16 %v1024_v26, %v1023_v19 }
 0x146   :  { %1873 = vmatprep.subr.bf16.mxu1 %v1872_v21  ;;  %v1036_v21 = vld [vmem:[#allocation8 + $0x108] sm:$0xff] }
 0x147   :  { %v1897_v23 = vpack.c.bf16 %v1036_v21, %v1035_v20 }
 0x14b   :  { %1311 = vmatmul.mubr.msk.f32.vlgmr.msra.gmra.mrb[0].mxu0 %vm432_vm1, %v2304_v36  ;;  %v1008_v36 = vld [vmem:[#allocation8 + $0x28] sm:$0xff] }
 0x14c   :  { %v1874_v25 = vpack.c.bf16 %v1008_v36, %v1007_v22 }
 0x14e   :  { %1875 = vmatpush3.bf16.msra.mxu1 %v1874_v25  ;;  %v1037_v25 = vld [vmem:[#allocation8 + $0x110] sm:$0xff] }
 0x14f   :  { %1877 = vmatprep.subr.bf16.mxu1 %v1876_v27  ;;  %v1038_v27 = vld [vmem:[#allocation8 + $0x118] sm:$0xff] }
 0x150   :  { %v1900_v29 = vpack.c.bf16 %v1038_v27, %v1037_v25 }
 0x152   :  { %1879 = vmatpush3.bf16.msra.mxu1 %v1878_v33  ;;  %v1041_v33 = vld [vmem:[#allocation8 + $0x130] sm:$0xff] }
 0x153   :  { %1881 = vmatprep.subr.bf16.mxu1 %v1880_v34  ;;  %v1042_v34 = vld [vmem:[#allocation8 + $0x138] sm:$0xff] }
 0x154   :  { %v1906_v37 = vpack.c.bf16 %v1042_v34, %v1041_v33 }
 0x156   :  { %1883 = vmatpush3.bf16.msra.mxu1 %v1882_v41  ;;  %v1045_v41 = vld [vmem:[#allocation8 + $0x150] sm:$0xff] }
 0x157   :  { %1885 = vmatprep.subr.bf16.mxu1 %v1884_v42  ;;  %v1046_v42 = vld [vmem:[#allocation8 + $0x158] sm:$0xff] }
 0x158   :  { %v1912_v43 = vpack.c.bf16 %v1046_v42, %v1045_v41 }
 0x15a   :  { %1887 = vmatpush3.bf16.msra.mxu1 %v1886_v47  ;;  %v1049_v47 = vld [vmem:[#allocation8 + $0x170] sm:$0xff] }
 0x15b   :  { %1889 = vmatprep.subr.bf16.mxu1 %v1888_v48  ;;  %v1050_v48 = vld [vmem:[#allocation8 + $0x178] sm:$0xff] }
 0x15c   :  { %v1918_v49 = vpack.c.bf16 %v1050_v48, %v1049_v47 }
 0x15e   :  { %1891 = vmatpush3.bf16.msra.mxu1 %v1890_v51  ;;  %v1199_v51 = vld [vmem:[#allocation11] sm:$0xff] }
 0x15f   :  { %1893 = vmatprep.subr.bf16.mxu1 %v1892_v56  ;;  %v1203_v56 = vld [vmem:[#allocation11 + $0x20] sm:$0xff] }
 0x160   :  { %v1927_v57 = vpack.c.bf16 %v1204_v63, %v1203_v56 }
 0x162   :  { %1895 = vmatpush3.bf16.msra.mxu1 %v1894_v58  ;;  %v1205_v58 = vld [vmem:[#allocation11 + $0x30] sm:$0xff] }
 0x163   :  { %1896 = vmatprep.subr.bf16.mxu1 %v2164_v28  ;;  %v1930_v60 = vpack.c.bf16 %v1206_v59, %v1205_v58 }
 0x182   :  { %v1347_v52 = vpop.f32.mrb[0].mxu1 }
 0x183   :  { %v1348_v53 = vpop.f32.mrb[1].mxu1 }
 0x184   :  { %v1349_v54 = vadd.f32 %v1348_v53, %v1347_v52  ;;  %v1200_v52 = vld [vmem:[#allocation11 + $0x8] sm:$0xff]  ;;  %v1201_v53 = vld [vmem:[#allocation11 + $0x10] sm:$0xff] }
 0x185   :  { %v1924_v55 = vpack.c.bf16 %v1202_v1, %v1201_v53 }
 0x186   :  { %v787_v2 = vadd.f32 %v1349_v54, %v428_v0  ;;  %v1921_v54 = vpack.c.bf16 %v1200_v52, %v1199_v51  ;;  %v1209_v0 = vld [vmem:[#allocation11 + $0x50] sm:$0xff] }
 0x1a3   :  { %v1382_v3 = vpop.f32.mrb[2].mxu1 }
 0x1a4   :  { %v1383_v4 = vpop.f32.mrb[3].mxu1 }
 0x1a5   :  { %v1384_v5 = vadd.f32 %v1383_v4, %v1382_v3  ;;  %v1211_v4 = vld [vmem:[#allocation11 + $0x60] sm:$0xff] }
 0x1a7   :  { %v857_v6 = vadd.f32 %v1384_v5, %v787_v2  ;;  %v1210_v2 = vld [vmem:[#allocation11 + $0x58] sm:$0xff]  ;;  %v1212_v5 = vld [vmem:[#allocation11 + $0x68] sm:$0xff] }
 0x1a8   :  { %v1936_v3 = vpack.c.bf16 %v1210_v2, %v1209_v0 }
 0x1c3   :  { %v1417_v7 = vpop.f32.mrb[4].mxu1 }
 0x1c4   :  { %v1418_v8 = vpop.f32.mrb[5].mxu1 }
 0x1c5   :  { %v1419_v9 = vadd.f32 %v1418_v8, %v1417_v7  ;;  %v1213_v7 = vld [vmem:[#allocation11 + $0x70] sm:$0xff]  ;;  %v1214_v8 = vld [vmem:[#allocation11 + $0x78] sm:$0xff] }
 0x1c7   :  { %v927_v10 = vadd.f32 %v1419_v9, %v857_v6  ;;  %v996_v11 = vpop.f32.mrb[6].mxu1  ;;  %v1939_v6 = vpack.c.bf16 %v1212_v5, %v1211_v4  ;;  %v1942_v9 = vpack.c.bf16 %v1214_v8, %v1213_v7 }
 0x1c8   :  { %v1498_v12 = vpop.f32.mrb[7].mxu1 }
 0x1c9   :  { %v997_v13 = vadd.f32 %v996_v11, %v927_v10 }
 0x1cb   :  { %v1002_v50 = vmax.f32 %v997_v13, 0.0  ;;  %v1313_v13 = vld [vmem:[#allocation10] ss:$0 sm:$0xff] }
 0x21e   :  { %v715_v18 = vpop.f32.mrb[0].mxu0 }
 0x21f   :  { %v1944_v19 = vadd.f32 %v715_v18, %v420_v16  ;;  %v717_v26 = vpop.f32.mrb[1].mxu0 }
 0x220   :  { %v1945_v22 = vadd.f32 %v717_v26, %v424_v17 }
 0x221   :  { %v1000_v24 = vmax.f32 %v1944_v19, 0.0  ;;  %v1314_v19 = vld [vmem:[#allocation13] ss:$0 sm:$0xff] }
 0x222   :  { %v1001_v36 = vmax.f32 %v1945_v22, 0.0 }
 0x224   :  { %1122 = vmatprep.mubr.f32.mxu1 %v1001_v36 }
 0x225   :  { %1123 = vmatmul.mubr.f32.vlgmr.msra.gmra.mrb[8].mxu1 %v1000_v24 }
 0x226   :  { %1898 = vmatpush3.bf16.msra.mxu1 %v1897_v23  ;;  %1531 = vmatprep.mubr.msk.f32.mxu1 %vm2165_vm0, %v2166_v35 }
 0x227   :  { %1899 = vmatprep.subr.bf16.mxu1 %v2164_v28 }
 0x22a   :  { %1901 = vmatpush3.bf16.msra.mxu1 %v1900_v29 }
 0x22b   :  { %1902 = vmatprep.subr.bf16.mxu1 %v2164_v28 }
 0x22e   :  { %1904 = vmatpush3.bf16.msra.mxu1 %v1903_v32 }
 0x22f   :  { %1905 = vmatprep.subr.bf16.mxu1 %v2164_v28 }
 0x232   :  { %1907 = vmatpush3.bf16.msra.mxu1 %v1906_v37 }
 0x233   :  { %1908 = vmatprep.subr.bf16.mxu1 %v2164_v28 }
 0x236   :  { %1910 = vmatpush3.bf16.msra.mxu1 %v1909_v40 }
 0x237   :  { %1911 = vmatprep.subr.bf16.mxu1 %v2164_v28 }
 0x23a   :  { %1913 = vmatpush3.bf16.msra.mxu1 %v1912_v43 }
 0x23b   :  { %1914 = vmatprep.subr.bf16.mxu1 %v2164_v28 }
 0x23e   :  { %1916 = vmatpush3.bf16.msra.mxu1 %v1915_v46 }
 0x23f   :  { %1917 = vmatprep.subr.bf16.mxu1 %v2164_v28 }
 0x242   :  { %1919 = vmatpush3.bf16.msra.mxu1 %v1918_v49 }
 0x243   :  { %1920 = vmatprep.subr.bf16.mxu1 %v2164_v28 }
 0x245   :  { %1532 = vmatmul.mubr.f32.vlgmr.msra.gmra.mrb[10].mxu1 %v1002_v50 }
 0x246   :  { %1566 = vmatprep.mubr.msk.f32.mxu1 %vm2165_vm0, %v2166_v35  ;;  %1922 = vmatpush3.bf16.msra.mxu1 %v1921_v54  ;;  %v1207_v35 = vld [vmem:[#allocation11 + $0x40] sm:$0xff] }
 0x247   :  { %1923 = vmatprep.subr.bf16.mxu1 %v2164_v28  ;;  %v1933_v62 = vpack.c.bf16 %v1208_v61, %v1207_v35 }
 0x24a   :  { %1925 = vmatpush3.bf16.msra.mxu1 %v1924_v55 }
 0x24b   :  { %1926 = vmatprep.subr.bf16.mxu1 %v2164_v28 }
 0x24e   :  { %1928 = vmatpush3.bf16.msra.mxu1 %v1927_v57 }
 0x24f   :  { %1929 = vmatprep.subr.bf16.mxu1 %v2164_v28 }
 0x252   :  { %1931 = vmatpush3.bf16.msra.mxu1 %v1930_v60 }
 0x253   :  { %1932 = vmatprep.subr.bf16.mxu1 %v2164_v28 }
 0x256   :  { %1934 = vmatpush3.bf16.msra.mxu1 %v1933_v62 }
 0x257   :  { %1935 = vmatprep.subr.bf16.mxu1 %v2164_v28 }
 0x25a   :  { %1937 = vmatpush3.bf16.msra.mxu1 %v1936_v3 }
 0x25b   :  { %1938 = vmatprep.subr.bf16.mxu1 %v2164_v28 }
 0x25e   :  { %1940 = vmatpush3.bf16.msra.mxu1 %v1939_v6 }
 0x25f   :  { %1941 = vmatprep.subr.bf16.mxu1 %v2164_v28 }
 0x262   :  { %1943 = vmatpush3.bf16.msra.mxu1 %v1942_v9 }
 0x2f8   :  { %v1455_v10 = vpop.f32.mrb[8].mxu1 }
 0x2f9   :  { %v1456_v11 = vpop.f32.mrb[9].mxu1 }
 0x2fa   :  { %v1457_v12 = vadd.f32 %v1456_v11, %v1455_v10 }
 0x2fc   :  { %v1125_v14 = vadd.f32 %v1457_v12, %v1313_v13 }
 0x318   :  { %v1194_v15 = vpop.f32.mrb[10].mxu1 }
 0x319   :  { %v1195_v16 = vadd.f32 %v1194_v15, %v1125_v14  ;;  %v1533_v17 = vpop.f32.mrb[11].mxu1 }
 0x31b   :  { %v1198_v18 = vmax.f32 %v1195_v16, 0.0 }
 0x31d   :  { %1567 = vmatmul.mubr.f32.vlgmr.msra.gmra.mrb[12].mxu1 %v1198_v18 }
 0x3f0   :  { %v1288_v26 = vpop.f32.mrb[12].mxu1 }
 0x3f1   :  { %v1289_v20 = vadd.f32 %v1314_v19, %v1288_v26  ;;  %v1568_v28 = vpop.f32.mrb[13].mxu1 }
 0x3f3   :  { %1292 = vst [vmem:[#allocation14] sm:$0xff] %v1289_v20 }
 0x3f4   :  { %2132 = shalt.err (!%p2129_p4)
}
 0x3f5   :  { %s2133_s3 = scalar_lea.hbm %s2353_s7, 128 }
 0x3f6   :  { %p2134_p5 = scmp.ne.s32.totalorder %s2353_s7, %s2133_s3  ;;  %p2137_p6 = scmp.lt.u32.totalorder %s2133_s3, %s2353_s7 }
 0x3f8   :  { %p2139_p7 = pnand %p2137_p6, %p2134_p5 }
 0x3fa   :  { %2142 = shalt.err (!%p2139_p7)
}
 0x3fb   :  { %1302 = dma.vmem_to_hbm [thread:$0]  %s1300_s14, 128, %s2353_s7, [#allocation4]  }
 0x3fc   :  { %2151 = dma.done.wait [#allocation4], 128  }
 0x3fd   :  { %2152 = vsyncadd [#allocation4], 4294967168 }
 0x3fe   :  { %1306 = vsyncpa [#allocation3], 1 }
 0x3ff   :  { %1307 = vsyncpa [#allocation6], 1 }
 0x400   :  { %1308 = vsyncpa [#allocation9], 1 }
 0x401   :  { %1309 = vsyncpa [#allocation12], 1 }
 0x402   :  { %1310 = vsyncpa [#allocation4], 1 }

// kernel: mlp_forward.1
= control target key start
LH: loop header
LB: loop body
LE: loop exit
PB: predicated region body
PF: predicated region fallthrough
CT: control target
= control target key end

     0   :  { %12 = vsyncpa [#allocation3], 0  ;;  %s2346_s0 = inlined_call_operand.hbm [shape: f32[8,784], index: 0, kind: input, shape index: {}]   ;;  %s2347_s1 = inlined_call_operand.hbm [shape: f32[784,384], index: 1, kind: input, shape index: {}]   ;;  %s2348_s2 = inlined_call_operand.hbm [shape: f32[1,384], index: 2, kind: input, shape index: {}]   ;;  %s2349_s3 = inlined_call_operand.hbm [shape: f32[384,128], index: 3, kind: input, shape index: {}]   ;;  %s2350_s4 = inlined_call_operand.hbm [shape: f32[1,128], index: 4, kind: input, shape index: {}]   ;;  %s2351_s5 = inlined_call_operand.hbm [shape: f32[128,128], index: 5, kind: input, shape index: {}]   ;;  %s2352_s6 = inlined_call_operand.hbm [shape: f32[1,128], index: 6, kind: input, shape index: {}]   ;;  %s2353_s7 = inlined_call_operand.hbm [shape: f32[8,128], index: 7, kind: output, shape index: {}]  }
   0x1   :  { %13 = vsyncpa [#allocation6], 0 }
   0x2   :  { %14 = vsyncpa [#allocation9], 0 }
   0x3   :  { %15 = vsyncpa [#allocation12], 0 }
   0x4   :  { %16 = vsyncpa [#allocation4], 0  ;;  %s2153_s24 = smov [#allocation5]   ;;  %s1967_s28 = scalar_lea.hbm %s2347_s1, 37632 }
   0x5   :  { %s32_s25 = sshll.u32 %s2153_s24, 4  ;;  %p1968_p0 = scmp.ne.s32.totalorder %s2347_s1, %s1967_s28  ;;  %s33_s25 = int_to_ptr.vmem [resolvable:$true] %s32_s25 }
   0x6   :  { %p1971_p1 = scmp.lt.u32.totalorder %s1967_s28, %s2347_s1 }
   0x8   :  { %p1973_p2 = pnand %p1971_p1, %p1968_p0 }
   0xa   :  { %1976 = shalt.err (!%p1973_p2)
}
   0xb   :  { %s1977_s10 = scalar_lea.vmem %s33_s25, 37632  ;;  %p1982_p4 = scmp.lt.s32.totalorder %s33_s25, %s33_s25 }
   0xc   :  { %p1978_p3 = scmp.ne.s32.totalorder %s33_s25, %s1977_s10  ;;  %p1983_p5 = scmp.lt.s32.totalorder %s1977_s10, %s1977_s10 }
   0xe   :  { %p1984_p6 = por %p1983_p5, %p1982_p4 }
  0x10   :  { %p1985_p7 = pnand %p1984_p6, %p1978_p3 }
  0x12   :  { %1988 = shalt.err (!%p1985_p7)
}
  0x13   :  { %s2154_s11 = smov 384   ;;  %s2155_s12 = smov 24  }
  0x14   :  { %38 = dma.hbm_to_vmem [thread:$0]  %s2347_s1, 37632, %s33_s25, [#allocation6], %s2154_s11, %s2154_s11, %s2155_s12  }
  0x15   :  { %s2156_s15 = smov [#allocation8]   ;;  %s1989_s19 = scalar_lea.hbm %s2349_s3, 6144 }
  0x16   :  { %s54_s16 = sshll.u32 %s2156_s15, 4  ;;  %p1990_p8 = scmp.ne.s32.totalorder %s2349_s3, %s1989_s19  ;;  %s55_s16 = int_to_ptr.vmem [resolvable:$true] %s54_s16 }
  0x17   :  { %p1993_p9 = scmp.lt.u32.totalorder %s1989_s19, %s2349_s3 }
  0x19   :  { %p1995_p10 = pnand %p1993_p9, %p1990_p8 }
  0x1b   :  { %1998 = shalt.err (!%p1995_p10)
}
  0x1c   :  { %s1999_s24 = scalar_lea.vmem %s55_s16, 6144  ;;  %p2004_p12 = scmp.lt.s32.totalorder %s55_s16, %s55_s16 }
  0x1d   :  { %p2000_p11 = scmp.ne.s32.totalorder %s55_s16, %s1999_s24  ;;  %p2005_p13 = scmp.lt.s32.totalorder %s1999_s24, %s1999_s24 }
  0x1f   :  { %p2006_p0 = por %p2005_p13, %p2004_p12 }
  0x21   :  { %p2007_p1 = pnand %p2006_p0, %p2000_p11 }
  0x23   :  { %2010 = shalt.err (!%p2007_p1)
}
  0x24   :  { %s2157_s1 = smov 128   ;;  %s2158_s25 = smov 8  }
  0x25   :  { %60 = dma.hbm_to_vmem [thread:$0]  %s2349_s3, 6144, %s55_s16, [#allocation9], %s2157_s1, %s2157_s1, %s2158_s25  }
  0x26   :  { %s2159_s28 = smov [#allocation11]   ;;  %s2160_s30 = smov [#allocation2]  }
  0x27   :  { %s76_s29 = sshll.u32 %s2159_s28, 4  ;;  %s23_s8 = sshll.u32 %s2160_s30, 4  ;;  %s77_s29 = int_to_ptr.vmem [resolvable:$true] %s76_s29  ;;  %s24_s8 = int_to_ptr.vmem [resolvable:$true] %s23_s8 }
  0x28   :  { %s2011_s11 = scalar_lea.hbm %s2351_s5, 2048 }
  0x29   :  { %p2012_p2 = scmp.ne.s32.totalorder %s2351_s5, %s2011_s11  ;;  %p2015_p3 = scmp.lt.u32.totalorder %s2011_s11, %s2351_s5 }
  0x2b   :  { %p2017_p4 = pnand %p2015_p3, %p2012_p2 }
  0x2d   :  { %2020 = shalt.err (!%p2017_p4)
}
  0x2e   :  { %s2021_s3 = scalar_lea.vmem %s77_s29, 2048  ;;  %p2026_p6 = scmp.lt.s32.totalorder %s77_s29, %s77_s29 }
  0x2f   :  { %p2022_p5 = scmp.ne.s32.totalorder %s77_s29, %s2021_s3  ;;  %p2027_p7 = scmp.lt.s32.totalorder %s2021_s3, %s2021_s3 }
  0x31   :  { %p2028_p8 = por %p2027_p7, %p2026_p6 }
  0x33   :  { %p2029_p9 = pnand %p2028_p8, %p2022_p5 }
  0x35   :  { %2032 = shalt.err (!%p2029_p9)
}
  0x36   :  { %82 = dma.hbm_to_vmem [thread:$0]  %s2351_s5, 2048, %s77_s29, [#allocation12], %s2157_s1, %s2157_s1, %s2158_s25  }
  0x37   :  { %s2033_s20 = scalar_lea.hbm %s2346_s0, 896 }
  0x38   :  { %p2034_p10 = scmp.ne.s32.totalorder %s2346_s0, %s2033_s20  ;;  %p2037_p11 = scmp.lt.u32.totalorder %s2033_s20, %s2346_s0 }
  0x3a   :  { %p2039_p12 = pnand %p2037_p11, %p2034_p10 }
  0x3c   :  { %2042 = shalt.err (!%p2039_p12)
}
  0x3d   :  { %s2043_s26 = scalar_lea.vmem %s24_s8, 896  ;;  %p2048_p0 = scmp.lt.s32.totalorder %s24_s8, %s24_s8 }
  0x3e   :  { %p2044_p13 = scmp.ne.s32.totalorder %s24_s8, %s2043_s26  ;;  %p2049_p1 = scmp.lt.s32.totalorder %s2043_s26, %s2043_s26 }
  0x40   :  { %p2050_p2 = por %p2049_p1, %p2048_p0 }
  0x42   :  { %p2051_p3 = pnand %p2050_p2, %p2044_p13 }
  0x44   :  { %2054 = shalt.err (!%p2051_p3)
}
  0x45   :  { %26 = dma.hbm_to_vmem [thread:$0]  %s2346_s0, 896, %s24_s8, [#allocation3]  }
  0x46   :  { %s2161_s25 = smov [#allocation7]   ;;  %s2162_s28 = smov [#allocation10]  }
  0x47   :  { %s45_s27 = sshll.u32 %s2161_s25, 4  ;;  %s67_s29 = sshll.u32 %s2162_s28, 4  ;;  %s46_s27 = int_to_ptr.vmem [resolvable:$true] %s45_s27  ;;  %s68_s29 = int_to_ptr.vmem [resolvable:$true] %s67_s29 }
  0x48   :  { %s2055_s10 = scalar_lea.hbm %s2348_s2, 48 }
  0x49   :  { %p2056_p4 = scmp.ne.s32.totalorder %s2348_s2, %s2055_s10  ;;  %p2059_p5 = scmp.lt.u32.totalorder %s2055_s10, %s2348_s2 }
  0x4b   :  { %p2061_p6 = pnand %p2059_p5, %p2056_p4 }
  0x4d   :  { %2064 = shalt.err (!%p2061_p6)
}
  0x4e   :  { %s2065_s0 = scalar_lea.vmem %s46_s27, 48  ;;  %s2069_s8 = scalar_lea.vmem %s46_s27, 64 }
  0x4f   :  { %p2066_p7 = scmp.ne.s32.totalorder %s46_s27, %s2065_s0  ;;  %p2070_p8 = scmp.lt.s32.totalorder %s46_s27, %s46_s27 }
  0x50   :  { %p2071_p9 = scmp.lt.s32.totalorder %s2069_s8, %s2065_s0 }
  0x52   :  { %p2072_p10 = por %p2071_p9, %p2070_p8 }
  0x54   :  { %p2073_p11 = pnand %p2072_p10, %p2066_p7 }
  0x56   :  { %2076 = shalt.err (!%p2073_p11)
}
  0x57   :  { %48 = dma.hbm_to_vmem [thread:$0]  %s2348_s2, 48, %s46_s27, [#allocation6]  }
  0x58   :  { %s2077_s18 = scalar_lea.hbm %s2350_s4, 16 }
  0x59   :  { %p2078_p12 = scmp.ne.s32.totalorder %s2350_s4, %s2077_s18  ;;  %p2081_p13 = scmp.lt.u32.totalorder %s2077_s18, %s2350_s4 }
  0x5b   :  { %p2083_p0 = pnand %p2081_p13, %p2078_p12 }
  0x5d   :  { %2086 = shalt.err (!%p2083_p0)
}
  0x5e   :  { %s2087_s23 = scalar_lea.vmem %s68_s29, 16  ;;  %s2091_s24 = scalar_lea.vmem %s68_s29, 32 }
  0x5f   :  { %p2088_p1 = scmp.ne.s32.totalorder %s68_s29, %s2087_s23  ;;  %p2092_p2 = scmp.lt.s32.totalorder %s68_s29, %s68_s29 }
  0x60   :  { %p2093_p3 = scmp.lt.s32.totalorder %s2091_s24, %s2087_s23 }
  0x62   :  { %p2094_p4 = por %p2093_p3, %p2092_p2 }
  0x64   :  { %p2095_p5 = pnand %p2094_p4, %p2088_p1 }
  0x66   :  { %2098 = shalt.err (!%p2095_p5)
}
  0x67   :  { %70 = dma.hbm_to_vmem [thread:$0]  %s2350_s4, 16, %s68_s29, [#allocation9]  }
  0x68   :  { %s2163_s5 = smov [#allocation13]   ;;  %s2099_s28 = scalar_lea.hbm %s2352_s6, 16 }
  0x69   :  { %s89_s1 = sshll.u32 %s2163_s5, 4  ;;  %p2100_p6 = scmp.ne.s32.totalorder %s2352_s6, %s2099_s28  ;;  %s90_s1 = int_to_ptr.vmem [resolvable:$true] %s89_s1 }
  0x6a   :  { %p2103_p7 = scmp.lt.u32.totalorder %s2099_s28, %s2352_s6 }
  0x6c   :  { %p2105_p8 = pnand %p2103_p7, %p2100_p6 }
  0x6e   :  { %2108 = shalt.err (!%p2105_p8)
}
  0x6f   :  { %s2109_s12 = scalar_lea.vmem %s90_s1, 16  ;;  %s2113_s4 = scalar_lea.vmem %s90_s1, 32 }
  0x70   :  { %p2110_p9 = scmp.ne.s32.totalorder %s90_s1, %s2109_s12  ;;  %p2114_p10 = scmp.lt.s32.totalorder %s90_s1, %s90_s1 }
  0x71   :  { %p2115_p11 = scmp.lt.s32.totalorder %s2113_s4, %s2109_s12 }
  0x73   :  { %p2116_p12 = por %p2115_p11, %p2114_p10 }
  0x75   :  { %p2117_p13 = pnand %p2116_p12, %p2110_p9 }
  0x77   :  { %2120 = shalt.err (!%p2117_p13)
}
  0x78   :  { %92 = dma.hbm_to_vmem [thread:$0]  %s2352_s6, 16, %s90_s1, [#allocation12]  }
  0x79   :  { %2143 = dma.done.wait [#allocation3], 896  }
  0x7a   :  { %2144 = vsyncadd [#allocation3], 4294966400 }
  0x7b   :  { %2145 = dma.done.wait [#allocation6], 37680  }
  0x7c   :  { %2146 = vsyncadd [#allocation6], 4294929616 }
  0x7d   :  { %2147 = dma.done.wait [#allocation9], 6160  }
  0x7e   :  { %2148 = vsyncadd [#allocation9], 4294961136 }
  0x7f   :  { %2149 = dma.done.wait [#allocation12], 2064  }
  0x80   :  { %2150 = vsyncadd [#allocation12], 4294965232  ;;  %v122_v0 = vld [vmem:[#allocation5 + $0x8] sm:$0xff]  ;;  %v125_v1 = vld [vmem:[#allocation5 + $0x20] sm:$0xff]  ;;  %vm2165_vm0 = vmmov 0   ;;  %vm432_vm1 = vcmask 130048  }
  0x81   :  { %v121_v2 = vld [vmem:[#allocation5] sm:$0xff]  ;;  %v1569_v3 = vpack.c.bf16 %v125_v1, %v122_v0  ;;  %v124_v4 = vld [vmem:[#allocation5 + $0x18] sm:$0xff]  ;;  %v131_v6 = vld [vmem:[#allocation5 + $0x50] sm:$0xff]  ;;  %s2167_s6 = smov [#allocation14]  }
  0x82   :  { %v128_v5 = vld [vmem:[#allocation5 + $0x38] sm:$0xff]  ;;  %v1571_v7 = vpack.c.bf16 %v124_v4, %v121_v2  ;;  %v127_v9 = vld [vmem:[#allocation5 + $0x30] sm:$0xff]  ;;  %v130_v10 = vld [vmem:[#allocation5 + $0x48] sm:$0xff]  ;;  %s1299_s14 = sshll.u32 %s2167_s6, 4  ;;  %s1300_s14 = int_to_ptr.vmem [resolvable:$true] %s1299_s14 }
  0x83   :  { %v1573_v8 = vpack.c.bf16 %v131_v6, %v128_v5  ;;  %v134_v11 = vld [vmem:[#allocation5 + $0x68] sm:$0xff]  ;;  %1570 = vmatprep.subr.bf16.mxu0 %v1569_v3  ;;  %v137_v12 = vld [vmem:[#allocation5 + $0x80] sm:$0xff]  ;;  %v1575_v13 = vpack.c.bf16 %v130_v10, %v127_v9  ;;  %v136_v16 = vld [vmem:[#allocation5 + $0x78] sm:$0xff]  ;;  %s2121_s0 = scalar_lea.vmem %s1300_s14, 128  ;;  %p2126_p1 = scmp.lt.s32.totalorder %s1300_s14, %s1300_s14 }
  0x84   :  { %1572 = vmatpush1.bf16.msra.mxu0 %v1571_v7  ;;  %v1577_v14 = vpack.c.bf16 %v137_v12, %v134_v11  ;;  %v133_v15 = vld [vmem:[#allocation5 + $0x60] sm:$0xff]  ;;  %v140_v17 = vld [vmem:[#allocation5 + $0x98] sm:$0xff]  ;;  %v143_v18 = vld [vmem:[#allocation5 + $0xb0] sm:$0xff]  ;;  %p2122_p0 = scmp.ne.s32.totalorder %s1300_s14, %s2121_s0  ;;  %p2127_p2 = scmp.lt.s32.totalorder %s2121_s0, %s2121_s0 }
  0x85   :  { %1574 = vmatprep.subr.bf16.mxu0 %v1573_v8  ;;  %v1579_v19 = vpack.c.bf16 %v136_v16, %v133_v15  ;;  %v1581_v20 = vpack.c.bf16 %v143_v18, %v140_v17  ;;  %v139_v21 = vld [vmem:[#allocation5 + $0x90] sm:$0xff]  ;;  %v142_v22 = vld [vmem:[#allocation5 + $0xa8] sm:$0xff]  ;;  %v149_v24 = vld [vmem:[#allocation5 + $0xe0] sm:$0xff] }
  0x86   :  { %v146_v23 = vld [vmem:[#allocation5 + $0xc8] sm:$0xff]  ;;  %v1583_v25 = vpack.c.bf16 %v142_v22, %v139_v21  ;;  %v145_v27 = vld [vmem:[#allocation5 + $0xc0] sm:$0xff]  ;;  %v148_v28 = vld [vmem:[#allocation5 + $0xd8] sm:$0xff]  ;;  %p2128_p3 = por %p2127_p2, %p2126_p1 }
  0x87   :  { %v1585_v26 = vpack.c.bf16 %v149_v24, %v146_v23  ;;  %v152_v29 = vld [vmem:[#allocation5 + $0xf8] sm:$0xff]  ;;  %v155_v30 = vld [vmem:[#allocation5 + $0x110] sm:$0xff]  ;;  %v1587_v31 = vpack.c.bf16 %v148_v28, %v145_v27  ;;  %v154_v34 = vld [vmem:[#allocation5 + $0x108] sm:$0xff] }
  0x88   :  { %1576 = vmatpush1.bf16.msra.mxu0 %v1575_v13  ;;  %v1589_v32 = vpack.c.bf16 %v155_v30, %v152_v29  ;;  %v151_v33 = vld [vmem:[#allocation5 + $0xf0] sm:$0xff]  ;;  %v158_v35 = vld [vmem:[#allocation5 + $0x128] sm:$0xff]  ;;  %v161_v36 = vld [vmem:[#allocation5 + $0x140] sm:$0xff]  ;;  %p2129_p4 = pnand %p2128_p3, %p2122_p0 }
  0x89   :  { %1578 = vmatprep.subr.bf16.mxu0 %v1577_v14  ;;  %v1591_v37 = vpack.c.bf16 %v154_v34, %v151_v33  ;;  %v1593_v38 = vpack.c.bf16 %v161_v36, %v158_v35  ;;  %v157_v39 = vld [vmem:[#allocation5 + $0x120] sm:$0xff]  ;;  %v160_v40 = vld [vmem:[#allocation5 + $0x138] sm:$0xff]  ;;  %v115_v41 = vld [vmem:[#allocation2 + $0x8] sm:$0xff] }
  0x8a   :  { %v164_v42 = vld [vmem:[#allocation5 + $0x158] sm:$0xff]  ;;  %v167_v43 = vld [vmem:[#allocation5 + $0x170] sm:$0xff]  ;;  %500 = vmatprep.mubr.f32.mxu0 %v115_v41  ;;  %784 = vmatprep.mubr.f32.mxu1 %v115_v41  ;;  %v1595_v44 = vpack.c.bf16 %v160_v40, %v157_v39  ;;  %v166_v47 = vld [vmem:[#allocation5 + $0x168] sm:$0xff] }
  0x8b   :  { %v163_v45 = vld [vmem:[#allocation5 + $0x150] sm:$0xff]  ;;  %v1597_v46 = vpack.c.bf16 %v167_v43, %v164_v42  ;;  %v170_v48 = vld [vmem:[#allocation5 + $0x188] sm:$0xff]  ;;  %v173_v49 = vld [vmem:[#allocation5 + $0x1a0] sm:$0xff] }
  0x8c   :  { %1580 = vmatpush1.bf16.msra.mxu0 %v1579_v19  ;;  %v171_v50 = vld [vmem:[#allocation5 + $0x190] sm:$0xff]  ;;  %v174_v51 = vld [vmem:[#allocation5 + $0x1a8] sm:$0xff]  ;;  %v1599_v55 = vpack.c.bf16 %v166_v47, %v163_v45  ;;  %v169_v56 = vld [vmem:[#allocation5 + $0x180] sm:$0xff]  ;;  %v1601_v60 = vpack.c.bf16 %v173_v49, %v170_v48 }
  0x8d   :  { %1582 = vmatprep.subr.bf16.mxu0 %v1581_v20  ;;  %v123_v52 = vld [vmem:[#allocation5 + $0x10] sm:$0xff]  ;;  %v1765_v53 = vpack.c.bf16 %v174_v51, %v171_v50  ;;  %v126_v54 = vld [vmem:[#allocation5 + $0x28] sm:$0xff]  ;;  %v172_v57 = vld [vmem:[#allocation5 + $0x198] sm:$0xff] }
  0x8e   :  { %v1767_v58 = vpack.c.bf16 %v126_v54, %v123_v52  ;;  %v177_v59 = vld [vmem:[#allocation5 + $0x1c0] sm:$0xff]  ;;  %v180_v61 = vld [vmem:[#allocation5 + $0x1d8] sm:$0xff]  ;;  %v179_v1 = vld [vmem:[#allocation5 + $0x1d0] sm:$0xff]  ;;  %v1603_v6 = vpack.c.bf16 %v172_v57, %v169_v56 }
  0x8f   :  { %1766 = vmatprep.subr.bf16.mxu1 %v1765_v53  ;;  %v129_v62 = vld [vmem:[#allocation5 + $0x40] sm:$0xff]  ;;  %v132_v63 = vld [vmem:[#allocation5 + $0x58] sm:$0xff]  ;;  %v1769_v2 = vpack.c.bf16 %v180_v61, %v177_v59  ;;  %v183_v4 = vld [vmem:[#allocation5 + $0x1f0] sm:$0xff] }
  0x90   :  { %1584 = vmatpush1.bf16.msra.mxu0 %v1583_v25  ;;  %v176_v0 = vld [vmem:[#allocation5 + $0x1b8] sm:$0xff]  ;;  %1768 = vmatpush3.bf16.msra.mxu1 %v1767_v58  ;;  %v1771_v3 = vpack.c.bf16 %v132_v63, %v129_v62  ;;  %v186_v5 = vld [vmem:[#allocation5 + $0x208] sm:$0xff]  ;;  %v135_v8 = vld [vmem:[#allocation5 + $0x70] sm:$0xff] }
  0x91   :  { %1586 = vmatprep.subr.bf16.mxu0 %v1585_v26  ;;  %1770 = vmatprep.subr.bf16.mxu1 %v1769_v2  ;;  %v1773_v7 = vpack.c.bf16 %v186_v5, %v183_v4  ;;  %v138_v9 = vld [vmem:[#allocation5 + $0x88] sm:$0xff]  ;;  %v1605_v10 = vpack.c.bf16 %v179_v1, %v176_v0  ;;  %v175_v11 = vld [vmem:[#allocation5 + $0x1b0] sm:$0xff]  ;;  %v185_v14 = vld [vmem:[#allocation5 + $0x200] sm:$0xff] }
  0x92   :  { %v178_v12 = vld [vmem:[#allocation5 + $0x1c8] sm:$0xff]  ;;  %v1775_v15 = vpack.c.bf16 %v138_v9, %v135_v8  ;;  %v189_v16 = vld [vmem:[#allocation5 + $0x220] sm:$0xff]  ;;  %v192_v17 = vld [vmem:[#allocation5 + $0x238] sm:$0xff] }
  0x93   :  { %v182_v13 = vld [vmem:[#allocation5 + $0x1e8] sm:$0xff]  ;;  %v1777_v18 = vpack.c.bf16 %v192_v17, %v189_v16  ;;  %v141_v19 = vld [vmem:[#allocation5 + $0xa0] sm:$0xff]  ;;  %v144_v20 = vld [vmem:[#allocation5 + $0xb8] sm:$0xff]  ;;  %v1607_v21 = vpack.c.bf16 %v178_v12, %v175_v11 }
  0x94   :  { %1588 = vmatpush1.bf16.msra.mxu0 %v1587_v31  ;;  %1772 = vmatpush3.bf16.msra.mxu1 %v1771_v3  ;;  %v195_v22 = vld [vmem:[#allocation5 + $0x250] sm:$0xff]  ;;  %v1609_v23 = vpack.c.bf16 %v185_v14, %v182_v13  ;;  %v181_v24 = vld [vmem:[#allocation5 + $0x1e0] sm:$0xff]  ;;  %v184_v25 = vld [vmem:[#allocation5 + $0x1f8] sm:$0xff]  ;;  %v1779_v29 = vpack.c.bf16 %v144_v20, %v141_v19 }
  0x95   :  { %1590 = vmatprep.subr.bf16.mxu0 %v1589_v32  ;;  %1774 = vmatprep.subr.bf16.mxu1 %v1773_v7  ;;  %v198_v26 = vld [vmem:[#allocation5 + $0x268] sm:$0xff]  ;;  %v188_v27 = vld [vmem:[#allocation5 + $0x218] sm:$0xff]  ;;  %v191_v28 = vld [vmem:[#allocation5 + $0x230] sm:$0xff]  ;;  %v1611_v33 = vpack.c.bf16 %v184_v25, %v181_v24 }
  0x96   :  { %v1781_v30 = vpack.c.bf16 %v198_v26, %v195_v22  ;;  %v147_v31 = vld [vmem:[#allocation5 + $0xd0] sm:$0xff]  ;;  %v150_v32 = vld [vmem:[#allocation5 + $0xe8] sm:$0xff]  ;;  %v201_v34 = vld [vmem:[#allocation5 + $0x280] sm:$0xff]  ;;  %v1613_v36 = vpack.c.bf16 %v191_v28, %v188_v27 }
  0x97   :  { %v204_v35 = vld [vmem:[#allocation5 + $0x298] sm:$0xff]  ;;  %v194_v39 = vld [vmem:[#allocation5 + $0x248] sm:$0xff]  ;;  %v197_v40 = vld [vmem:[#allocation5 + $0x260] sm:$0xff]  ;;  %v1783_v41 = vpack.c.bf16 %v150_v32, %v147_v31 }
  0x98   :  { %1592 = vmatpush1.bf16.msra.mxu0 %v1591_v37  ;;  %1776 = vmatpush3.bf16.msra.mxu1 %v1775_v15  ;;  %v187_v37 = vld [vmem:[#allocation5 + $0x210] sm:$0xff]  ;;  %v1785_v42 = vpack.c.bf16 %v204_v35, %v201_v34  ;;  %v153_v43 = vld [vmem:[#allocation5 + $0x100] sm:$0xff]  ;;  %v210_v47 = vld [vmem:[#allocation5 + $0x2c8] sm:$0xff]  ;;  %v1617_v48 = vpack.c.bf16 %v197_v40, %v194_v39 }
  0x99   :  { %1594 = vmatprep.subr.bf16.mxu0 %v1593_v38  ;;  %1778 = vmatprep.subr.bf16.mxu1 %v1777_v18  ;;  %v190_v38 = vld [vmem:[#allocation5 + $0x228] sm:$0xff]  ;;  %v193_v49 = vld [vmem:[#allocation5 + $0x240] sm:$0xff]  ;;  %v196_v50 = vld [vmem:[#allocation5 + $0x258] sm:$0xff] }
  0x9a   :  { %v1615_v45 = vpack.c.bf16 %v190_v38, %v187_v37  ;;  %v200_v51 = vld [vmem:[#allocation5 + $0x278] sm:$0xff]  ;;  %v203_v52 = vld [vmem:[#allocation5 + $0x290] sm:$0xff]  ;;  %v162_v56 = vld [vmem:[#allocation5 + $0x148] sm:$0xff]  ;;  %v1619_v57 = vpack.c.bf16 %v196_v50, %v193_v49 }
  0x9b   :  { %v213_v58 = vld [vmem:[#allocation5 + $0x2e0] sm:$0xff]  ;;  %v216_v59 = vld [vmem:[#allocation5 + $0x2f8] sm:$0xff]  ;;  %v199_v61 = vld [vmem:[#allocation5 + $0x270] sm:$0xff] }
  0x9c   :  { %1596 = vmatpush1.bf16.msra.mxu0 %v1595_v44  ;;  %1780 = vmatpush3.bf16.msra.mxu1 %v1779_v29  ;;  %v156_v44 = vld [vmem:[#allocation5 + $0x118] sm:$0xff]  ;;  %v202_v62 = vld [vmem:[#allocation5 + $0x288] sm:$0xff]  ;;  %v209_v0 = vld [vmem:[#allocation5 + $0x2c0] sm:$0xff]  ;;  %v1793_v2 = vpack.c.bf16 %v216_v59, %v213_v58 }
  0x9d   :  { %1598 = vmatprep.subr.bf16.mxu0 %v1597_v46  ;;  %1782 = vmatprep.subr.bf16.mxu1 %v1781_v30  ;;  %v207_v46 = vld [vmem:[#allocation5 + $0x2b0] sm:$0xff]  ;;  %v1787_v53 = vpack.c.bf16 %v156_v44, %v153_v43  ;;  %v206_v63 = vld [vmem:[#allocation5 + $0x2a8] sm:$0xff]  ;;  %v165_v3 = vld [vmem:[#allocation5 + $0x160] sm:$0xff]  ;;  %v1623_v5 = vpack.c.bf16 %v202_v62, %v199_v61 }
  0x9e   :  { %v1789_v54 = vpack.c.bf16 %v210_v47, %v207_v46  ;;  %v168_v4 = vld [vmem:[#allocation5 + $0x178] sm:$0xff]  ;;  %v270_v7 = vld [vmem:[#allocation5 + $0x4a8] sm:$0xff]  ;;  %v1625_v8 = vpack.c.bf16 %v209_v0, %v206_v63  ;;  %v205_v9 = vld [vmem:[#allocation5 + $0x2a0] sm:$0xff] }
  0x9f   :  { %v212_v11 = vld [vmem:[#allocation5 + $0x2d8] sm:$0xff]  ;;  %v215_v12 = vld [vmem:[#allocation5 + $0x2f0] sm:$0xff]  ;;  %v1795_v13 = vpack.c.bf16 %v168_v4, %v165_v3  ;;  %v222_v16 = vld [vmem:[#allocation5 + $0x328] sm:$0xff] }
  0xa0   :  { %1600 = vmatpush1.bf16.msra.mxu0 %v1599_v55  ;;  %1784 = vmatpush3.bf16.msra.mxu1 %v1783_v41  ;;  %v159_v55 = vld [vmem:[#allocation5 + $0x130] sm:$0xff]  ;;  %v273_v18 = vld [vmem:[#allocation5 + $0x4c0] sm:$0xff]  ;;  %v276_v19 = vld [vmem:[#allocation5 + $0x4d8] sm:$0xff]  ;;  %v1629_v20 = vpack.c.bf16 %v215_v12, %v212_v11 }
  0xa1   :  { %1602 = vmatprep.subr.bf16.mxu0 %v1601_v60  ;;  %1786 = vmatprep.subr.bf16.mxu1 %v1785_v42  ;;  %v1621_v60 = vpack.c.bf16 %v203_v52, %v200_v51  ;;  %v1791_v1 = vpack.c.bf16 %v162_v56, %v159_v55  ;;  %v219_v15 = vld [vmem:[#allocation5 + $0x310] sm:$0xff]  ;;  %v214_v22 = vld [vmem:[#allocation5 + $0x2e8] sm:$0xff]  ;;  %v221_v24 = vld [vmem:[#allocation5 + $0x320] sm:$0xff]  ;;  %v1801_v26 = vpack.c.bf16 %v276_v19, %v273_v18 }
  0xa2   :  { %v1799_v25 = vpack.c.bf16 %v222_v16, %v219_v15  ;;  %v225_v27 = vld [vmem:[#allocation5 + $0x340] sm:$0xff]  ;;  %v228_v28 = vld [vmem:[#allocation5 + $0x358] sm:$0xff]  ;;  %v114_v30 = vld [vmem:[#allocation2] sm:$0xff] }
  0xa3   :  { %v279_v31 = vld [vmem:[#allocation5 + $0x4f0] sm:$0xff]  ;;  %v282_v32 = vld [vmem:[#allocation5 + $0x508] sm:$0xff]  ;;  %v217_v34 = vld [vmem:[#allocation5 + $0x300] sm:$0xff]  ;;  %v1803_v38 = vpack.c.bf16 %v228_v28, %v225_v27 }
  0xa4   :  { %1604 = vmatpush1.bf16.msra.mxu0 %v1603_v6  ;;  %1788 = vmatpush3.bf16.msra.mxu1 %v1787_v53  ;;  %v267_v6 = vld [vmem:[#allocation5 + $0x490] sm:$0xff]  ;;  %v220_v35 = vld [vmem:[#allocation5 + $0x318] sm:$0xff]  ;;  %v117_v39 = vld [vmem:[#allocation2 + $0x18] sm:$0xff]  ;;  %v1805_v40 = vpack.c.bf16 %v282_v32, %v279_v31 }
  0xa5   :  { %1606 = vmatprep.subr.bf16.mxu0 %v1605_v10  ;;  %1790 = vmatprep.subr.bf16.mxu1 %v1789_v54  ;;  %v208_v10 = vld [vmem:[#allocation5 + $0x2b8] sm:$0xff]  ;;  %v1797_v14 = vpack.c.bf16 %v270_v7, %v267_v6  ;;  %v227_v37 = vld [vmem:[#allocation5 + $0x350] sm:$0xff]  ;;  %v234_v42 = vld [vmem:[#allocation5 + $0x388] sm:$0xff]  ;;  %v1635_v43 = vpack.c.bf16 %v220_v35, %v217_v34 }
  0xa6   :  { %v1627_v17 = vpack.c.bf16 %v208_v10, %v205_v9  ;;  %v231_v41 = vld [vmem:[#allocation5 + $0x370] sm:$0xff]  ;;  %v285_v44 = vld [vmem:[#allocation5 + $0x520] sm:$0xff]  ;;  %v230_v49 = vld [vmem:[#allocation5 + $0x368] sm:$0xff] }
  0xa7   :  { %v223_v47 = vld [vmem:[#allocation5 + $0x330] sm:$0xff]  ;;  %v233_v50 = vld [vmem:[#allocation5 + $0x380] sm:$0xff]  ;;  %v1807_v51 = vpack.c.bf16 %v234_v42, %v231_v41  ;;  %v240_v54 = vld [vmem:[#allocation5 + $0x3b8] sm:$0xff] }
  0xa8   :  { %1608 = vmatpush1.bf16.msra.mxu0 %v1607_v21  ;;  %1792 = vmatpush3.bf16.msra.mxu1 %v1791_v1  ;;  %v211_v21 = vld [vmem:[#allocation5 + $0x2d0] sm:$0xff]  ;;  %v237_v53 = vld [vmem:[#allocation5 + $0x3a0] sm:$0xff]  ;;  %v1641_v58 = vpack.c.bf16 %v233_v50, %v230_v49  ;;  %v236_v61 = vld [vmem:[#allocation5 + $0x398] sm:$0xff] }
  0xa9   :  { %1610 = vmatprep.subr.bf16.mxu0 %v1609_v23  ;;  %1794 = vmatprep.subr.bf16.mxu1 %v1793_v2  ;;  %v218_v23 = vld [vmem:[#allocation5 + $0x308] sm:$0xff]  ;;  %v1631_v29 = vpack.c.bf16 %v214_v22, %v211_v21  ;;  %v291_v56 = vld [vmem:[#allocation5 + $0x550] sm:$0xff]  ;;  %v229_v59 = vld [vmem:[#allocation5 + $0x360] sm:$0xff]  ;;  %v1811_v63 = vpack.c.bf16 %v240_v54, %v237_v53 }
  0xaa   :  { %v239_v62 = vld [vmem:[#allocation5 + $0x3b0] sm:$0xff]  ;;  %v246_v2 = vld [vmem:[#allocation5 + $0x3e8] sm:$0xff]  ;;  %v297_v4 = vld [vmem:[#allocation5 + $0x580] sm:$0xff] }
  0xab   :  { %v243_v1 = vld [vmem:[#allocation5 + $0x3d0] sm:$0xff]  ;;  %v1645_v6 = vpack.c.bf16 %v239_v62, %v236_v61  ;;  %v242_v9 = vld [vmem:[#allocation5 + $0x3c8] sm:$0xff]  ;;  %v245_v10 = vld [vmem:[#allocation5 + $0x3e0] sm:$0xff] }
  0xac   :  { %1612 = vmatpush1.bf16.msra.mxu0 %v1611_v33  ;;  %1796 = vmatpush3.bf16.msra.mxu1 %v1795_v13  ;;  %v1633_v33 = vpack.c.bf16 %v221_v24, %v218_v23  ;;  %v235_v7 = vld [vmem:[#allocation5 + $0x390] sm:$0xff]  ;;  %v1815_v11 = vpack.c.bf16 %v246_v2, %v243_v1  ;;  %v249_v13 = vld [vmem:[#allocation5 + $0x400] sm:$0xff]  ;;  %v1649_v18 = vpack.c.bf16 %v245_v10, %v242_v9  ;;  %v248_v21 = vld [vmem:[#allocation5 + $0x3f8] sm:$0xff] }
  0xad   :  { %1614 = vmatprep.subr.bf16.mxu0 %v1613_v36  ;;  %1798 = vmatprep.subr.bf16.mxu1 %v1797_v14  ;;  %v224_v36 = vld [vmem:[#allocation5 + $0x338] sm:$0xff]  ;;  %v303_v16 = vld [vmem:[#allocation5 + $0x5b0] sm:$0xff]  ;;  %v241_v19 = vld [vmem:[#allocation5 + $0x3c0] sm:$0xff] }
  0xae   :  { %v1637_v46 = vpack.c.bf16 %v227_v37, %v224_v36  ;;  %v252_v14 = vld [vmem:[#allocation5 + $0x418] sm:$0xff]  ;;  %v251_v22 = vld [vmem:[#allocation5 + $0x410] sm:$0xff]  ;;  %v309_v28 = vld [vmem:[#allocation5 + $0x5e0] sm:$0xff] }
  0xaf   :  { %785 = vmatmul.mubr.f32.vlgmr.msra.gmra.mrb[0].mxu1 %v114_v30  ;;  %v1819_v23 = vpack.c.bf16 %v252_v14, %v249_v13  ;;  %v247_v31 = vld [vmem:[#allocation5 + $0x3f0] sm:$0xff]  ;;  %v250_v32 = vld [vmem:[#allocation5 + $0x408] sm:$0xff]  ;;  %v257_v34 = vld [vmem:[#allocation5 + $0x440] sm:$0xff] }
  0xb0   :  { %1616 = vmatpush1.bf16.msra.mxu0 %v1615_v45  ;;  %1800 = vmatpush3.bf16.msra.mxu1 %v1799_v25  ;;  %v288_v45 = vld [vmem:[#allocation5 + $0x538] sm:$0xff]  ;;  %v255_v25 = vld [vmem:[#allocation5 + $0x430] sm:$0xff]  ;;  %v261_v37 = vld [vmem:[#allocation5 + $0x460] sm:$0xff] }
  0xb1   :  { %1618 = vmatprep.subr.bf16.mxu0 %v1617_v48  ;;  %1802 = vmatprep.subr.bf16.mxu1 %v1801_v26  ;;  %v226_v48 = vld [vmem:[#allocation5 + $0x348] sm:$0xff]  ;;  %v1809_v52 = vpack.c.bf16 %v288_v45, %v285_v44  ;;  %v256_v44 = vld [vmem:[#allocation5 + $0x438] sm:$0xff]  ;;  %v315_v49 = vld [vmem:[#allocation5 + $0x610] sm:$0xff] }
  0xb2   :  { %854 = vmatprep.mubr.f32.mxu1 %v117_v39  ;;  %v1639_v55 = vpack.c.bf16 %v226_v48, %v223_v47  ;;  %v258_v26 = vld [vmem:[#allocation5 + $0x448] sm:$0xff]  ;;  %v260_v45 = vld [vmem:[#allocation5 + $0x458] sm:$0xff]  ;;  %v321_v61 = vld [vmem:[#allocation5 + $0x640] sm:$0xff] }
  0xb3   :  { %v1823_v35 = vpack.c.bf16 %v258_v26, %v255_v25  ;;  %v366_v41 = vld [vmem:[#allocation5 + $0x7a8] sm:$0xff]  ;;  %v372_v53 = vld [vmem:[#allocation5 + $0x7d8] sm:$0xff]  ;;  %v375_v2 = vld [vmem:[#allocation5 + $0x7f0] sm:$0xff] }
  0xb4   :  { %1620 = vmatpush1.bf16.msra.mxu0 %v1619_v57  ;;  %1804 = vmatpush3.bf16.msra.mxu1 %v1803_v38  ;;  %v294_v57 = vld [vmem:[#allocation5 + $0x568] sm:$0xff]  ;;  %v264_v38 = vld [vmem:[#allocation5 + $0x478] sm:$0xff]  ;;  %v381_v14 = vld [vmem:[#allocation5 + $0x820] sm:$0xff] }
  0xb5   :  { %1622 = vmatprep.subr.bf16.mxu0 %v1621_v60  ;;  %1806 = vmatprep.subr.bf16.mxu1 %v1805_v40  ;;  %v232_v60 = vld [vmem:[#allocation5 + $0x378] sm:$0xff]  ;;  %v1813_v0 = vpack.c.bf16 %v294_v57, %v291_v56  ;;  %v363_v40 = vld [vmem:[#allocation5 + $0x790] sm:$0xff]  ;;  %v1827_v47 = vpack.c.bf16 %v264_v38, %v261_v37  ;;  %v318_v50 = vld [vmem:[#allocation5 + $0x628] sm:$0xff] }
  0xb6   :  { %v1643_v3 = vpack.c.bf16 %v232_v60, %v229_v59  ;;  %v1829_v48 = vpack.c.bf16 %v366_v41, %v363_v40  ;;  %v262_v56 = vld [vmem:[#allocation5 + $0x468] sm:$0xff]  ;;  %v1831_v59 = vpack.c.bf16 %v318_v50, %v315_v49  ;;  %v324_v62 = vld [vmem:[#allocation5 + $0x658] sm:$0xff]  ;;  %v387_v26 = vld [vmem:[#allocation5 + $0x850] sm:$0xff] }
  0xb7   :  { %v266_v57 = vld [vmem:[#allocation5 + $0x488] sm:$0xff]  ;;  %v2294_v1 = vld [vmem:[#allocation2 + $0x10] sm:$0xff]  ;;  %v1835_v9 = vpack.c.bf16 %v324_v62, %v321_v61  ;;  %v393_v38 = vld [vmem:[#allocation5 + $0x880] sm:$0xff] }
  0xb8   :  { %1624 = vmatpush1.bf16.msra.mxu0 %v1623_v5  ;;  %1808 = vmatpush3.bf16.msra.mxu1 %v1807_v51  ;;  %v300_v5 = vld [vmem:[#allocation5 + $0x598] sm:$0xff]  ;;  %v283_v41 = vld [vmem:[#allocation5 + $0x510] sm:$0xff]  ;;  %v405_v62 = vld [vmem:[#allocation5 + $0x8e0] sm:$0xff] }
  0xb9   :  { %1626 = vmatprep.subr.bf16.mxu0 %v1625_v8  ;;  %1810 = vmatprep.subr.bf16.mxu1 %v1809_v52  ;;  %v238_v8 = vld [vmem:[#allocation5 + $0x3a8] sm:$0xff]  ;;  %v1817_v12 = vpack.c.bf16 %v300_v5, %v297_v4  ;;  %v369_v52 = vld [vmem:[#allocation5 + $0x7c0] sm:$0xff]  ;;  %v399_v50 = vld [vmem:[#allocation5 + $0x8b0] sm:$0xff] }
  0xba   :  { %v1647_v15 = vpack.c.bf16 %v238_v8, %v235_v7  ;;  %v1833_v60 = vpack.c.bf16 %v372_v53, %v369_v52  ;;  %v265_v5 = vld [vmem:[#allocation5 + $0x480] sm:$0xff]  ;;  %v272_v7 = vld [vmem:[#allocation5 + $0x4b8] sm:$0xff]  ;;  %v275_v8 = vld [vmem:[#allocation5 + $0x4d0] sm:$0xff] }
  0xbb   :  { %v289_v53 = vld [vmem:[#allocation5 + $0x540] sm:$0xff] }
  0xbc   :  { %1628 = vmatpush1.bf16.msra.mxu0 %v1627_v17  ;;  %1812 = vmatpush3.bf16.msra.mxu1 %v1811_v63  ;;  %v306_v17 = vld [vmem:[#allocation5 + $0x5c8] sm:$0xff]  ;;  %v2292_v63 = vld [vmem:[#allocation2 + $0x28] sm:$0xff] }
  0xbd   :  { %1630 = vmatprep.subr.bf16.mxu0 %v1629_v20  ;;  %1814 = vmatprep.subr.bf16.mxu1 %v1813_v0  ;;  %v244_v20 = vld [vmem:[#allocation5 + $0x3d8] sm:$0xff]  ;;  %v1821_v24 = vpack.c.bf16 %v306_v17, %v303_v16  ;;  %v1669_v16 = vpack.c.bf16 %v275_v8, %v272_v7  ;;  %v271_v17 = vld [vmem:[#allocation5 + $0x4b0] sm:$0xff] }
  0xbe   :  { %v1651_v27 = vpack.c.bf16 %v244_v20, %v241_v19  ;;  %v278_v19 = vld [vmem:[#allocation5 + $0x4e8] sm:$0xff]  ;;  %v281_v20 = vld [vmem:[#allocation5 + $0x500] sm:$0xff] }
  0xc0   :  { %1632 = vmatpush1.bf16.msra.mxu0 %v1631_v29  ;;  %1816 = vmatpush3.bf16.msra.mxu1 %v1815_v11  ;;  %v312_v29 = vld [vmem:[#allocation5 + $0x5f8] sm:$0xff]  ;;  %v327_v11 = vld [vmem:[#allocation5 + $0x670] sm:$0xff] }
  0xc1   :  { %1634 = vmatprep.subr.bf16.mxu0 %v1633_v33  ;;  %1818 = vmatprep.subr.bf16.mxu1 %v1817_v12  ;;  %v254_v33 = vld [vmem:[#allocation5 + $0x428] sm:$0xff]  ;;  %v1825_v36 = vpack.c.bf16 %v312_v29, %v309_v28  ;;  %v1673_v28 = vpack.c.bf16 %v281_v20, %v278_v19  ;;  %v277_v29 = vld [vmem:[#allocation5 + $0x4e0] sm:$0xff] }
  0xc2   :  { %v1657_v42 = vpack.c.bf16 %v257_v34, %v254_v33  ;;  %v330_v12 = vld [vmem:[#allocation5 + $0x688] sm:$0xff] }
  0xc3   :  { %501 = vmatmul.mubr.f32.vlgmr.msra.gmra.mrb[0].mxu0 %v114_v30  ;;  %v1653_v30 = vpack.c.bf16 %v251_v22, %v248_v21  ;;  %v1839_v21 = vpack.c.bf16 %v330_v12, %v327_v11  ;;  %v414_v19 = vld [vmem:[#allocation5 + $0x928] sm:$0xff] }
  0xc4   :  { %1636 = vmatpush1.bf16.msra.mxu0 %v1635_v43  ;;  %571 = vmatprep.mubr.f32.mxu0 %v117_v39  ;;  %v1655_v39 = vpack.c.bf16 %v250_v32, %v247_v31  ;;  %v253_v43 = vld [vmem:[#allocation5 + $0x420] sm:$0xff]  ;;  %v284_v31 = vld [vmem:[#allocation5 + $0x518] sm:$0xff]  ;;  %v287_v32 = vld [vmem:[#allocation5 + $0x530] sm:$0xff] }
  0xc5   :  { %1638 = vmatprep.subr.bf16.mxu0 %v1637_v46  ;;  %1820 = vmatpush3.bf16.msra.mxu1 %v1819_v23  ;;  %v263_v46 = vld [vmem:[#allocation5 + $0x470] sm:$0xff]  ;;  %v1659_v51 = vpack.c.bf16 %v256_v44, %v253_v43  ;;  %v333_v23 = vld [vmem:[#allocation5 + $0x6a0] sm:$0xff]  ;;  %v1677_v40 = vpack.c.bf16 %v287_v32, %v284_v31  ;;  %v290_v43 = vld [vmem:[#allocation5 + $0x548] sm:$0xff] }
  0xc6   :  { %1822 = vmatprep.subr.bf16.mxu1 %v1821_v24  ;;  %v1661_v54 = vpack.c.bf16 %v263_v46, %v260_v45  ;;  %v336_v24 = vld [vmem:[#allocation5 + $0x6b8] sm:$0xff]  ;;  %v293_v44 = vld [vmem:[#allocation5 + $0x560] sm:$0xff] }
  0xc7   :  { %v1843_v33 = vpack.c.bf16 %v336_v24, %v333_v23  ;;  %v1681_v52 = vpack.c.bf16 %v293_v44, %v290_v43  ;;  %v310_v23 = vld [vmem:[#allocation5 + $0x5e8] sm:$0xff]  ;;  %v313_v31 = vld [vmem:[#allocation5 + $0x600] sm:$0xff]  ;;  %v316_v32 = vld [vmem:[#allocation5 + $0x618] sm:$0xff] }
  0xc8   :  { %1640 = vmatpush1.bf16.msra.mxu0 %v1639_v55  ;;  %v259_v55 = vld [vmem:[#allocation5 + $0x450] sm:$0xff]  ;;  %v314_v24 = vld [vmem:[#allocation5 + $0x608] sm:$0xff] }
  0xc9   :  { %1642 = vmatprep.subr.bf16.mxu0 %v1641_v58  ;;  %1824 = vmatpush3.bf16.msra.mxu1 %v1823_v35  ;;  %v269_v58 = vld [vmem:[#allocation5 + $0x4a0] sm:$0xff]  ;;  %v1663_v0 = vpack.c.bf16 %v262_v56, %v259_v55  ;;  %v339_v35 = vld [vmem:[#allocation5 + $0x6d0] sm:$0xff]  ;;  %v296_v55 = vld [vmem:[#allocation5 + $0x578] sm:$0xff] }
  0xca   :  { %1826 = vmatprep.subr.bf16.mxu1 %v1825_v36  ;;  %v1665_v4 = vpack.c.bf16 %v269_v58, %v266_v57  ;;  %v342_v36 = vld [vmem:[#allocation5 + $0x6e8] sm:$0xff]  ;;  %v299_v56 = vld [vmem:[#allocation5 + $0x590] sm:$0xff] }
  0xcb   :  { %v1847_v45 = vpack.c.bf16 %v342_v36, %v339_v35  ;;  %v2166_v35 = vmov 0.0   ;;  %v2304_v36 = vld [vmem:[#allocation2 + $0x30] sm:$0xff] }
  0xcc   :  { %1644 = vmatpush1.bf16.msra.mxu0 %v1643_v3  ;;  %v378_v3 = vld [vmem:[#allocation5 + $0x808] sm:$0xff] }
  0xcd   :  { %1646 = vmatprep.subr.bf16.mxu0 %v1645_v6  ;;  %1828 = vmatpush3.bf16.msra.mxu1 %v1827_v47  ;;  %v268_v6 = vld [vmem:[#allocation5 + $0x498] sm:$0xff]  ;;  %v1837_v10 = vpack.c.bf16 %v378_v3, %v375_v2  ;;  %v345_v47 = vld [vmem:[#allocation5 + $0x700] sm:$0xff]  ;;  %v1685_v2 = vpack.c.bf16 %v299_v56, %v296_v55  ;;  %v295_v3 = vld [vmem:[#allocation5 + $0x570] sm:$0xff] }
  0xce   :  { %1830 = vmatprep.subr.bf16.mxu1 %v1829_v48  ;;  %v1667_v13 = vpack.c.bf16 %v268_v6, %v265_v5  ;;  %v348_v48 = vld [vmem:[#allocation5 + $0x718] sm:$0xff]  ;;  %v302_v5 = vld [vmem:[#allocation5 + $0x5a8] sm:$0xff]  ;;  %v305_v6 = vld [vmem:[#allocation5 + $0x5c0] sm:$0xff] }
  0xcf   :  { %v1851_v57 = vpack.c.bf16 %v348_v48, %v345_v47  ;;  %v1689_v12 = vpack.c.bf16 %v305_v6, %v302_v5  ;;  %v332_v47 = vld [vmem:[#allocation5 + $0x698] sm:$0xff]  ;;  %v335_v48 = vld [vmem:[#allocation5 + $0x6b0] sm:$0xff]  ;;  %v337_v56 = vld [vmem:[#allocation5 + $0x6c0] sm:$0xff] }
  0xd0   :  { %1648 = vmatpush1.bf16.msra.mxu0 %v1647_v15  ;;  %855 = vmatmul.mubr.f32.vlgmr.msra.gmra.mrb[2].mxu1 %v2294_v1  ;;  %v384_v15 = vld [vmem:[#allocation5 + $0x838] sm:$0xff]  ;;  %v349_v5 = vld [vmem:[#allocation5 + $0x720] sm:$0xff] }
  0xd1   :  { %1650 = vmatprep.subr.bf16.mxu0 %v1649_v18  ;;  %1832 = vmatpush3.bf16.msra.mxu1 %v1831_v59  ;;  %v274_v18 = vld [vmem:[#allocation5 + $0x4c8] sm:$0xff]  ;;  %v1841_v22 = vpack.c.bf16 %v384_v15, %v381_v14  ;;  %v351_v59 = vld [vmem:[#allocation5 + $0x730] sm:$0xff]  ;;  %v304_v14 = vld [vmem:[#allocation5 + $0x5b8] sm:$0xff] }
  0xd2   :  { %924 = vmatprep.mubr.f32.mxu1 %v2292_v63  ;;  %1834 = vmatprep.subr.bf16.mxu1 %v1833_v60  ;;  %v1671_v25 = vpack.c.bf16 %v274_v18, %v271_v17  ;;  %v354_v60 = vld [vmem:[#allocation5 + $0x748] sm:$0xff]  ;;  %v308_v15 = vld [vmem:[#allocation5 + $0x5d8] sm:$0xff]  ;;  %v411_v18 = vld [vmem:[#allocation5 + $0x910] sm:$0xff] }
  0xd3   :  { %v1855_v7 = vpack.c.bf16 %v354_v60, %v351_v59  ;;  %v352_v6 = vld [vmem:[#allocation5 + $0x738] sm:$0xff] }
  0xd4   :  { %1652 = vmatpush1.bf16.msra.mxu0 %v1651_v27  ;;  %v390_v27 = vld [vmem:[#allocation5 + $0x868] sm:$0xff] }
  0xd5   :  { %1654 = vmatprep.subr.bf16.mxu0 %v1653_v30  ;;  %1836 = vmatpush3.bf16.msra.mxu1 %v1835_v9  ;;  %v280_v30 = vld [vmem:[#allocation5 + $0x4f8] sm:$0xff]  ;;  %v1845_v34 = vpack.c.bf16 %v390_v27, %v387_v26  ;;  %v357_v9 = vld [vmem:[#allocation5 + $0x760] sm:$0xff]  ;;  %v2298_v26 = vld [vmem:[#allocation2 + $0x20] sm:$0xff]  ;;  %v1862_v27 = vpack.c.bf16 %v414_v19, %v411_v18 }
  0xd6   :  { %1838 = vmatprep.subr.bf16.mxu1 %v1837_v10  ;;  %v1675_v37 = vpack.c.bf16 %v280_v30, %v277_v29  ;;  %v360_v10 = vld [vmem:[#allocation5 + $0x778] sm:$0xff] }
  0xd7   :  { %v1859_v17 = vpack.c.bf16 %v360_v10, %v357_v9  ;;  %v1723_v9 = vpack.c.bf16 %v352_v6, %v349_v5  ;;  %v364_v18 = vld [vmem:[#allocation5 + $0x798] sm:$0xff]  ;;  %v409_v5 = vld [vmem:[#allocation5 + $0x900] sm:$0xff] }
  0xd8   :  { %1656 = vmatpush1.bf16.msra.mxu0 %v1655_v39  ;;  %v396_v39 = vld [vmem:[#allocation5 + $0x898] sm:$0xff] }
  0xd9   :  { %1658 = vmatprep.subr.bf16.mxu0 %v1657_v42  ;;  %1840 = vmatpush3.bf16.msra.mxu1 %v1839_v21  ;;  %v286_v42 = vld [vmem:[#allocation5 + $0x528] sm:$0xff]  ;;  %v1849_v46 = vpack.c.bf16 %v396_v39, %v393_v38  ;;  %v319_v39 = vld [vmem:[#allocation5 + $0x630] sm:$0xff]  ;;  %v368_v19 = vld [vmem:[#allocation5 + $0x7b8] sm:$0xff] }
  0xda   :  { %1842 = vmatprep.subr.bf16.mxu1 %v1841_v22  ;;  %v1679_v49 = vpack.c.bf16 %v286_v42, %v283_v41  ;;  %v307_v22 = vld [vmem:[#allocation5 + $0x5d0] sm:$0xff]  ;;  %v326_v41 = vld [vmem:[#allocation5 + $0x668] sm:$0xff]  ;;  %v329_v42 = vld [vmem:[#allocation5 + $0x680] sm:$0xff] }
  0xdb   :  { %v1695_v29 = vpack.c.bf16 %v310_v23, %v307_v22  ;;  %v1705_v44 = vpack.c.bf16 %v329_v42, %v326_v41  ;;  %v367_v23 = vld [vmem:[#allocation5 + $0x7b0] sm:$0xff]  ;;  %v386_v41 = vld [vmem:[#allocation5 + $0x848] sm:$0xff]  ;;  %v389_v42 = vld [vmem:[#allocation5 + $0x860] sm:$0xff] }
  0xdc   :  { %1660 = vmatpush1.bf16.msra.mxu0 %v1659_v51  ;;  %v402_v51 = vld [vmem:[#allocation5 + $0x8c8] sm:$0xff]  ;;  %v412_v6 = vld [vmem:[#allocation5 + $0x918] sm:$0xff] }
  0xdd   :  { %1662 = vmatprep.subr.bf16.mxu0 %v1661_v54  ;;  %1844 = vmatpush3.bf16.msra.mxu1 %v1843_v33  ;;  %v292_v54 = vld [vmem:[#allocation5 + $0x558] sm:$0xff]  ;;  %v1853_v58 = vpack.c.bf16 %v402_v51, %v399_v50  ;;  %v1709_v50 = vpack.c.bf16 %v335_v48, %v332_v47  ;;  %v331_v51 = vld [vmem:[#allocation5 + $0x690] sm:$0xff] }
  0xde   :  { %1846 = vmatprep.subr.bf16.mxu1 %v1845_v34  ;;  %v1683_v61 = vpack.c.bf16 %v292_v54, %v289_v53  ;;  %v320_v33 = vld [vmem:[#allocation5 + $0x638] sm:$0xff]  ;;  %v323_v34 = vld [vmem:[#allocation5 + $0x650] sm:$0xff]  ;;  %v338_v53 = vld [vmem:[#allocation5 + $0x6c8] sm:$0xff] }
  0xdf   :  { %v1701_v38 = vpack.c.bf16 %v323_v34, %v320_v33  ;;  %v341_v54 = vld [vmem:[#allocation5 + $0x6e0] sm:$0xff]  ;;  %v380_v33 = vld [vmem:[#allocation5 + $0x818] sm:$0xff]  ;;  %v383_v34 = vld [vmem:[#allocation5 + $0x830] sm:$0xff] }
  0xe0   :  { %1664 = vmatpush1.bf16.msra.mxu0 %v1663_v0  ;;  %v408_v0 = vld [vmem:[#allocation5 + $0x8f8] sm:$0xff]  ;;  %v1713_v55 = vpack.c.bf16 %v341_v54, %v338_v53  ;;  %v395_v48 = vld [vmem:[#allocation5 + $0x890] sm:$0xff]  ;;  %v398_v53 = vld [vmem:[#allocation5 + $0x8a8] sm:$0xff] }
  0xe1   :  { %1666 = vmatprep.subr.bf16.mxu0 %v1665_v4  ;;  %1848 = vmatpush3.bf16.msra.mxu1 %v1847_v45  ;;  %v298_v4 = vld [vmem:[#allocation5 + $0x588] sm:$0xff]  ;;  %v1857_v8 = vpack.c.bf16 %v408_v0, %v405_v62  ;;  %v325_v45 = vld [vmem:[#allocation5 + $0x660] sm:$0xff]  ;;  %v392_v47 = vld [vmem:[#allocation5 + $0x878] sm:$0xff] }
  0xe2   :  { %1850 = vmatprep.subr.bf16.mxu1 %v1849_v46  ;;  %v1687_v11 = vpack.c.bf16 %v298_v4, %v295_v3  ;;  %v328_v46 = vld [vmem:[#allocation5 + $0x678] sm:$0xff]  ;;  %v346_v62 = vld [vmem:[#allocation5 + $0x708] sm:$0xff]  ;;  %v401_v54 = vld [vmem:[#allocation5 + $0x8c0] sm:$0xff] }
  0xe3   :  { %v350_v0 = vld [vmem:[#allocation5 + $0x728] sm:$0xff] }
  0xe4   :  { %1668 = vmatpush1.bf16.msra.mxu0 %v1667_v13  ;;  %v301_v13 = vld [vmem:[#allocation5 + $0x5a0] sm:$0xff] }
  0xe5   :  { %1670 = vmatprep.subr.bf16.mxu0 %v1669_v16  ;;  %1852 = vmatpush3.bf16.msra.mxu1 %v1851_v57  ;;  %v311_v16 = vld [vmem:[#allocation5 + $0x5f0] sm:$0xff]  ;;  %v1691_v20 = vpack.c.bf16 %v304_v14, %v301_v13  ;;  %v344_v57 = vld [vmem:[#allocation5 + $0x6f8] sm:$0xff]  ;;  %v362_v13 = vld [vmem:[#allocation5 + $0x788] sm:$0xff] }
  0xe6   :  { %1854 = vmatprep.subr.bf16.mxu1 %v1853_v58  ;;  %v1693_v21 = vpack.c.bf16 %v311_v16, %v308_v15  ;;  %v347_v58 = vld [vmem:[#allocation5 + $0x710] sm:$0xff]  ;;  %v365_v14 = vld [vmem:[#allocation5 + $0x7a0] sm:$0xff] }
  0xe7   :  { %v1717_v60 = vpack.c.bf16 %v347_v58, %v344_v57  ;;  %v1729_v16 = vpack.c.bf16 %v365_v14, %v362_v13  ;;  %v404_v57 = vld [vmem:[#allocation5 + $0x8d8] sm:$0xff]  ;;  %v407_v58 = vld [vmem:[#allocation5 + $0x8f0] sm:$0xff]  ;;  %v1021_v13 = vld [vmem:[#allocation8 + $0x90] sm:$0xff] }
  0xe8   :  { %1672 = vmatpush1.bf16.msra.mxu0 %v1671_v25  ;;  %v317_v25 = vld [vmem:[#allocation5 + $0x620] sm:$0xff]  ;;  %v1022_v14 = vld [vmem:[#allocation8 + $0x98] sm:$0xff] }
  0xe9   :  { %1674 = vmatprep.subr.bf16.mxu0 %v1673_v28  ;;  %1856 = vmatpush3.bf16.msra.mxu1 %v1855_v7  ;;  %v2164_v28 = vmov 0.0|0.0   ;;  %v1697_v30 = vpack.c.bf16 %v317_v25, %v314_v24  ;;  %v356_v7 = vld [vmem:[#allocation5 + $0x758] sm:$0xff]  ;;  %v370_v24 = vld [vmem:[#allocation5 + $0x7c8] sm:$0xff] }
  0xea   :  { %1858 = vmatprep.subr.bf16.mxu1 %v1857_v8  ;;  %v359_v8 = vld [vmem:[#allocation5 + $0x770] sm:$0xff]  ;;  %v374_v25 = vld [vmem:[#allocation5 + $0x7e8] sm:$0xff] }
  0xeb   :  { %v1725_v10 = vpack.c.bf16 %v359_v8, %v356_v7  ;;  %v1763_v7 = vpack.c.bf16 %v412_v6, %v409_v5  ;;  %v1019_v8 = vld [vmem:[#allocation8 + $0x80] sm:$0xff] }
  0xec   :  { %1676 = vmatpush1.bf16.msra.mxu0 %v1675_v37  ;;  %v1699_v37 = vpack.c.bf16 %v316_v32, %v313_v31  ;;  %v373_v31 = vld [vmem:[#allocation5 + $0x7e0] sm:$0xff]  ;;  %v376_v32 = vld [vmem:[#allocation5 + $0x7f8] sm:$0xff] }
  0xed   :  { %1678 = vmatprep.subr.bf16.mxu0 %v1677_v40  ;;  %1860 = vmatpush3.bf16.msra.mxu1 %v1859_v17  ;;  %v322_v40 = vld [vmem:[#allocation5 + $0x648] sm:$0xff]  ;;  %v361_v17 = vld [vmem:[#allocation5 + $0x780] sm:$0xff] }
  0xee   :  { %1861 = vmatprep.subr.bf16.mxu1 %v2164_v28  ;;  %v1703_v43 = vpack.c.bf16 %v322_v40, %v319_v39  ;;  %v379_v39 = vld [vmem:[#allocation5 + $0x810] sm:$0xff]  ;;  %v382_v40 = vld [vmem:[#allocation5 + $0x828] sm:$0xff] }
  0xf0   :  { %1680 = vmatpush1.bf16.msra.mxu0 %v1679_v49  ;;  %925 = vmatmul.mubr.f32.vlgmr.msra.gmra.mrb[4].mxu1 %v2298_v26  ;;  %v1707_v49 = vpack.c.bf16 %v328_v46, %v325_v45  ;;  %v385_v45 = vld [vmem:[#allocation5 + $0x840] sm:$0xff]  ;;  %v388_v46 = vld [vmem:[#allocation5 + $0x858] sm:$0xff] }
  0xf1   :  { %1682 = vmatprep.subr.bf16.mxu0 %v1681_v52  ;;  %1863 = vmatpush3.bf16.msra.mxu1 %v1862_v27  ;;  %v334_v52 = vld [vmem:[#allocation5 + $0x6a8] sm:$0xff]  ;;  %v377_v27 = vld [vmem:[#allocation5 + $0x800] sm:$0xff] }
  0xf2   :  { %1496 = vmatprep.mubr.msk.f32.mxu1 %vm2165_vm0, %v2166_v35 }
  0xf4   :  { %1684 = vmatpush1.bf16.msra.mxu0 %v1683_v61  ;;  %1497 = vmatmul.mubr.msk.f32.vlgmr.msra.gmra.mrb[6].mxu1 %vm432_vm1, %v2304_v36  ;;  %v343_v61 = vld [vmem:[#allocation5 + $0x6f0] sm:$0xff] }
  0xf5   :  { %1686 = vmatprep.subr.bf16.mxu0 %v1685_v2  ;;  %v353_v2 = vld [vmem:[#allocation5 + $0x740] sm:$0xff]  ;;  %v1719_v3 = vpack.c.bf16 %v346_v62, %v343_v61  ;;  %v403_v61 = vld [vmem:[#allocation5 + $0x8d0] sm:$0xff]  ;;  %v406_v62 = vld [vmem:[#allocation5 + $0x8e8] sm:$0xff] }
  0xf6   :  { %v1721_v4 = vpack.c.bf16 %v353_v2, %v350_v0  ;;  %v410_v0 = vld [vmem:[#allocation5 + $0x908] sm:$0xff]  ;;  %v413_v2 = vld [vmem:[#allocation5 + $0x920] sm:$0xff] }
  0xf8   :  { %1688 = vmatpush1.bf16.msra.mxu0 %v1687_v11  ;;  %v355_v11 = vld [vmem:[#allocation5 + $0x750] sm:$0xff] }
  0xf9   :  { %1690 = vmatprep.subr.bf16.mxu0 %v1689_v12  ;;  %v358_v12 = vld [vmem:[#allocation5 + $0x768] sm:$0xff] }
  0xfa   :  { %v1727_v15 = vpack.c.bf16 %v358_v12, %v355_v11  ;;  %v1004_v12 = vld [vmem:[#allocation8 + $0x8] sm:$0xff] }
  0xfc   :  { %1692 = vmatpush1.bf16.msra.mxu0 %v1691_v20  ;;  %v371_v20 = vld [vmem:[#allocation5 + $0x7d0] sm:$0xff] }
  0xfd   :  { %1694 = vmatprep.subr.bf16.mxu0 %v1693_v21  ;;  %v1731_v21 = vpack.c.bf16 %v364_v18, %v361_v17  ;;  %v1733_v22 = vpack.c.bf16 %v371_v20, %v368_v19  ;;  %v1005_v17 = vld [vmem:[#allocation8 + $0x10] sm:$0xff]  ;;  %v1006_v18 = vld [vmem:[#allocation8 + $0x18] sm:$0xff]  ;;  %v1023_v19 = vld [vmem:[#allocation8 + $0xa0] sm:$0xff] }
  0xfe   :  { %v1870_v20 = vpack.c.bf16 %v1006_v18, %v1005_v17 }
 0x100   :  { %1696 = vmatpush1.bf16.msra.mxu0 %v1695_v29  ;;  %v1735_v29 = vpack.c.bf16 %v370_v24, %v367_v23  ;;  %v1025_v23 = vld [vmem:[#allocation8 + $0xb0] sm:$0xff]  ;;  %v1026_v24 = vld [vmem:[#allocation8 + $0xb8] sm:$0xff] }
 0x101   :  { %1698 = vmatprep.subr.bf16.mxu0 %v1697_v30  ;;  %v1737_v30 = vpack.c.bf16 %v377_v27, %v374_v25  ;;  %v1876_v27 = vpack.c.bf16 %v1026_v24, %v1025_v23 }
 0x103   :  { %572 = vmatmul.mubr.f32.vlgmr.msra.gmra.mrb[0].mxu0 %v2294_v1  ;;  %v1711_v1 = vpack.c.bf16 %v334_v52, %v331_v51  ;;  %v391_v51 = vld [vmem:[#allocation5 + $0x870] sm:$0xff]  ;;  %v394_v52 = vld [vmem:[#allocation5 + $0x888] sm:$0xff] }
 0x104   :  { %1700 = vmatpush1.bf16.msra.mxu0 %v1699_v37  ;;  %642 = vmatprep.mubr.f32.mxu0 %v2292_v63  ;;  %v340_v63 = vld [vmem:[#allocation5 + $0x6d8] sm:$0xff]  ;;  %v1739_v37 = vpack.c.bf16 %v376_v32, %v373_v31 }
 0x105   :  { %1702 = vmatprep.subr.bf16.mxu0 %v1701_v38  ;;  %v1715_v59 = vpack.c.bf16 %v340_v63, %v337_v56  ;;  %v1741_v38 = vpack.c.bf16 %v383_v34, %v380_v33  ;;  %v397_v56 = vld [vmem:[#allocation5 + $0x8a0] sm:$0xff]  ;;  %v400_v63 = vld [vmem:[#allocation5 + $0x8b8] sm:$0xff] }
 0x106   :  { %v1027_v31 = vld [vmem:[#allocation8 + $0xc0] sm:$0xff]  ;;  %v1028_v32 = vld [vmem:[#allocation8 + $0xc8] sm:$0xff] }
 0x107   :  { %v1880_v34 = vpack.c.bf16 %v1028_v32, %v1027_v31  ;;  %v1040_v31 = vld [vmem:[#allocation8 + $0x128] sm:$0xff] }
 0x108   :  { %1704 = vmatpush1.bf16.msra.mxu0 %v1703_v43  ;;  %v1743_v43 = vpack.c.bf16 %v382_v40, %v379_v39  ;;  %v1029_v39 = vld [vmem:[#allocation8 + $0xd0] sm:$0xff]  ;;  %v1030_v40 = vld [vmem:[#allocation8 + $0xd8] sm:$0xff] }
 0x109   :  { %1706 = vmatprep.subr.bf16.mxu0 %v1705_v44  ;;  %v1745_v44 = vpack.c.bf16 %v389_v42, %v386_v41  ;;  %v1884_v42 = vpack.c.bf16 %v1030_v40, %v1029_v39  ;;  %v1044_v39 = vld [vmem:[#allocation8 + $0x148] sm:$0xff] }
 0x10c   :  { %1708 = vmatpush1.bf16.msra.mxu0 %v1707_v49  ;;  %v1747_v49 = vpack.c.bf16 %v388_v46, %v385_v45  ;;  %v1031_v45 = vld [vmem:[#allocation8 + $0xe0] sm:$0xff]  ;;  %v1032_v46 = vld [vmem:[#allocation8 + $0xe8] sm:$0xff] }
 0x10d   :  { %1710 = vmatprep.subr.bf16.mxu0 %v1709_v50  ;;  %v1749_v50 = vpack.c.bf16 %v395_v48, %v392_v47  ;;  %v1888_v48 = vpack.c.bf16 %v1032_v46, %v1031_v45  ;;  %v1048_v45 = vld [vmem:[#allocation8 + $0x168] sm:$0xff] }
 0x110   :  { %1712 = vmatpush1.bf16.msra.mxu0 %v1711_v1  ;;  %v1751_v1 = vpack.c.bf16 %v394_v52, %v391_v51 }
 0x111   :  { %1714 = vmatprep.subr.bf16.mxu0 %v1713_v55  ;;  %v1753_v55 = vpack.c.bf16 %v401_v54, %v398_v53 }
 0x114   :  { %1716 = vmatpush1.bf16.msra.mxu0 %v1715_v59  ;;  %v1755_v59 = vpack.c.bf16 %v400_v63, %v397_v56  ;;  %v1017_v63 = vld [vmem:[#allocation8 + $0x70] sm:$0xff] }
 0x115   :  { %1718 = vmatprep.subr.bf16.mxu0 %v1717_v60  ;;  %v1757_v60 = vpack.c.bf16 %v407_v58, %v404_v57  ;;  %v1018_v57 = vld [vmem:[#allocation8 + $0x78] sm:$0xff] }
 0x116   :  { %v1894_v58 = vpack.c.bf16 %v1018_v57, %v1017_v63  ;;  %v1204_v63 = vld [vmem:[#allocation11 + $0x28] sm:$0xff] }
 0x118   :  { %1720 = vmatpush1.bf16.msra.mxu0 %v1719_v3  ;;  %v1759_v3 = vpack.c.bf16 %v406_v62, %v403_v61  ;;  %v415_v62 = vld [vmem:[#allocation7] sm:$0x7] }
 0x119   :  { %1722 = vmatprep.subr.bf16.mxu0 %v1721_v4  ;;  %v1761_v4 = vpack.c.bf16 %v413_v2, %v410_v0 }
 0x11c   :  { %1724 = vmatpush1.bf16.msra.mxu0 %v1723_v9  ;;  %v1020_v9 = vld [vmem:[#allocation8 + $0x88] sm:$0xff] }
 0x11d   :  { %1726 = vmatprep.subr.bf16.mxu0 %v1725_v10  ;;  %v1003_v10 = vld [vmem:[#allocation8] sm:$0xff]  ;;  %v1864_v11 = vpack.c.bf16 %v1020_v9, %v1019_v8 }
 0x11f   :  { %1865 = vmatprep.subr.bf16.mxu1 %v1864_v11 }
 0x120   :  { %1728 = vmatpush1.bf16.msra.mxu0 %v1727_v15  ;;  %v1866_v15 = vpack.c.bf16 %v1004_v12, %v1003_v10 }
 0x121   :  { %1730 = vmatprep.subr.bf16.mxu0 %v1729_v16  ;;  %v1868_v16 = vpack.c.bf16 %v1022_v14, %v1021_v13 }
 0x122   :  { %1867 = vmatpush3.bf16.msra.mxu1 %v1866_v15 }
 0x123   :  { %1869 = vmatprep.subr.bf16.mxu1 %v1868_v16 }
 0x124   :  { %1732 = vmatpush1.bf16.msra.mxu0 %v1731_v21 }
 0x125   :  { %1734 = vmatprep.subr.bf16.mxu0 %v1733_v22  ;;  %v1007_v22 = vld [vmem:[#allocation8 + $0x20] sm:$0xff] }
 0x126   :  { %1871 = vmatpush3.bf16.msra.mxu1 %v1870_v20  ;;  %v1035_v20 = vld [vmem:[#allocation8 + $0x100] sm:$0xff] }
 0x128   :  { %1736 = vmatpush1.bf16.msra.mxu0 %v1735_v29  ;;  %v1009_v29 = vld [vmem:[#allocation8 + $0x30] sm:$0xff] }
 0x129   :  { %1738 = vmatprep.subr.bf16.mxu0 %v1737_v30  ;;  %v1010_v30 = vld [vmem:[#allocation8 + $0x38] sm:$0xff] }
 0x12a   :  { %v1878_v33 = vpack.c.bf16 %v1010_v30, %v1009_v29  ;;  %v1039_v30 = vld [vmem:[#allocation8 + $0x120] sm:$0xff] }
 0x12b   :  { %v1903_v32 = vpack.c.bf16 %v1040_v31, %v1039_v30 }
 0x12c   :  { %1740 = vmatpush1.bf16.msra.mxu0 %v1739_v37  ;;  %v1011_v37 = vld [vmem:[#allocation8 + $0x40] sm:$0xff] }
 0x12d   :  { %1742 = vmatprep.subr.bf16.mxu0 %v1741_v38  ;;  %v1012_v38 = vld [vmem:[#allocation8 + $0x48] sm:$0xff] }
 0x12e   :  { %v1882_v41 = vpack.c.bf16 %v1012_v38, %v1011_v37  ;;  %v1043_v38 = vld [vmem:[#allocation8 + $0x140] sm:$0xff] }
 0x12f   :  { %v1909_v40 = vpack.c.bf16 %v1044_v39, %v1043_v38 }
 0x130   :  { %1744 = vmatpush1.bf16.msra.mxu0 %v1743_v43  ;;  %v1013_v43 = vld [vmem:[#allocation8 + $0x50] sm:$0xff] }
 0x131   :  { %1746 = vmatprep.subr.bf16.mxu0 %v1745_v44  ;;  %v1014_v44 = vld [vmem:[#allocation8 + $0x58] sm:$0xff] }
 0x132   :  { %v1886_v47 = vpack.c.bf16 %v1014_v44, %v1013_v43  ;;  %v1047_v44 = vld [vmem:[#allocation8 + $0x160] sm:$0xff] }
 0x133   :  { %v1915_v46 = vpack.c.bf16 %v1048_v45, %v1047_v44 }
 0x134   :  { %1748 = vmatpush1.bf16.msra.mxu0 %v1747_v49  ;;  %v1015_v49 = vld [vmem:[#allocation8 + $0x60] sm:$0xff] }
 0x135   :  { %1750 = vmatprep.subr.bf16.mxu0 %v1749_v50  ;;  %v1016_v50 = vld [vmem:[#allocation8 + $0x68] sm:$0xff] }
 0x136   :  { %v1890_v51 = vpack.c.bf16 %v1016_v50, %v1015_v49 }
 0x138   :  { %1752 = vmatpush1.bf16.msra.mxu0 %v1751_v1  ;;  %v1033_v1 = vld [vmem:[#allocation8 + $0xf0] sm:$0xff] }
 0x139   :  { %1754 = vmatprep.subr.bf16.mxu0 %v1753_v55  ;;  %v1034_v55 = vld [vmem:[#allocation8 + $0xf8] sm:$0xff] }
 0x13a   :  { %v1892_v56 = vpack.c.bf16 %v1034_v55, %v1033_v1  ;;  %v1202_v1 = vld [vmem:[#allocation11 + $0x18] sm:$0xff] }
 0x13c   :  { %1756 = vmatpush1.bf16.msra.mxu0 %v1755_v59  ;;  %v417_v59 = vlaneseq }
 0x13d   :  { %1758 = vmatprep.subr.bf16.mxu0 %v1757_v60 }
 0x13e   :  { %v418_v60 = vshrl.u32 %v417_v59, 7  ;;  %v1206_v59 = vld [vmem:[#allocation11 + $0x38] sm:$0xff] }
 0x140   :  { %1760 = vmatpush1.bf16.msra.mxu0 %v1759_v3  ;;  %v427_v61 = vsub.s32 2, %v418_v60  ;;  %v419_v14 = vsub.s32 0, %v418_v60  ;;  %v423_v15 = vsub.s32 1, %v418_v60 }
 0x141   :  { %1762 = vmatprep.subr.bf16.mxu0 %v1761_v4 }
 0x142   :  { %v428_v0 = vrot.slane %v415_v62, %v427_v61  ;;  %v420_v16 = vrot.slane %v415_v62, %v419_v14  ;;  %v424_v17 = vrot.slane %v415_v62, %v423_v15  ;;  %v1208_v61 = vld [vmem:[#allocation11 + $0x48] sm:$0xff] }
 0x143   :  { %643 = vmatmul.mubr.f32.vlgmr.msra.gmra.mrb[0].mxu0 %v2298_v26  ;;  %v1024_v26 = vld [vmem:[#allocation8 + $0xa8] sm:$0xff] }
 0x144   :  { %1764 = vmatpush1.bf16.msra.mxu0 %v1763_v7  ;;  %713 = vmatprep.mubr.f32.mxu0 %v2166_v35  ;;  %v1872_v21 = vpack.c.bf16 %v1024_v26, %v1023_v19 }
 0x146   :  { %1873 = vmatprep.subr.bf16.mxu1 %v1872_v21  ;;  %v1036_v21 = vld [vmem:[#allocation8 + $0x108] sm:$0xff] }
 0x147   :  { %v1897_v23 = vpack.c.bf16 %v1036_v21, %v1035_v20 }
 0x14b   :  { %1311 = vmatmul.mubr.msk.f32.vlgmr.msra.gmra.mrb[0].mxu0 %vm432_vm1, %v2304_v36  ;;  %v1008_v36 = vld [vmem:[#allocation8 + $0x28] sm:$0xff] }
 0x14c   :  { %v1874_v25 = vpack.c.bf16 %v1008_v36, %v1007_v22 }
 0x14e   :  { %1875 = vmatpush3.bf16.msra.mxu1 %v1874_v25  ;;  %v1037_v25 = vld [vmem:[#allocation8 + $0x110] sm:$0xff] }
 0x14f   :  { %1877 = vmatprep.subr.bf16.mxu1 %v1876_v27  ;;  %v1038_v27 = vld [vmem:[#allocation8 + $0x118] sm:$0xff] }
 0x150   :  { %v1900_v29 = vpack.c.bf16 %v1038_v27, %v1037_v25 }
 0x152   :  { %1879 = vmatpush3.bf16.msra.mxu1 %v1878_v33  ;;  %v1041_v33 = vld [vmem:[#allocation8 + $0x130] sm:$0xff] }
 0x153   :  { %1881 = vmatprep.subr.bf16.mxu1 %v1880_v34  ;;  %v1042_v34 = vld [vmem:[#allocation8 + $0x138] sm:$0xff] }
 0x154   :  { %v1906_v37 = vpack.c.bf16 %v1042_v34, %v1041_v33 }
 0x156   :  { %1883 = vmatpush3.bf16.msra.mxu1 %v1882_v41  ;;  %v1045_v41 = vld [vmem:[#allocation8 + $0x150] sm:$0xff] }
 0x157   :  { %1885 = vmatprep.subr.bf16.mxu1 %v1884_v42  ;;  %v1046_v42 = vld [vmem:[#allocation8 + $0x158] sm:$0xff] }
 0x158   :  { %v1912_v43 = vpack.c.bf16 %v1046_v42, %v1045_v41 }
 0x15a   :  { %1887 = vmatpush3.bf16.msra.mxu1 %v1886_v47  ;;  %v1049_v47 = vld [vmem:[#allocation8 + $0x170] sm:$0xff] }
 0x15b   :  { %1889 = vmatprep.subr.bf16.mxu1 %v1888_v48  ;;  %v1050_v48 = vld [vmem:[#allocation8 + $0x178] sm:$0xff] }
 0x15c   :  { %v1918_v49 = vpack.c.bf16 %v1050_v48, %v1049_v47 }
 0x15e   :  { %1891 = vmatpush3.bf16.msra.mxu1 %v1890_v51  ;;  %v1199_v51 = vld [vmem:[#allocation11] sm:$0xff] }
 0x15f   :  { %1893 = vmatprep.subr.bf16.mxu1 %v1892_v56  ;;  %v1203_v56 = vld [vmem:[#allocation11 + $0x20] sm:$0xff] }
 0x160   :  { %v1927_v57 = vpack.c.bf16 %v1204_v63, %v1203_v56 }
 0x162   :  { %1895 = vmatpush3.bf16.msra.mxu1 %v1894_v58  ;;  %v1205_v58 = vld [vmem:[#allocation11 + $0x30] sm:$0xff] }
 0x163   :  { %1896 = vmatprep.subr.bf16.mxu1 %v2164_v28  ;;  %v1930_v60 = vpack.c.bf16 %v1206_v59, %v1205_v58 }
 0x182   :  { %v1347_v52 = vpop.f32.mrb[0].mxu1 }
 0x183   :  { %v1348_v53 = vpop.f32.mrb[1].mxu1 }
 0x184   :  { %v1349_v54 = vadd.f32 %v1348_v53, %v1347_v52  ;;  %v1200_v52 = vld [vmem:[#allocation11 + $0x8] sm:$0xff]  ;;  %v1201_v53 = vld [vmem:[#allocation11 + $0x10] sm:$0xff] }
 0x185   :  { %v1924_v55 = vpack.c.bf16 %v1202_v1, %v1201_v53 }
 0x186   :  { %v787_v2 = vadd.f32 %v1349_v54, %v428_v0  ;;  %v1921_v54 = vpack.c.bf16 %v1200_v52, %v1199_v51  ;;  %v1209_v0 = vld [vmem:[#allocation11 + $0x50] sm:$0xff] }
 0x1a3   :  { %v1382_v3 = vpop.f32.mrb[2].mxu1 }
 0x1a4   :  { %v1383_v4 = vpop.f32.mrb[3].mxu1 }
 0x1a5   :  { %v1384_v5 = vadd.f32 %v1383_v4, %v1382_v3  ;;  %v1211_v4 = vld [vmem:[#allocation11 + $0x60] sm:$0xff] }
 0x1a7   :  { %v857_v6 = vadd.f32 %v1384_v5, %v787_v2  ;;  %v1210_v2 = vld [vmem:[#allocation11 + $0x58] sm:$0xff]  ;;  %v1212_v5 = vld [vmem:[#allocation11 + $0x68] sm:$0xff] }
 0x1a8   :  { %v1936_v3 = vpack.c.bf16 %v1210_v2, %v1209_v0 }
 0x1c3   :  { %v1417_v7 = vpop.f32.mrb[4].mxu1 }
 0x1c4   :  { %v1418_v8 = vpop.f32.mrb[5].mxu1 }
 0x1c5   :  { %v1419_v9 = vadd.f32 %v1418_v8, %v1417_v7  ;;  %v1213_v7 = vld [vmem:[#allocation11 + $0x70] sm:$0xff]  ;;  %v1214_v8 = vld [vmem:[#allocation11 + $0x78] sm:$0xff] }
 0x1c7   :  { %v927_v10 = vadd.f32 %v1419_v9, %v857_v6  ;;  %v996_v11 = vpop.f32.mrb[6].mxu1  ;;  %v1939_v6 = vpack.c.bf16 %v1212_v5, %v1211_v4  ;;  %v1942_v9 = vpack.c.bf16 %v1214_v8, %v1213_v7 }
 0x1c8   :  { %v1498_v12 = vpop.f32.mrb[7].mxu1 }
 0x1c9   :  { %v997_v13 = vadd.f32 %v996_v11, %v927_v10 }
 0x1cb   :  { %v1002_v50 = vmax.f32 %v997_v13, 0.0  ;;  %v1313_v13 = vld [vmem:[#allocation10] ss:$0 sm:$0xff] }
 0x21e   :  { %v715_v18 = vpop.f32.mrb[0].mxu0 }
 0x21f   :  { %v1944_v19 = vadd.f32 %v715_v18, %v420_v16  ;;  %v717_v26 = vpop.f32.mrb[1].mxu0 }
 0x220   :  { %v1945_v22 = vadd.f32 %v717_v26, %v424_v17 }
 0x221   :  { %v1000_v24 = vmax.f32 %v1944_v19, 0.0  ;;  %v1314_v19 = vld [vmem:[#allocation13] ss:$0 sm:$0xff] }
 0x222   :  { %v1001_v36 = vmax.f32 %v1945_v22, 0.0 }
 0x224   :  { %1122 = vmatprep.mubr.f32.mxu1 %v1001_v36 }
 0x225   :  { %1123 = vmatmul.mubr.f32.vlgmr.msra.gmra.mrb[8].mxu1 %v1000_v24 }
 0x226   :  { %1898 = vmatpush3.bf16.msra.mxu1 %v1897_v23  ;;  %1531 = vmatprep.mubr.msk.f32.mxu1 %vm2165_vm0, %v2166_v35 }
 0x227   :  { %1899 = vmatprep.subr.bf16.mxu1 %v2164_v28 }
 0x22a   :  { %1901 = vmatpush3.bf16.msra.mxu1 %v1900_v29 }
 0x22b   :  { %1902 = vmatprep.subr.bf16.mxu1 %v2164_v28 }
 0x22e   :  { %1904 = vmatpush3.bf16.msra.mxu1 %v1903_v32 }
 0x22f   :  { %1905 = vmatprep.subr.bf16.mxu1 %v2164_v28 }
 0x232   :  { %1907 = vmatpush3.bf16.msra.mxu1 %v1906_v37 }
 0x233   :  { %1908 = vmatprep.subr.bf16.mxu1 %v2164_v28 }
 0x236   :  { %1910 = vmatpush3.bf16.msra.mxu1 %v1909_v40 }
 0x237   :  { %1911 = vmatprep.subr.bf16.mxu1 %v2164_v28 }
 0x23a   :  { %1913 = vmatpush3.bf16.msra.mxu1 %v1912_v43 }
 0x23b   :  { %1914 = vmatprep.subr.bf16.mxu1 %v2164_v28 }
 0x23e   :  { %1916 = vmatpush3.bf16.msra.mxu1 %v1915_v46 }
 0x23f   :  { %1917 = vmatprep.subr.bf16.mxu1 %v2164_v28 }
 0x242   :  { %1919 = vmatpush3.bf16.msra.mxu1 %v1918_v49 }
 0x243   :  { %1920 = vmatprep.subr.bf16.mxu1 %v2164_v28 }
 0x245   :  { %1532 = vmatmul.mubr.f32.vlgmr.msra.gmra.mrb[10].mxu1 %v1002_v50 }
 0x246   :  { %1566 = vmatprep.mubr.msk.f32.mxu1 %vm2165_vm0, %v2166_v35  ;;  %1922 = vmatpush3.bf16.msra.mxu1 %v1921_v54  ;;  %v1207_v35 = vld [vmem:[#allocation11 + $0x40] sm:$0xff] }
 0x247   :  { %1923 = vmatprep.subr.bf16.mxu1 %v2164_v28  ;;  %v1933_v62 = vpack.c.bf16 %v1208_v61, %v1207_v35 }
 0x24a   :  { %1925 = vmatpush3.bf16.msra.mxu1 %v1924_v55 }
 0x24b   :  { %1926 = vmatprep.subr.bf16.mxu1 %v2164_v28 }
 0x24e   :  { %1928 = vmatpush3.bf16.msra.mxu1 %v1927_v57 }
 0x24f   :  { %1929 = vmatprep.subr.bf16.mxu1 %v2164_v28 }
 0x252   :  { %1931 = vmatpush3.bf16.msra.mxu1 %v1930_v60 }
 0x253   :  { %1932 = vmatprep.subr.bf16.mxu1 %v2164_v28 }
 0x256   :  { %1934 = vmatpush3.bf16.msra.mxu1 %v1933_v62 }
 0x257   :  { %1935 = vmatprep.subr.bf16.mxu1 %v2164_v28 }
 0x25a   :  { %1937 = vmatpush3.bf16.msra.mxu1 %v1936_v3 }
 0x25b   :  { %1938 = vmatprep.subr.bf16.mxu1 %v2164_v28 }
 0x25e   :  { %1940 = vmatpush3.bf16.msra.mxu1 %v1939_v6 }
 0x25f   :  { %1941 = vmatprep.subr.bf16.mxu1 %v2164_v28 }
 0x262   :  { %1943 = vmatpush3.bf16.msra.mxu1 %v1942_v9 }
 0x2f8   :  { %v1455_v10 = vpop.f32.mrb[8].mxu1 }
 0x2f9   :  { %v1456_v11 = vpop.f32.mrb[9].mxu1 }
 0x2fa   :  { %v1457_v12 = vadd.f32 %v1456_v11, %v1455_v10 }
 0x2fc   :  { %v1125_v14 = vadd.f32 %v1457_v12, %v1313_v13 }
 0x318   :  { %v1194_v15 = vpop.f32.mrb[10].mxu1 }
 0x319   :  { %v1195_v16 = vadd.f32 %v1194_v15, %v1125_v14  ;;  %v1533_v17 = vpop.f32.mrb[11].mxu1 }
 0x31b   :  { %v1198_v18 = vmax.f32 %v1195_v16, 0.0 }
 0x31d   :  { %1567 = vmatmul.mubr.f32.vlgmr.msra.gmra.mrb[12].mxu1 %v1198_v18 }
 0x3f0   :  { %v1288_v26 = vpop.f32.mrb[12].mxu1 }
 0x3f1   :  { %v1289_v20 = vadd.f32 %v1314_v19, %v1288_v26  ;;  %v1568_v28 = vpop.f32.mrb[13].mxu1 }
 0x3f3   :  { %1292 = vst [vmem:[#allocation14] sm:$0xff] %v1289_v20 }
 0x3f4   :  { %2132 = shalt.err (!%p2129_p4)
}
 0x3f5   :  { %s2133_s3 = scalar_lea.hbm %s2353_s7, 128 }
 0x3f6   :  { %p2134_p5 = scmp.ne.s32.totalorder %s2353_s7, %s2133_s3  ;;  %p2137_p6 = scmp.lt.u32.totalorder %s2133_s3, %s2353_s7 }
 0x3f8   :  { %p2139_p7 = pnand %p2137_p6, %p2134_p5 }
 0x3fa   :  { %2142 = shalt.err (!%p2139_p7)
}
 0x3fb   :  { %1302 = dma.vmem_to_hbm [thread:$0]  %s1300_s14, 128, %s2353_s7, [#allocation4]  }
 0x3fc   :  { %2151 = dma.done.wait [#allocation4], 128  }
 0x3fd   :  { %2152 = vsyncadd [#allocation4], 4294967168 }
 0x3fe   :  { %1306 = vsyncpa [#allocation3], 1 }
 0x3ff   :  { %1307 = vsyncpa [#allocation6], 1 }
 0x400   :  { %1308 = vsyncpa [#allocation9], 1 }
 0x401   :  { %1309 = vsyncpa [#allocation12], 1 }
 0x402   :  { %1310 = vsyncpa [#allocation4], 1 }

</bundles_post_ra>
